<compile_context>
chip_gen: v7x
topology: tpu7x:2x2x1
jax: 0.10.0
libtpu: 0.0.40
codegen_flags: <defaults>
</compile_context>

<pallas_src>
import numpy as np
import jax
import jax.numpy as jnp
from jax import lax
from jax.experimental import pallas as pl
from jax.experimental.pallas import tpu as pltpu

# ---------------- fixed small-VGG geometry (the packing below assumes these) ----------
B = 2           # batch (packed two-per-128-lanes)
C_IN = 3        # input channels
HW = 28         # input spatial
C1 = 8          # conv1 out channels
C2 = 16         # conv2 out channels
K = 3           # conv kernel
F1 = C_IN * K * K
DW = 64         # denselayers_width
NCLS = 10       # inputlastfc_dim
LANES = 128     # lane index n = b*64 + p*8 + q  (p,q: 7x7 pooled grid padded to 8x8)
BN_EPS = 1e-5


# ------------------------------------------------------------------
# In-kernel helpers
# ------------------------------------------------------------------
def _erf(v):
    """erf via Abramowitz & Stegun 7.1.26 (|err| < 1.5e-7); VPU/EUP ops only."""
    av = jnp.abs(v)
    t = 1.0 / (1.0 + 0.3275911 * av)
    poly = ((((1.061405429 * t - 1.453152027) * t + 1.421413741) * t
             - 0.284496736) * t + 0.254829592) * t
    y = 1.0 - poly * jnp.exp(-av * av)
    return jnp.where(v >= 0.0, y, -y)


# ------------------------------------------------------------------
# The single fused kernel
# ------------------------------------------------------------------
def vgg_fused_kernel(p1_ref, w1m_ref, b1c_ref, pmask_ref, w2t_ref, b2c_ref,
                     wb1_ref, bf1_ref, wb2_ref, bf2_ref, wb3_ref, bf3_ref,
                     bns_ref, bnb_ref, wlast_ref, o_ref, p2_s):
    # ---- conv1 + ReLU + 2x2 maxpool ------------------------------------------------
    # Produced directly as the 16 shifted "tap planes" (t_h, t_w) that conv2 consumes:
    # plane[c, b*64 + p*8 + q] = padded pooled1[b, c, 2p + t_h, 2q + t_w]  (0 at padding).
    w1m = w1m_ref[...]                      # (C1, F1)
    b1c = b1c_ref[...]                      # (C1, 1)
    planes = {}
    for th in range(4):
        for tw in range(4):
            acc = None
            for g in range(4):              # 2x2 maxpool sub-windows
                t = jnp.dot(w1m, p1_ref[th, tw, g],
                            preferred_element_type=jnp.float32)          # (C1, 128)
                acc = t if acc is None else jnp.maximum(acc, t)
            planes[(th, tw)] = jnp.maximum(acc + b1c, 0.0) * pmask_ref[th, tw]

    # ---- conv2 + ReLU + 2x2 maxpool  ->  (C2, 128) ----------------------------------
    b2c = b2c_ref[...]                      # (C2, 1)
    pooled = None
    for dh in range(2):
        for dw in range(2):
            acc = None
            for kh in range(3):
                for kw in range(3):
                    t = jnp.dot(w2t_ref[kh * 3 + kw], planes[(dh + kh, dw + kw)],
                                preferred_element_type=jnp.float32)      # (C2, 128)
                    acc = t if acc is None else acc + t
            pooled = acc if pooled is None else jnp.maximum(pooled, acc)
    p2_s[...] = jnp.maximum(pooled + b2c, 0.0)          # channels x (b, 7x7 pos) lanes

    # ---- classifier: fc1-ReLU-fc2-ReLU-fc3-ReLU-BN-lastfc-erf -----------------------
    # Both batch elements are packed on lanes as [b*64 + feature]; the packed FC weight
    # matrices are zero between the two 64-lane blocks, so the batches never mix.
    h = None
    for co in range(C2):                    # flatten(channel-major) folded into wb1
        t = jnp.dot(p2_s[pl.ds(co, 1), :], wb1_ref[co],
                    preferred_element_type=jnp.float32)                  # (1, 128)
        h = t if h is None else h + t
    h = jnp.maximum(h + bf1_ref[...], 0.0)
    h = jnp.maximum(jnp.dot(h, wb2_ref[...],
                            preferred_element_type=jnp.float32) + bf2_ref[...], 0.0)
    h = jnp.maximum(jnp.dot(h, wb3_ref[...],
                            preferred_element_type=jnp.float32) + bf3_ref[...], 0.0)
    h = h * bns_ref[...] + bnb_ref[...]     # BatchNorm1d (eval) as affine
    z = jnp.dot(h, wlast_ref[...], preferred_element_type=jnp.float32)
    o_ref[...] = _erf(z * 0.7071067811865476)           # erf(x / sqrt(2))


# ------------------------------------------------------------------
# pallas_call wrapper (single launch)
# ------------------------------------------------------------------
def _fs(shape):
    zeros = (0,) * len(shape)
    return pl.BlockSpec(shape, lambda i: zeros)


@jax.jit
def vgg_forward(x, prep):
    # Input-side glue only: gather conv1 patches from x into the packed layout.
    p1 = x.reshape(-1)[prep["gidx"]] * prep["gmsk"]      # (4,4,4,F1,128)
    out = pl.pallas_call(
        vgg_fused_kernel,
        out_shape=jax.ShapeDtypeStruct((1, LANES), jnp.float32),
        grid=(1,),
        in_specs=[
            _fs((4, 4, 4, F1, LANES)),      # p1
            _fs((C1, F1)), _fs((C1, 1)),    # conv1 weights / bias
            _fs((4, 4, 1, LANES)),          # plane validity mask
            _fs((K * K, C2, C1)), _fs((C2, 1)),                 # conv2
            _fs((C2, LANES, LANES)), _fs((1, LANES)),           # fc1
            _fs((LANES, LANES)), _fs((1, LANES)),               # fc2
            _fs((LANES, LANES)), _fs((1, LANES)),               # fc3
            _fs((1, LANES)), _fs((1, LANES)),                   # BN scale / shift
            _fs((LANES, LANES)),                                # lastfc
        ],
        out_specs=_fs((1, LANES)),
        scratch_shapes=[pltpu.VMEM((C2, LANES), jnp.float32)],
        compiler_params=pltpu.CompilerParams(dimension_semantics=("arbitrary",)),
    )(p1, prep["w1m"], prep["b1c"], prep["pmask"], prep["w2t"], prep["b2c"],
      prep["wb1"], prep["bf1p"], prep["wb2"], prep["bf2p"],
      prep["wb3"], prep["bf3p"], prep["bns"], prep["bnb"], prep["wlastp"])
    return out[0, :B].reshape(B, 1)


# ------------------------------------------------------------------
# One-time parameter / index packing (outside the jitted hot path)
# ------------------------------------------------------------------
def _build_patch_gather():
    gidx = np.zeros((4, 4, 4, F1, LANES), np.int32)
    gmsk = np.zeros((4, 4, 4, F1, LANES), np.float32)
    n = np.arange(LANES)
    b = n // 64
    p = (n % 64) // 8
    q = n % 8
    for th in range(4):
        for tw in range(4):
            for g in range(4):
                dh, dw = g // 2, g % 2
                for ci in range(C_IN):
                    for kh in range(K):
                        for kw in range(K):
                            f = ci * K * K + kh * K + kw
                            yy = 4 * p + 2 * th + dh + kh - 3
                            xx = 4 * q + 2 * tw + dw + kw - 3
                            ok = (yy >= 0) & (yy < HW) & (xx >= 0) & (xx < HW) & (b < B)
                            flat = ((b * C_IN + ci) * HW + np.clip(yy, 0, HW - 1)) * HW \
                                   + np.clip(xx, 0, HW - 1)
                            gidx[th, tw, g, f] = np.where(ok, flat, 0)
                            gmsk[th, tw, g, f] = ok.astype(np.float32)
    return gidx, gmsk


def _build_plane_mask():
    pmask = np.zeros((4, 4, 1, LANES), np.float32)
    n = np.arange(LANES)
    p = (n % 64) // 8
    q = n % 8
    for th in range(4):
        for tw in range(4):
            i = 2 * p + th - 1
            j = 2 * q + tw - 1
            pmask[th, tw, 0] = ((i >= 0) & (i < 14) & (j >= 0) & (j < 14)).astype(np.float32)
    return pmask


def prepare_params(params):
    (W1, b1, W2, b2, Wf1, bf1, Wf2, bf2, Wf3, bf3,
     gamma, beta, rmean, rvar, Wlast) = [np.asarray(t, np.float32) for t in params]
    prep = {}
    prep["w1m"] = W1.reshape(C1, F1)
    prep["b1c"] = b1.reshape(C1, 1)
    prep["w2t"] = np.ascontiguousarray(np.transpose(W2, (2, 3, 0, 1))).reshape(K * K, C2, C1)
    prep["b2c"] = b2.reshape(C2, 1)

    # fc1 with the PyTorch channel-major flatten folded in; zero rows kill garbage lanes,
    # zero off-diagonal 64-lane blocks keep the two batch elements separate.
    wb1 = np.zeros((C2, LANES, LANES), np.float32)
    for co in range(C2):
        for bb in range(B):
            for p in range(7):
                for q in range(7):
                    wb1[co, bb * 64 + p * 8 + q, bb * 64:bb * 64 + DW] = \
                        Wf1[:, co * 49 + p * 7 + q]
    prep["wb1"] = wb1

    def pack_vec(v, width):
        out = np.zeros((1, LANES), np.float32)
        for bb in range(B):
            out[0, bb * 64:bb * 64 + width] = v
        return out

    wb2 = np.zeros((LANES, LANES), np.float32)
    wb3 = np.zeros((LANES, LANES), np.float32)
    wlastp = np.zeros((LANES, LANES), np.float32)
    for bb in range(B):
        s = bb * 64
        wb2[s:s + DW, s:s + DW] = Wf2.T
        wb3[s:s + DW, s:s + NCLS] = Wf3.T
        wlastp[s:s + NCLS, bb] = Wlast[0]
    scale = gamma / np.sqrt(rvar + BN_EPS)
    shift = beta - rmean * scale

    prep["bf1p"] = pack_vec(bf1, DW)
    prep["wb2"] = wb2
    prep["bf2p"] = pack_vec(bf2, DW)
    prep["wb3"] = wb3
    prep["bf3p"] = pack_vec(bf3, NCLS)
    prep["bns"] = pack_vec(scale, NCLS)
    prep["bnb"] = pack_vec(shift, NCLS)
    prep["wlastp"] = wlastp

    gidx, gmsk = _build_patch_gather()
    prep["gidx"] = gidx
    prep["gmsk"] = gmsk
    prep["pmask"] = _build_plane_mask()
    return {k: jnp.asarray(v) for k, v in prep.items()}


# ------------------------------------------------------------------
# Pure-JAX reference (eval-mode VGG forward)
# ------------------------------------------------------------------
def vgg_reference(x, params):
    (W1, b1, W2, b2, Wf1, bf1, Wf2, bf2, Wf3, bf3,
     gamma, beta, rmean, rvar, Wlast) = params
    hi = lax.Precision.HIGHEST

    def conv(z, w, bb):
        y = lax.conv_general_dilated(z, w, (1, 1), ((1, 1), (1, 1)),
                                     dimension_numbers=("NCHW", "OIHW", "NCHW"),
                                     precision=hi)
        return y + bb[None, :, None, None]

    def pool(z):
        bs, c, h, w = z.shape
        return z.reshape(bs, c, h // 2, 2, w // 2, 2).max(axis=(3, 5))

    y = pool(jnp.maximum(conv(x, W1, b1), 0.0))
    y = pool(jnp.maximum(conv(y, W2, b2), 0.0))          # (B, C2, 7, 7)
    # AdaptiveAvgPool2d(7) on a 7x7 map is the identity.
    h = y.reshape(y.shape[0], -1)
    h = jnp.maximum(jnp.dot(h, Wf1.T, precision=hi) + bf1, 0.0)   # Dropout(eval)=id
    h = jnp.maximum(jnp.dot(h, Wf2.T, precision=hi) + bf2, 0.0)
    h = jnp.dot(h, Wf3.T, precision=hi) + bf3
    h = jnp.maximum(h, 0.0)
    h = (h - rmean) / jnp.sqrt(rvar + BN_EPS) * gamma + beta      # BN1d eval
    z = jnp.dot(h, Wlast.T, precision=hi)                          # lastfc (no bias)
    return lax.erf(z / jnp.sqrt(2.0))


# ------------------------------------------------------------------
if __name__ == "__main__":
    key = jax.random.PRNGKey(0)
    ks = jax.random.split(key, 20)

    def nrm(k, shape, s):
        return s * jax.random.normal(k, shape, jnp.float32)

    x = jax.random.normal(ks[0], (B, C_IN, HW, HW), jnp.float32)
    params = (
        nrm(ks[1], (C1, C_IN, K, K), 0.25), nrm(ks[2], (C1,), 0.1),      # conv1
        nrm(ks[3], (C2, C1, K, K), 0.12),   nrm(ks[4], (C2,), 0.1),      # conv2
        nrm(ks[5], (DW, C2 * 49), 0.03),    nrm(ks[6], (DW,), 0.05),     # fc1
        nrm(ks[7], (DW, DW), 0.1),          nrm(ks[8], (DW,), 0.05),     # fc2
        nrm(ks[9], (NCLS, DW), 0.1),        nrm(ks[10], (NCLS,), 0.05),  # fc3
        1.0 + nrm(ks[11], (NCLS,), 0.1),    nrm(ks[12], (NCLS,), 0.1),   # BN gamma/beta
        nrm(ks[13], (NCLS,), 0.1),
        jax.random.uniform(ks[14], (NCLS,), jnp.float32, 0.5, 1.5),      # BN mean/var
        nrm(ks[15], (1, NCLS), 0.3),                                     # lastfc
    )

    prep = prepare_params(params)
    out = jax.block_until_ready(vgg_forward(x, prep))
    ref = jax.block_until_ready(vgg_reference(x, params))

    assert out.shape == (B, 1), out.shape
    assert jnp.allclose(out, ref, rtol=2e-3, atol=2e-3), (out, ref)
    print("KERNEL_OK")
</pallas_src>

<mosaic_0001>
module attributes {stable_mosaic.version = 11 : i64} {
  func.func @vgg_fused_kernel(%arg0: i32, %arg1: memref<4x4x4x27x128xf32, #tpu.memory_space<vmem>>, %arg2: memref<8x27xf32, #tpu.memory_space<vmem>>, %arg3: memref<8x1xf32, #tpu.memory_space<vmem>>, %arg4: memref<4x4x1x128xf32, #tpu.memory_space<vmem>>, %arg5: memref<9x16x8xf32, #tpu.memory_space<vmem>>, %arg6: memref<16x1xf32, #tpu.memory_space<vmem>>, %arg7: memref<16x128x128xf32, #tpu.memory_space<vmem>>, %arg8: memref<1x128xf32, #tpu.memory_space<vmem>>, %arg9: memref<128x128xf32, #tpu.memory_space<vmem>>, %arg10: memref<1x128xf32, #tpu.memory_space<vmem>>, %arg11: memref<128x128xf32, #tpu.memory_space<vmem>>, %arg12: memref<1x128xf32, #tpu.memory_space<vmem>>, %arg13: memref<1x128xf32, #tpu.memory_space<vmem>>, %arg14: memref<1x128xf32, #tpu.memory_space<vmem>>, %arg15: memref<128x128xf32, #tpu.memory_space<vmem>>, %arg16: memref<1x128xf32, #tpu.memory_space<vmem>>, %arg17: memref<16x128xf32, #tpu.memory_space<vmem>>) attributes {dimension_semantics = [#tpu.dimension_semantics<arbitrary>], iteration_bounds = array<i64: 1>, scalar_prefetch = 0 : i64, scratch_operands = 1 : i64, tpu.core_type = #tpu.core_type<tc>, window_params = [{pipeline_mode = #tpu.pipeline_mode<synchronous>, transform_indices = @transform_0, window_bounds = array<i64: 4, 4, 4, 27, 128>}, {pipeline_mode = #tpu.pipeline_mode<synchronous>, transform_indices = @transform_1, window_bounds = array<i64: 8, 27>}, {pipeline_mode = #tpu.pipeline_mode<synchronous>, transform_indices = @transform_2, window_bounds = array<i64: 8, 1>}, {pipeline_mode = #tpu.pipeline_mode<synchronous>, transform_indices = @transform_3, window_bounds = array<i64: 4, 4, 1, 128>}, {pipeline_mode = #tpu.pipeline_mode<synchronous>, transform_indices = @transform_4, window_bounds = array<i64: 9, 16, 8>}, {pipeline_mode = #tpu.pipeline_mode<synchronous>, transform_indices = @transform_5, window_bounds = array<i64: 16, 1>}, {pipeline_mode = #tpu.pipeline_mode<synchronous>, transform_indices = @transform_6, window_bounds = array<i64: 16, 128, 128>}, {pipeline_mode = #tpu.pipeline_mode<synchronous>, transform_indices = @transform_7, window_bounds = array<i64: 1, 128>}, {pipeline_mode = #tpu.pipeline_mode<synchronous>, transform_indices = @transform_8, window_bounds = array<i64: 128, 128>}, {pipeline_mode = #tpu.pipeline_mode<synchronous>, transform_indices = @transform_9, window_bounds = array<i64: 1, 128>}, {pipeline_mode = #tpu.pipeline_mode<synchronous>, transform_indices = @transform_10, window_bounds = array<i64: 128, 128>}, {pipeline_mode = #tpu.pipeline_mode<synchronous>, transform_indices = @transform_11, window_bounds = array<i64: 1, 128>}, {pipeline_mode = #tpu.pipeline_mode<synchronous>, transform_indices = @transform_12, window_bounds = array<i64: 1, 128>}, {pipeline_mode = #tpu.pipeline_mode<synchronous>, transform_indices = @transform_13, window_bounds = array<i64: 1, 128>}, {pipeline_mode = #tpu.pipeline_mode<synchronous>, transform_indices = @transform_14, window_bounds = array<i64: 128, 128>}, {pipeline_mode = #tpu.pipeline_mode<synchronous>, transform_indices = @transform_15, window_bounds = array<i64: 1, 128>}]} {
    %c0 = arith.constant 0 : index
    %c0_0 = arith.constant 0 : index
    %0 = vector.load %arg2[%c0, %c0_0] : memref<8x27xf32, #tpu.memory_space<vmem>>, vector<8x27xf32>
    %c0_1 = arith.constant 0 : index
    %c0_2 = arith.constant 0 : index
    %1 = vector.load %arg3[%c0_1, %c0_2] : memref<8x1xf32, #tpu.memory_space<vmem>>, vector<8x1xf32>
    %c0_3 = arith.constant 0 : index
    %c0_4 = arith.constant 0 : index
    %c0_5 = arith.constant 0 : index
    %c0_6 = arith.constant 0 : index
    %c0_7 = arith.constant 0 : index
    %2 = vector.load %arg1[%c0_3, %c0_4, %c0_5, %c0_6, %c0_7] : memref<4x4x4x27x128xf32, #tpu.memory_space<vmem>>, vector<1x1x1x27x128xf32>
    %3 = vector.shape_cast %2 : vector<1x1x1x27x128xf32> to vector<27x128xf32>
    %cst = arith.constant dense<0.000000e+00> : vector<8x128xf32>
    %4 = tpu.matmul %0, %3, %cst {dimension_numbers = #tpu.dot_dimension_numbers<[1], [0], [0], [1], [0, 0, 1, 1], [], []>} : vector<8x27xf32>, vector<27x128xf32>, vector<8x128xf32> -> vector<8x128xf32>
    %c0_8 = arith.constant 0 : index
    %c0_9 = arith.constant 0 : index
    %c1 = arith.constant 1 : index
    %c0_10 = arith.constant 0 : index
    %c0_11 = arith.constant 0 : index
    %5 = vector.load %arg1[%c0_8, %c0_9, %c1, %c0_10, %c0_11] : memref<4x4x4x27x128xf32, #tpu.memory_space<vmem>>, vector<1x1x1x27x128xf32>
    %6 = vector.shape_cast %5 : vector<1x1x1x27x128xf32> to vector<27x128xf32>
    %cst_12 = arith.constant dense<0.000000e+00> : vector<8x128xf32>
    %7 = tpu.matmul %0, %6, %cst_12 {dimension_numbers = #tpu.dot_dimension_numbers<[1], [0], [0], [1], [0, 0, 1, 1], [], []>} : vector<8x27xf32>, vector<27x128xf32>, vector<8x128xf32> -> vector<8x128xf32>
    %8 = arith.maximumf %4, %7 : vector<8x128xf32>
    %c0_13 = arith.constant 0 : index
    %c0_14 = arith.constant 0 : index
    %c2 = arith.constant 2 : index
    %c0_15 = arith.constant 0 : index
    %c0_16 = arith.constant 0 : index
    %9 = vector.load %arg1[%c0_13, %c0_14, %c2, %c0_15, %c0_16] : memref<4x4x4x27x128xf32, #tpu.memory_space<vmem>>, vector<1x1x1x27x128xf32>
    %10 = vector.shape_cast %9 : vector<1x1x1x27x128xf32> to vector<27x128xf32>
    %cst_17 = arith.constant dense<0.000000e+00> : vector<8x128xf32>
    %11 = tpu.matmul %0, %10, %cst_17 {dimension_numbers = #tpu.dot_dimension_numbers<[1], [0], [0], [1], [0, 0, 1, 1], [], []>} : vector<8x27xf32>, vector<27x128xf32>, vector<8x128xf32> -> vector<8x128xf32>
    %12 = arith.maximumf %8, %11 : vector<8x128xf32>
    %c0_18 = arith.constant 0 : index
    %c0_19 = arith.constant 0 : index
    %c3 = arith.constant 3 : index
    %c0_20 = arith.constant 0 : index
    %c0_21 = arith.constant 0 : index
    %13 = vector.load %arg1[%c0_18, %c0_19, %c3, %c0_20, %c0_21] : memref<4x4x4x27x128xf32, #tpu.memory_space<vmem>>, vector<1x1x1x27x128xf32>
    %14 = vector.shape_cast %13 : vector<1x1x1x27x128xf32> to vector<27x128xf32>
    %cst_22 = arith.constant dense<0.000000e+00> : vector<8x128xf32>
    %15 = tpu.matmul %0, %14, %cst_22 {dimension_numbers = #tpu.dot_dimension_numbers<[1], [0], [0], [1], [0, 0, 1, 1], [], []>} : vector<8x27xf32>, vector<27x128xf32>, vector<8x128xf32> -> vector<8x128xf32>
    %16 = arith.maximumf %12, %15 : vector<8x128xf32>
    %17 = vector.broadcast %1 : vector<8x1xf32> to vector<8x128xf32>
    %18 = arith.addf %16, %17 : vector<8x128xf32>
    %cst_23 = arith.constant 0.000000e+00 : f32
    %19 = vector.broadcast %cst_23 : f32 to vector<8x128xf32>
    %20 = arith.maximumf %18, %19 : vector<8x128xf32>
    %c0_24 = arith.constant 0 : index
    %c0_25 = arith.constant 0 : index
    %c0_26 = arith.constant 0 : index
    %c0_27 = arith.constant 0 : index
    %21 = vector.load %arg4[%c0_24, %c0_25, %c0_26, %c0_27] : memref<4x4x1x128xf32, #tpu.memory_space<vmem>>, vector<1x1x1x128xf32>
    %22 = vector.shape_cast %21 : vector<1x1x1x128xf32> to vector<1x128xf32>
    %23 = vector.broadcast %22 : vector<1x128xf32> to vector<8x128xf32>
    %24 = arith.mulf %20, %23 : vector<8x128xf32>
    %c0_28 = arith.constant 0 : index
    %c1_29 = arith.constant 1 : index
    %c0_30 = arith.constant 0 : index
    %c0_31 = arith.constant 0 : index
    %c0_32 = arith.constant 0 : index
    %25 = vector.load %arg1[%c0_28, %c1_29, %c0_30, %c0_31, %c0_32] : memref<4x4x4x27x128xf32, #tpu.memory_space<vmem>>, vector<1x1x1x27x128xf32>
    %26 = vector.shape_cast %25 : vector<1x1x1x27x128xf32> to vector<27x128xf32>
    %cst_33 = arith.constant dense<0.000000e+00> : vector<8x128xf32>
    %27 = tpu.matmul %0, %26, %cst_33 {dimension_numbers = #tpu.dot_dimension_numbers<[1], [0], [0], [1], [0, 0, 1, 1], [], []>} : vector<8x27xf32>, vector<27x128xf32>, vector<8x128xf32> -> vector<8x128xf32>
    %c0_34 = arith.constant 0 : index
    %c1_35 = arith.constant 1 : index
    %c1_36 = arith.constant 1 : index
    %c0_37 = arith.constant 0 : index
    %c0_38 = arith.constant 0 : index
    %28 = vector.load %arg1[%c0_34, %c1_35, %c1_36, %c0_37, %c0_38] : memref<4x4x4x27x128xf32, #tpu.memory_space<vmem>>, vector<1x1x1x27x128xf32>
    %29 = vector.shape_cast %28 : vector<1x1x1x27x128xf32> to vector<27x128xf32>
    %cst_39 = arith.constant dense<0.000000e+00> : vector<8x128xf32>
    %30 = tpu.matmul %0, %29, %cst_39 {dimension_numbers = #tpu.dot_dimension_numbers<[1], [0], [0], [1], [0, 0, 1, 1], [], []>} : vector<8x27xf32>, vector<27x128xf32>, vector<8x128xf32> -> vector<8x128xf32>
    %31 = arith.maximumf %27, %30 : vector<8x128xf32>
    %c0_40 = arith.constant 0 : index
    %c1_41 = arith.constant 1 : index
    %c2_42 = arith.constant 2 : index
    %c0_43 = arith.constant 0 : index
    %c0_44 = arith.constant 0 : index
    %32 = vector.load %arg1[%c0_40, %c1_41, %c2_42, %c0_43, %c0_44] : memref<4x4x4x27x128xf32, #tpu.memory_space<vmem>>, vector<1x1x1x27x128xf32>
    %33 = vector.shape_cast %32 : vector<1x1x1x27x128xf32> to vector<27x128xf32>
    %cst_45 = arith.constant dense<0.000000e+00> : vector<8x128xf32>
    %34 = tpu.matmul %0, %33, %cst_45 {dimension_numbers = #tpu.dot_dimension_numbers<[1], [0], [0], [1], [0, 0, 1, 1], [], []>} : vector<8x27xf32>, vector<27x128xf32>, vector<8x128xf32> -> vector<8x128xf32>
    %35 = arith.maximumf %31, %34 : vector<8x128xf32>
    %c0_46 = arith.constant 0 : index
    %c1_47 = arith.constant 1 : index
    %c3_48 = arith.constant 3 : index
    %c0_49 = arith.constant 0 : index
    %c0_50 = arith.constant 0 : index
    %36 = vector.load %arg1[%c0_46, %c1_47, %c3_48, %c0_49, %c0_50] : memref<4x4x4x27x128xf32, #tpu.memory_space<vmem>>, vector<1x1x1x27x128xf32>
    %37 = vector.shape_cast %36 : vector<1x1x1x27x128xf32> to vector<27x128xf32>
    %cst_51 = arith.constant dense<0.000000e+00> : vector<8x128xf32>
    %38 = tpu.matmul %0, %37, %cst_51 {dimension_numbers = #tpu.dot_dimension_numbers<[1], [0], [0], [1], [0, 0, 1, 1], [], []>} : vector<8x27xf32>, vector<27x128xf32>, vector<8x128xf32> -> vector<8x128xf32>
    %39 = arith.maximumf %35, %38 : vector<8x128xf32>
    %40 = vector.broadcast %1 : vector<8x1xf32> to vector<8x128xf32>
    %41 = arith.addf %39, %40 : vector<8x128xf32>
    %cst_52 = arith.constant 0.000000e+00 : f32
    %42 = vector.broadcast %cst_52 : f32 to vector<8x128xf32>
    %43 = arith.maximumf %41, %42 : vector<8x128xf32>
    %c0_53 = arith.constant 0 : index
    %c1_54 = arith.constant 1 : index
    %c0_55 = arith.constant 0 : index
    %c0_56 = arith.constant 0 : index
    %44 = vector.load %arg4[%c0_53, %c1_54, %c0_55, %c0_56] : memref<4x4x1x128xf32, #tpu.memory_space<vmem>>, vector<1x1x1x128xf32>
    %45 = vector.shape_cast %44 : vector<1x1x1x128xf32> to vector<1x128xf32>
    %46 = vector.broadcast %45 : vector<1x128xf32> to vector<8x128xf32>
    %47 = arith.mulf %43, %46 : vector<8x128xf32>
    %c0_57 = arith.constant 0 : index
    %c2_58 = arith.constant 2 : index
    %c0_59 = arith.constant 0 : index
    %c0_60 = arith.constant 0 : index
    %c0_61 = arith.constant 0 : index
    %48 = vector.load %arg1[%c0_57, %c2_58, %c0_59, %c0_60, %c0_61] : memref<4x4x4x27x128xf32, #tpu.memory_space<vmem>>, vector<1x1x1x27x128xf32>
    %49 = vector.shape_cast %48 : vector<1x1x1x27x128xf32> to vector<27x128xf32>
    %cst_62 = arith.constant dense<0.000000e+00> : vector<8x128xf32>
    %50 = tpu.matmul %0, %49, %cst_62 {dimension_numbers = #tpu.dot_dimension_numbers<[1], [0], [0], [1], [0, 0, 1, 1], [], []>} : vector<8x27xf32>, vector<27x128xf32>, vector<8x128xf32> -> vector<8x128xf32>
    %c0_63 = arith.constant 0 : index
    %c2_64 = arith.constant 2 : index
    %c1_65 = arith.constant 1 : index
    %c0_66 = arith.constant 0 : index
    %c0_67 = arith.constant 0 : index
    %51 = vector.load %arg1[%c0_63, %c2_64, %c1_65, %c0_66, %c0_67] : memref<4x4x4x27x128xf32, #tpu.memory_space<vmem>>, vector<1x1x1x27x128xf32>
    %52 = vector.shape_cast %51 : vector<1x1x1x27x128xf32> to vector<27x128xf32>
    %cst_68 = arith.constant dense<0.000000e+00> : vector<8x128xf32>
    %53 = tpu.matmul %0, %52, %cst_68 {dimension_numbers = #tpu.dot_dimension_numbers<[1], [0], [0], [1], [0, 0, 1, 1], [], []>} : vector<8x27xf32>, vector<27x128xf32>, vector<8x128xf32> -> vector<8x128xf32>
    %54 = arith.maximumf %50, %53 : vector<8x128xf32>
    %c0_69 = arith.constant 0 : index
    %c2_70 = arith.constant 2 : index
    %c2_71 = arith.constant 2 : index
    %c0_72 = arith.constant 0 : index
    %c0_73 = arith.constant 0 : index
    %55 = vector.load %arg1[%c0_69, %c2_70, %c2_71, %c0_72, %c0_73] : memref<4x4x4x27x128xf32, #tpu.memory_space<vmem>>, vector<1x1x1x27x128xf32>
    %56 = vector.shape_cast %55 : vector<1x1x1x27x128xf32> to vector<27x128xf32>
    %cst_74 = arith.constant dense<0.000000e+00> : vector<8x128xf32>
    %57 = tpu.matmul %0, %56, %cst_74 {dimension_numbers = #tpu.dot_dimension_numbers<[1], [0], [0], [1], [0, 0, 1, 1], [], []>} : vector<8x27xf32>, vector<27x128xf32>, vector<8x128xf32> -> vector<8x128xf32>
    %58 = arith.maximumf %54, %57 : vector<8x128xf32>
    %c0_75 = arith.constant 0 : index
    %c2_76 = arith.constant 2 : index
    %c3_77 = arith.constant 3 : index
    %c0_78 = arith.constant 0 : index
    %c0_79 = arith.constant 0 : index
    %59 = vector.load %arg1[%c0_75, %c2_76, %c3_77, %c0_78, %c0_79] : memref<4x4x4x27x128xf32, #tpu.memory_space<vmem>>, vector<1x1x1x27x128xf32>
    %60 = vector.shape_cast %59 : vector<1x1x1x27x128xf32> to vector<27x128xf32>
    %cst_80 = arith.constant dense<0.000000e+00> : vector<8x128xf32>
    %61 = tpu.matmul %0, %60, %cst_80 {dimension_numbers = #tpu.dot_dimension_numbers<[1], [0], [0], [1], [0, 0, 1, 1], [], []>} : vector<8x27xf32>, vector<27x128xf32>, vector<8x128xf32> -> vector<8x128xf32>
    %62 = arith.maximumf %58, %61 : vector<8x128xf32>
    %63 = vector.broadcast %1 : vector<8x1xf32> to vector<8x128xf32>
    %64 = arith.addf %62, %63 : vector<8x128xf32>
    %cst_81 = arith.constant 0.000000e+00 : f32
    %65 = vector.broadcast %cst_81 : f32 to vector<8x128xf32>
    %66 = arith.maximumf %64, %65 : vector<8x128xf32>
    %c0_82 = arith.constant 0 : index
    %c2_83 = arith.constant 2 : index
    %c0_84 = arith.constant 0 : index
    %c0_85 = arith.constant 0 : index
    %67 = vector.load %arg4[%c0_82, %c2_83, %c0_84, %c0_85] : memref<4x4x1x128xf32, #tpu.memory_space<vmem>>, vector<1x1x1x128xf32>
    %68 = vector.shape_cast %67 : vector<1x1x1x128xf32> to vector<1x128xf32>
    %69 = vector.broadcast %68 : vector<1x128xf32> to vector<8x128xf32>
    %70 = arith.mulf %66, %69 : vector<8x128xf32>
    %c0_86 = arith.constant 0 : index
    %c3_87 = arith.constant 3 : index
    %c0_88 = arith.constant 0 : index
    %c0_89 = arith.constant 0 : index
    %c0_90 = arith.constant 0 : index
    %71 = vector.load %arg1[%c0_86, %c3_87, %c0_88, %c0_89, %c0_90] : memref<4x4x4x27x128xf32, #tpu.memory_space<vmem>>, vector<1x1x1x27x128xf32>
    %72 = vector.shape_cast %71 : vector<1x1x1x27x128xf32> to vector<27x128xf32>
    %cst_91 = arith.constant dense<0.000000e+00> : vector<8x128xf32>
    %73 = tpu.matmul %0, %72, %cst_91 {dimension_numbers = #tpu.dot_dimension_numbers<[1], [0], [0], [1], [0, 0, 1, 1], [], []>} : vector<8x27xf32>, vector<27x128xf32>, vector<8x128xf32> -> vector<8x128xf32>
    %c0_92 = arith.constant 0 : index
    %c3_93 = arith.constant 3 : index
    %c1_94 = arith.constant 1 : index
    %c0_95 = arith.constant 0 : index
    %c0_96 = arith.constant 0 : index
    %74 = vector.load %arg1[%c0_92, %c3_93, %c1_94, %c0_95, %c0_96] : memref<4x4x4x27x128xf32, #tpu.memory_space<vmem>>, vector<1x1x1x27x128xf32>
    %75 = vector.shape_cast %74 : vector<1x1x1x27x128xf32> to vector<27x128xf32>
    %cst_97 = arith.constant dense<0.000000e+00> : vector<8x128xf32>
    %76 = tpu.matmul %0, %75, %cst_97 {dimension_numbers = #tpu.dot_dimension_numbers<[1], [0], [0], [1], [0, 0, 1, 1], [], []>} : vector<8x27xf32>, vector<27x128xf32>, vector<8x128xf32> -> vector<8x128xf32>
    %77 = arith.maximumf %73, %76 : vector<8x128xf32>
    %c0_98 = arith.constant 0 : index
    %c3_99 = arith.constant 3 : index
    %c2_100 = arith.constant 2 : index
    %c0_101 = arith.constant 0 : index
    %c0_102 = arith.constant 0 : index
    %78 = vector.load %arg1[%c0_98, %c3_99, %c2_100, %c0_101, %c0_102] : memref<4x4x4x27x128xf32, #tpu.memory_space<vmem>>, vector<1x1x1x27x128xf32>
    %79 = vector.shape_cast %78 : vector<1x1x1x27x128xf32> to vector<27x128xf32>
    %cst_103 = arith.constant dense<0.000000e+00> : vector<8x128xf32>
    %80 = tpu.matmul %0, %79, %cst_103 {dimension_numbers = #tpu.dot_dimension_numbers<[1], [0], [0], [1], [0, 0, 1, 1], [], []>} : vector<8x27xf32>, vector<27x128xf32>, vector<8x128xf32> -> vector<8x128xf32>
    %81 = arith.maximumf %77, %80 : vector<8x128xf32>
    %c0_104 = arith.constant 0 : index
    %c3_105 = arith.constant 3 : index
    %c3_106 = arith.constant 3 : index
    %c0_107 = arith.constant 0 : index
    %c0_108 = arith.constant 0 : index
    %82 = vector.load %arg1[%c0_104, %c3_105, %c3_106, %c0_107, %c0_108] : memref<4x4x4x27x128xf32, #tpu.memory_space<vmem>>, vector<1x1x1x27x128xf32>
    %83 = vector.shape_cast %82 : vector<1x1x1x27x128xf32> to vector<27x128xf32>
    %cst_109 = arith.constant dense<0.000000e+00> : vector<8x128xf32>
    %84 = tpu.matmul %0, %83, %cst_109 {dimension_numbers = #tpu.dot_dimension_numbers<[1], [0], [0], [1], [0, 0, 1, 1], [], []>} : vector<8x27xf32>, vector<27x128xf32>, vector<8x128xf32> -> vector<8x128xf32>
    %85 = arith.maximumf %81, %84 : vector<8x128xf32>
    %86 = vector.broadcast %1 : vector<8x1xf32> to vector<8x128xf32>
    %87 = arith.addf %85, %86 : vector<8x128xf32>
    %cst_110 = arith.constant 0.000000e+00 : f32
    %88 = vector.broadcast %cst_110 : f32 to vector<8x128xf32>
    %89 = arith.maximumf %87, %88 : vector<8x128xf32>
    %c0_111 = arith.constant 0 : index
    %c3_112 = arith.constant 3 : index
    %c0_113 = arith.constant 0 : index
    %c0_114 = arith.constant 0 : index
    %90 = vector.load %arg4[%c0_111, %c3_112, %c0_113, %c0_114] : memref<4x4x1x128xf32, #tpu.memory_space<vmem>>, vector<1x1x1x128xf32>
    %91 = vector.shape_cast %90 : vector<1x1x1x128xf32> to vector<1x128xf32>
    %92 = vector.broadcast %91 : vector<1x128xf32> to vector<8x128xf32>
    %93 = arith.mulf %89, %92 : vector<8x128xf32>
    %c1_115 = arith.constant 1 : index
    %c0_116 = arith.constant 0 : index
    %c0_117 = arith.constant 0 : index
    %c0_118 = arith.constant 0 : index
    %c0_119 = arith.constant 0 : index
    %94 = vector.load %arg1[%c1_115, %c0_116, %c0_117, %c0_118, %c0_119] : memref<4x4x4x27x128xf32, #tpu.memory_space<vmem>>, vector<1x1x1x27x128xf32>
    %95 = vector.shape_cast %94 : vector<1x1x1x27x128xf32> to vector<27x128xf32>
    %cst_120 = arith.constant dense<0.000000e+00> : vector<8x128xf32>
    %96 = tpu.matmul %0, %95, %cst_120 {dimension_numbers = #tpu.dot_dimension_numbers<[1], [0], [0], [1], [0, 0, 1, 1], [], []>} : vector<8x27xf32>, vector<27x128xf32>, vector<8x128xf32> -> vector<8x128xf32>
    %c1_121 = arith.constant 1 : index
    %c0_122 = arith.constant 0 : index
    %c1_123 = arith.constant 1 : index
    %c0_124 = arith.constant 0 : index
    %c0_125 = arith.constant 0 : index
    %97 = vector.load %arg1[%c1_121, %c0_122, %c1_123, %c0_124, %c0_125] : memref<4x4x4x27x128xf32, #tpu.memory_space<vmem>>, vector<1x1x1x27x128xf32>
    %98 = vector.shape_cast %97 : vector<1x1x1x27x128xf32> to vector<27x128xf32>
    %cst_126 = arith.constant dense<0.000000e+00> : vector<8x128xf32>
    %99 = tpu.matmul %0, %98, %cst_126 {dimension_numbers = #tpu.dot_dimension_numbers<[1], [0], [0], [1], [0, 0, 1, 1], [], []>} : vector<8x27xf32>, vector<27x128xf32>, vector<8x128xf32> -> vector<8x128xf32>
    %100 = arith.maximumf %96, %99 : vector<8x128xf32>
    %c1_127 = arith.constant 1 : index
    %c0_128 = arith.constant 0 : index
    %c2_129 = arith.constant 2 : index
    %c0_130 = arith.constant 0 : index
    %c0_131 = arith.constant 0 : index
    %101 = vector.load %arg1[%c1_127, %c0_128, %c2_129, %c0_130, %c0_131] : memref<4x4x4x27x128xf32, #tpu.memory_space<vmem>>, vector<1x1x1x27x128xf32>
    %102 = vector.shape_cast %101 : vector<1x1x1x27x128xf32> to vector<27x128xf32>
    %cst_132 = arith.constant dense<0.000000e+00> : vector<8x128xf32>
    %103 = tpu.matmul %0, %102, %cst_132 {dimension_numbers = #tpu.dot_dimension_numbers<[1], [0], [0], [1], [0, 0, 1, 1], [], []>} : vector<8x27xf32>, vector<27x128xf32>, vector<8x128xf32> -> vector<8x128xf32>
    %104 = arith.maximumf %100, %103 : vector<8x128xf32>
    %c1_133 = arith.constant 1 : index
    %c0_134 = arith.constant 0 : index
    %c3_135 = arith.constant 3 : index
    %c0_136 = arith.constant 0 : index
    %c0_137 = arith.constant 0 : index
    %105 = vector.load %arg1[%c1_133, %c0_134, %c3_135, %c0_136, %c0_137] : memref<4x4x4x27x128xf32, #tpu.memory_space<vmem>>, vector<1x1x1x27x128xf32>
    %106 = vector.shape_cast %105 : vector<1x1x1x27x128xf32> to vector<27x128xf32>
    %cst_138 = arith.constant dense<0.000000e+00> : vector<8x128xf32>
    %107 = tpu.matmul %0, %106, %cst_138 {dimension_numbers = #tpu.dot_dimension_numbers<[1], [0], [0], [1], [0, 0, 1, 1], [], []>} : vector<8x27xf32>, vector<27x128xf32>, vector<8x128xf32> -> vector<8x128xf32>
    %108 = arith.maximumf %104, %107 : vector<8x128xf32>
    %109 = vector.broadcast %1 : vector<8x1xf32> to vector<8x128xf32>
    %110 = arith.addf %108, %109 : vector<8x128xf32>
    %cst_139 = arith.constant 0.000000e+00 : f32
    %111 = vector.broadcast %cst_139 : f32 to vector<8x128xf32>
    %112 = arith.maximumf %110, %111 : vector<8x128xf32>
    %c1_140 = arith.constant 1 : index
    %c0_141 = arith.constant 0 : index
    %c0_142 = arith.constant 0 : index
    %c0_143 = arith.constant 0 : index
    %113 = vector.load %arg4[%c1_140, %c0_141, %c0_142, %c0_143] : memref<4x4x1x128xf32, #tpu.memory_space<vmem>>, vector<1x1x1x128xf32>
    %114 = vector.shape_cast %113 : vector<1x1x1x128xf32> to vector<1x128xf32>
    %115 = vector.broadcast %114 : vector<1x128xf32> to vector<8x128xf32>
    %116 = arith.mulf %112, %115 : vector<8x128xf32>
    %c1_144 = arith.constant 1 : index
    %c1_145 = arith.constant 1 : index
    %c0_146 = arith.constant 0 : index
    %c0_147 = arith.constant 0 : index
    %c0_148 = arith.constant 0 : index
    %117 = vector.load %arg1[%c1_144, %c1_145, %c0_146, %c0_147, %c0_148] : memref<4x4x4x27x128xf32, #tpu.memory_space<vmem>>, vector<1x1x1x27x128xf32>
    %118 = vector.shape_cast %117 : vector<1x1x1x27x128xf32> to vector<27x128xf32>
    %cst_149 = arith.constant dense<0.000000e+00> : vector<8x128xf32>
    %119 = tpu.matmul %0, %118, %cst_149 {dimension_numbers = #tpu.dot_dimension_numbers<[1], [0], [0], [1], [0, 0, 1, 1], [], []>} : vector<8x27xf32>, vector<27x128xf32>, vector<8x128xf32> -> vector<8x128xf32>
    %c1_150 = arith.constant 1 : index
    %c1_151 = arith.constant 1 : index
    %c1_152 = arith.constant 1 : index
    %c0_153 = arith.constant 0 : index
    %c0_154 = arith.constant 0 : index
    %120 = vector.load %arg1[%c1_150, %c1_151, %c1_152, %c0_153, %c0_154] : memref<4x4x4x27x128xf32, #tpu.memory_space<vmem>>, vector<1x1x1x27x128xf32>
    %121 = vector.shape_cast %120 : vector<1x1x1x27x128xf32> to vector<27x128xf32>
    %cst_155 = arith.constant dense<0.000000e+00> : vector<8x128xf32>
    %122 = tpu.matmul %0, %121, %cst_155 {dimension_numbers = #tpu.dot_dimension_numbers<[1], [0], [0], [1], [0, 0, 1, 1], [], []>} : vector<8x27xf32>, vector<27x128xf32>, vector<8x128xf32> -> vector<8x128xf32>
    %123 = arith.maximumf %119, %122 : vector<8x128xf32>
    %c1_156 = arith.constant 1 : index
    %c1_157 = arith.constant 1 : index
    %c2_158 = arith.constant 2 : index
    %c0_159 = arith.constant 0 : index
    %c0_160 = arith.constant 0 : index
    %124 = vector.load %arg1[%c1_156, %c1_157, %c2_158, %c0_159, %c0_160] : memref<4x4x4x27x128xf32, #tpu.memory_space<vmem>>, vector<1x1x1x27x128xf32>
    %125 = vector.shape_cast %124 : vector<1x1x1x27x128xf32> to vector<27x128xf32>
    %cst_161 = arith.constant dense<0.000000e+00> : vector<8x128xf32>
    %126 = tpu.matmul %0, %125, %cst_161 {dimension_numbers = #tpu.dot_dimension_numbers<[1], [0], [0], [1], [0, 0, 1, 1], [], []>} : vector<8x27xf32>, vector<27x128xf32>, vector<8x128xf32> -> vector<8x128xf32>
    %127 = arith.maximumf %123, %126 : vector<8x128xf32>
    %c1_162 = arith.constant 1 : index
    %c1_163 = arith.constant 1 : index
    %c3_164 = arith.constant 3 : index
    %c0_165 = arith.constant 0 : index
    %c0_166 = arith.constant 0 : index
    %128 = vector.load %arg1[%c1_162, %c1_163, %c3_164, %c0_165, %c0_166] : memref<4x4x4x27x128xf32, #tpu.memory_space<vmem>>, vector<1x1x1x27x128xf32>
    %129 = vector.shape_cast %128 : vector<1x1x1x27x128xf32> to vector<27x128xf32>
    %cst_167 = arith.constant dense<0.000000e+00> : vector<8x128xf32>
    %130 = tpu.matmul %0, %129, %cst_167 {dimension_numbers = #tpu.dot_dimension_numbers<[1], [0], [0], [1], [0, 0, 1, 1], [], []>} : vector<8x27xf32>, vector<27x128xf32>, vector<8x128xf32> -> vector<8x128xf32>
    %131 = arith.maximumf %127, %130 : vector<8x128xf32>
    %132 = vector.broadcast %1 : vector<8x1xf32> to vector<8x128xf32>
    %133 = arith.addf %131, %132 : vector<8x128xf32>
    %cst_168 = arith.constant 0.000000e+00 : f32
    %134 = vector.broadcast %cst_168 : f32 to vector<8x128xf32>
    %135 = arith.maximumf %133, %134 : vector<8x128xf32>
    %c1_169 = arith.constant 1 : index
    %c1_170 = arith.constant 1 : index
    %c0_171 = arith.constant 0 : index
    %c0_172 = arith.constant 0 : index
    %136 = vector.load %arg4[%c1_169, %c1_170, %c0_171, %c0_172] : memref<4x4x1x128xf32, #tpu.memory_space<vmem>>, vector<1x1x1x128xf32>
    %137 = vector.shape_cast %136 : vector<1x1x1x128xf32> to vector<1x128xf32>
    %138 = vector.broadcast %137 : vector<1x128xf32> to vector<8x128xf32>
    %139 = arith.mulf %135, %138 : vector<8x128xf32>
    %c1_173 = arith.constant 1 : index
    %c2_174 = arith.constant 2 : index
    %c0_175 = arith.constant 0 : index
    %c0_176 = arith.constant 0 : index
    %c0_177 = arith.constant 0 : index
    %140 = vector.load %arg1[%c1_173, %c2_174, %c0_175, %c0_176, %c0_177] : memref<4x4x4x27x128xf32, #tpu.memory_space<vmem>>, vector<1x1x1x27x128xf32>
    %141 = vector.shape_cast %140 : vector<1x1x1x27x128xf32> to vector<27x128xf32>
    %cst_178 = arith.constant dense<0.000000e+00> : vector<8x128xf32>
    %142 = tpu.matmul %0, %141, %cst_178 {dimension_numbers = #tpu.dot_dimension_numbers<[1], [0], [0], [1], [0, 0, 1, 1], [], []>} : vector<8x27xf32>, vector<27x128xf32>, vector<8x128xf32> -> vector<8x128xf32>
    %c1_179 = arith.constant 1 : index
    %c2_180 = arith.constant 2 : index
    %c1_181 = arith.constant 1 : index
    %c0_182 = arith.constant 0 : index
    %c0_183 = arith.constant 0 : index
    %143 = vector.load %arg1[%c1_179, %c2_180, %c1_181, %c0_182, %c0_183] : memref<4x4x4x27x128xf32, #tpu.memory_space<vmem>>, vector<1x1x1x27x128xf32>
    %144 = vector.shape_cast %143 : vector<1x1x1x27x128xf32> to vector<27x128xf32>
    %cst_184 = arith.constant dense<0.000000e+00> : vector<8x128xf32>
    %145 = tpu.matmul %0, %144, %cst_184 {dimension_numbers = #tpu.dot_dimension_numbers<[1], [0], [0], [1], [0, 0, 1, 1], [], []>} : vector<8x27xf32>, vector<27x128xf32>, vector<8x128xf32> -> vector<8x128xf32>
    %146 = arith.maximumf %142, %145 : vector<8x128xf32>
    %c1_185 = arith.constant 1 : index
    %c2_186 = arith.constant 2 : index
    %c2_187 = arith.constant 2 : index
    %c0_188 = arith.constant 0 : index
    %c0_189 = arith.constant 0 : index
    %147 = vector.load %arg1[%c1_185, %c2_186, %c2_187, %c0_188, %c0_189] : memref<4x4x4x27x128xf32, #tpu.memory_space<vmem>>, vector<1x1x1x27x128xf32>
    %148 = vector.shape_cast %147 : vector<1x1x1x27x128xf32> to vector<27x128xf32>
    %cst_190 = arith.constant dense<0.000000e+00> : vector<8x128xf32>
    %149 = tpu.matmul %0, %148, %cst_190 {dimension_numbers = #tpu.dot_dimension_numbers<[1], [0], [0], [1], [0, 0, 1, 1], [], []>} : vector<8x27xf32>, vector<27x128xf32>, vector<8x128xf32> -> vector<8x128xf32>
    %150 = arith.maximumf %146, %149 : vector<8x128xf32>
    %c1_191 = arith.constant 1 : index
    %c2_192 = arith.constant 2 : index
    %c3_193 = arith.constant 3 : index
    %c0_194 = arith.constant 0 : index
    %c0_195 = arith.constant 0 : index
    %151 = vector.load %arg1[%c1_191, %c2_192, %c3_193, %c0_194, %c0_195] : memref<4x4x4x27x128xf32, #tpu.memory_space<vmem>>, vector<1x1x1x27x128xf32>
    %152 = vector.shape_cast %151 : vector<1x1x1x27x128xf32> to vector<27x128xf32>
    %cst_196 = arith.constant dense<0.000000e+00> : vector<8x128xf32>
    %153 = tpu.matmul %0, %152, %cst_196 {dimension_numbers = #tpu.dot_dimension_numbers<[1], [0], [0], [1], [0, 0, 1, 1], [], []>} : vector<8x27xf32>, vector<27x128xf32>, vector<8x128xf32> -> vector<8x128xf32>
    %154 = arith.maximumf %150, %153 : vector<8x128xf32>
    %155 = vector.broadcast %1 : vector<8x1xf32> to vector<8x128xf32>
    %156 = arith.addf %154, %155 : vector<8x128xf32>
    %cst_197 = arith.constant 0.000000e+00 : f32
    %157 = vector.broadcast %cst_197 : f32 to vector<8x128xf32>
    %158 = arith.maximumf %156, %157 : vector<8x128xf32>
    %c1_198 = arith.constant 1 : index
    %c2_199 = arith.constant 2 : index
    %c0_200 = arith.constant 0 : index
    %c0_201 = arith.constant 0 : index
    %159 = vector.load %arg4[%c1_198, %c2_199, %c0_200, %c0_201] : memref<4x4x1x128xf32, #tpu.memory_space<vmem>>, vector<1x1x1x128xf32>
    %160 = vector.shape_cast %159 : vector<1x1x1x128xf32> to vector<1x128xf32>
    %161 = vector.broadcast %160 : vector<1x128xf32> to vector<8x128xf32>
    %162 = arith.mulf %158, %161 : vector<8x128xf32>
    %c1_202 = arith.constant 1 : index
    %c3_203 = arith.constant 3 : index
    %c0_204 = arith.constant 0 : index
    %c0_205 = arith.constant 0 : index
    %c0_206 = arith.constant 0 : index
    %163 = vector.load %arg1[%c1_202, %c3_203, %c0_204, %c0_205, %c0_206] : memref<4x4x4x27x128xf32, #tpu.memory_space<vmem>>, vector<1x1x1x27x128xf32>
    %164 = vector.shape_cast %163 : vector<1x1x1x27x128xf32> to vector<27x128xf32>
    %cst_207 = arith.constant dense<0.000000e+00> : vector<8x128xf32>
    %165 = tpu.matmul %0, %164, %cst_207 {dimension_numbers = #tpu.dot_dimension_numbers<[1], [0], [0], [1], [0, 0, 1, 1], [], []>} : vector<8x27xf32>, vector<27x128xf32>, vector<8x128xf32> -> vector<8x128xf32>
    %c1_208 = arith.constant 1 : index
    %c3_209 = arith.constant 3 : index
    %c1_210 = arith.constant 1 : index
    %c0_211 = arith.constant 0 : index
    %c0_212 = arith.constant 0 : index
    %166 = vector.load %arg1[%c1_208, %c3_209, %c1_210, %c0_211, %c0_212] : memref<4x4x4x27x128xf32, #tpu.memory_space<vmem>>, vector<1x1x1x27x128xf32>
    %167 = vector.shape_cast %166 : vector<1x1x1x27x128xf32> to vector<27x128xf32>
    %cst_213 = arith.constant dense<0.000000e+00> : vector<8x128xf32>
    %168 = tpu.matmul %0, %167, %cst_213 {dimension_numbers = #tpu.dot_dimension_numbers<[1], [0], [0], [1], [0, 0, 1, 1], [], []>} : vector<8x27xf32>, vector<27x128xf32>, vector<8x128xf32> -> vector<8x128xf32>
    %169 = arith.maximumf %165, %168 : vector<8x128xf32>
    %c1_214 = arith.constant 1 : index
    %c3_215 = arith.constant 3 : index
    %c2_216 = arith.constant 2 : index
    %c0_217 = arith.constant 0 : index
    %c0_218 = arith.constant 0 : index
    %170 = vector.load %arg1[%c1_214, %c3_215, %c2_216, %c0_217, %c0_218] : memref<4x4x4x27x128xf32, #tpu.memory_space<vmem>>, vector<1x1x1x27x128xf32>
    %171 = vector.shape_cast %170 : vector<1x1x1x27x128xf32> to vector<27x128xf32>
    %cst_219 = arith.constant dense<0.000000e+00> : vector<8x128xf32>
    %172 = tpu.matmul %0, %171, %cst_219 {dimension_numbers = #tpu.dot_dimension_numbers<[1], [0], [0], [1], [0, 0, 1, 1], [], []>} : vector<8x27xf32>, vector<27x128xf32>, vector<8x128xf32> -> vector<8x128xf32>
    %173 = arith.maximumf %169, %172 : vector<8x128xf32>
    %c1_220 = arith.constant 1 : index
    %c3_221 = arith.constant 3 : index
    %c3_222 = arith.constant 3 : index
    %c0_223 = arith.constant 0 : index
    %c0_224 = arith.constant 0 : index
    %174 = vector.load %arg1[%c1_220, %c3_221, %c3_222, %c0_223, %c0_224] : memref<4x4x4x27x128xf32, #tpu.memory_space<vmem>>, vector<1x1x1x27x128xf32>
    %175 = vector.shape_cast %174 : vector<1x1x1x27x128xf32> to vector<27x128xf32>
    %cst_225 = arith.constant dense<0.000000e+00> : vector<8x128xf32>
    %176 = tpu.matmul %0, %175, %cst_225 {dimension_numbers = #tpu.dot_dimension_numbers<[1], [0], [0], [1], [0, 0, 1, 1], [], []>} : vector<8x27xf32>, vector<27x128xf32>, vector<8x128xf32> -> vector<8x128xf32>
    %177 = arith.maximumf %173, %176 : vector<8x128xf32>
    %178 = vector.broadcast %1 : vector<8x1xf32> to vector<8x128xf32>
    %179 = arith.addf %177, %178 : vector<8x128xf32>
    %cst_226 = arith.constant 0.000000e+00 : f32
    %180 = vector.broadcast %cst_226 : f32 to vector<8x128xf32>
    %181 = arith.maximumf %179, %180 : vector<8x128xf32>
    %c1_227 = arith.constant 1 : index
    %c3_228 = arith.constant 3 : index
    %c0_229 = arith.constant 0 : index
    %c0_230 = arith.constant 0 : index
    %182 = vector.load %arg4[%c1_227, %c3_228, %c0_229, %c0_230] : memref<4x4x1x128xf32, #tpu.memory_space<vmem>>, vector<1x1x1x128xf32>
    %183 = vector.shape_cast %182 : vector<1x1x1x128xf32> to vector<1x128xf32>
    %184 = vector.broadcast %183 : vector<1x128xf32> to vector<8x128xf32>
    %185 = arith.mulf %181, %184 : vector<8x128xf32>
    %c2_231 = arith.constant 2 : index
    %c0_232 = arith.constant 0 : index
    %c0_233 = arith.constant 0 : index
    %c0_234 = arith.constant 0 : index
    %c0_235 = arith.constant 0 : index
    %186 = vector.load %arg1[%c2_231, %c0_232, %c0_233, %c0_234, %c0_235] : memref<4x4x4x27x128xf32, #tpu.memory_space<vmem>>, vector<1x1x1x27x128xf32>
    %187 = vector.shape_cast %186 : vector<1x1x1x27x128xf32> to vector<27x128xf32>
    %cst_236 = arith.constant dense<0.000000e+00> : vector<8x128xf32>
    %188 = tpu.matmul %0, %187, %cst_236 {dimension_numbers = #tpu.dot_dimension_numbers<[1], [0], [0], [1], [0, 0, 1, 1], [], []>} : vector<8x27xf32>, vector<27x128xf32>, vector<8x128xf32> -> vector<8x128xf32>
    %c2_237 = arith.constant 2 : index
    %c0_238 = arith.constant 0 : index
    %c1_239 = arith.constant 1 : index
    %c0_240 = arith.constant 0 : index
    %c0_241 = arith.constant 0 : index
    %189 = vector.load %arg1[%c2_237, %c0_238, %c1_239, %c0_240, %c0_241] : memref<4x4x4x27x128xf32, #tpu.memory_space<vmem>>, vector<1x1x1x27x128xf32>
    %190 = vector.shape_cast %189 : vector<1x1x1x27x128xf32> to vector<27x128xf32>
    %cst_242 = arith.constant dense<0.000000e+00> : vector<8x128xf32>
    %191 = tpu.matmul %0, %190, %cst_242 {dimension_numbers = #tpu.dot_dimension_numbers<[1], [0], [0], [1], [0, 0, 1, 1], [], []>} : vector<8x27xf32>, vector<27x128xf32>, vector<8x128xf32> -> vector<8x128xf32>
    %192 = arith.maximumf %188, %191 : vector<8x128xf32>
    %c2_243 = arith.constant 2 : index
    %c0_244 = arith.constant 0 : index
    %c2_245 = arith.constant 2 : index
    %c0_246 = arith.constant 0 : index
    %c0_247 = arith.constant 0 : index
    %193 = vector.load %arg1[%c2_243, %c0_244, %c2_245, %c0_246, %c0_247] : memref<4x4x4x27x128xf32, #tpu.memory_space<vmem>>, vector<1x1x1x27x128xf32>
    %194 = vector.shape_cast %193 : vector<1x1x1x27x128xf32> to vector<27x128xf32>
    %cst_248 = arith.constant dense<0.000000e+00> : vector<8x128xf32>
    %195 = tpu.matmul %0, %194, %cst_248 {dimension_numbers = #tpu.dot_dimension_numbers<[1], [0], [0], [1], [0, 0, 1, 1], [], []>} : vector<8x27xf32>, vector<27x128xf32>, vector<8x128xf32> -> vector<8x128xf32>
    %196 = arith.maximumf %192, %195 : vector<8x128xf32>
    %c2_249 = arith.constant 2 : index
    %c0_250 = arith.constant 0 : index
    %c3_251 = arith.constant 3 : index
    %c0_252 = arith.constant 0 : index
    %c0_253 = arith.constant 0 : index
    %197 = vector.load %arg1[%c2_249, %c0_250, %c3_251, %c0_252, %c0_253] : memref<4x4x4x27x128xf32, #tpu.memory_space<vmem>>, vector<1x1x1x27x128xf32>
    %198 = vector.shape_cast %197 : vector<1x1x1x27x128xf32> to vector<27x128xf32>
    %cst_254 = arith.constant dense<0.000000e+00> : vector<8x128xf32>
    %199 = tpu.matmul %0, %198, %cst_254 {dimension_numbers = #tpu.dot_dimension_numbers<[1], [0], [0], [1], [0, 0, 1, 1], [], []>} : vector<8x27xf32>, vector<27x128xf32>, vector<8x128xf32> -> vector<8x128xf32>
    %200 = arith.maximumf %196, %199 : vector<8x128xf32>
    %201 = vector.broadcast %1 : vector<8x1xf32> to vector<8x128xf32>
    %202 = arith.addf %200, %201 : vector<8x128xf32>
    %cst_255 = arith.constant 0.000000e+00 : f32
    %203 = vector.broadcast %cst_255 : f32 to vector<8x128xf32>
    %204 = arith.maximumf %202, %203 : vector<8x128xf32>
    %c2_256 = arith.constant 2 : index
    %c0_257 = arith.constant 0 : index
    %c0_258 = arith.constant 0 : index
    %c0_259 = arith.constant 0 : index
    %205 = vector.load %arg4[%c2_256, %c0_257, %c0_258, %c0_259] : memref<4x4x1x128xf32, #tpu.memory_space<vmem>>, vector<1x1x1x128xf32>
    %206 = vector.shape_cast %205 : vector<1x1x1x128xf32> to vector<1x128xf32>
    %207 = vector.broadcast %206 : vector<1x128xf32> to vector<8x128xf32>
    %208 = arith.mulf %204, %207 : vector<8x128xf32>
    %c2_260 = arith.constant 2 : index
    %c1_261 = arith.constant 1 : index
    %c0_262 = arith.constant 0 : index
    %c0_263 = arith.constant 0 : index
    %c0_264 = arith.constant 0 : index
    %209 = vector.load %arg1[%c2_260, %c1_261, %c0_262, %c0_263, %c0_264] : memref<4x4x4x27x128xf32, #tpu.memory_space<vmem>>, vector<1x1x1x27x128xf32>
    %210 = vector.shape_cast %209 : vector<1x1x1x27x128xf32> to vector<27x128xf32>
    %cst_265 = arith.constant dense<0.000000e+00> : vector<8x128xf32>
    %211 = tpu.matmul %0, %210, %cst_265 {dimension_numbers = #tpu.dot_dimension_numbers<[1], [0], [0], [1], [0, 0, 1, 1], [], []>} : vector<8x27xf32>, vector<27x128xf32>, vector<8x128xf32> -> vector<8x128xf32>
    %c2_266 = arith.constant 2 : index
    %c1_267 = arith.constant 1 : index
    %c1_268 = arith.constant 1 : index
    %c0_269 = arith.constant 0 : index
    %c0_270 = arith.constant 0 : index
    %212 = vector.load %arg1[%c2_266, %c1_267, %c1_268, %c0_269, %c0_270] : memref<4x4x4x27x128xf32, #tpu.memory_space<vmem>>, vector<1x1x1x27x128xf32>
    %213 = vector.shape_cast %212 : vector<1x1x1x27x128xf32> to vector<27x128xf32>
    %cst_271 = arith.constant dense<0.000000e+00> : vector<8x128xf32>
    %214 = tpu.matmul %0, %213, %cst_271 {dimension_numbers = #tpu.dot_dimension_numbers<[1], [0], [0], [1], [0, 0, 1, 1], [], []>} : vector<8x27xf32>, vector<27x128xf32>, vector<8x128xf32> -> vector<8x128xf32>
    %215 = arith.maximumf %211, %214 : vector<8x128xf32>
    %c2_272 = arith.constant 2 : index
    %c1_273 = arith.constant 1 : index
    %c2_274 = arith.constant 2 : index
    %c0_275 = arith.constant 0 : index
    %c0_276 = arith.constant 0 : index
    %216 = vector.load %arg1[%c2_272, %c1_273, %c2_274, %c0_275, %c0_276] : memref<4x4x4x27x128xf32, #tpu.memory_space<vmem>>, vector<1x1x1x27x128xf32>
    %217 = vector.shape_cast %216 : vector<1x1x1x27x128xf32> to vector<27x128xf32>
    %cst_277 = arith.constant dense<0.000000e+00> : vector<8x128xf32>
    %218 = tpu.matmul %0, %217, %cst_277 {dimension_numbers = #tpu.dot_dimension_numbers<[1], [0], [0], [1], [0, 0, 1, 1], [], []>} : vector<8x27xf32>, vector<27x128xf32>, vector<8x128xf32> -> vector<8x128xf32>
    %219 = arith.maximumf %215, %218 : vector<8x128xf32>
    %c2_278 = arith.constant 2 : index
    %c1_279 = arith.constant 1 : index
    %c3_280 = arith.constant 3 : index
    %c0_281 = arith.constant 0 : index
    %c0_282 = arith.constant 0 : index
    %220 = vector.load %arg1[%c2_278, %c1_279, %c3_280, %c0_281, %c0_282] : memref<4x4x4x27x128xf32, #tpu.memory_space<vmem>>, vector<1x1x1x27x128xf32>
    %221 = vector.shape_cast %220 : vector<1x1x1x27x128xf32> to vector<27x128xf32>
    %cst_283 = arith.constant dense<0.000000e+00> : vector<8x128xf32>
    %222 = tpu.matmul %0, %221, %cst_283 {dimension_numbers = #tpu.dot_dimension_numbers<[1], [0], [0], [1], [0, 0, 1, 1], [], []>} : vector<8x27xf32>, vector<27x128xf32>, vector<8x128xf32> -> vector<8x128xf32>
    %223 = arith.maximumf %219, %222 : vector<8x128xf32>
    %224 = vector.broadcast %1 : vector<8x1xf32> to vector<8x128xf32>
    %225 = arith.addf %223, %224 : vector<8x128xf32>
    %cst_284 = arith.constant 0.000000e+00 : f32
    %226 = vector.broadcast %cst_284 : f32 to vector<8x128xf32>
    %227 = arith.maximumf %225, %226 : vector<8x128xf32>
    %c2_285 = arith.constant 2 : index
    %c1_286 = arith.constant 1 : index
    %c0_287 = arith.constant 0 : index
    %c0_288 = arith.constant 0 : index
    %228 = vector.load %arg4[%c2_285, %c1_286, %c0_287, %c0_288] : memref<4x4x1x128xf32, #tpu.memory_space<vmem>>, vector<1x1x1x128xf32>
    %229 = vector.shape_cast %228 : vector<1x1x1x128xf32> to vector<1x128xf32>
    %230 = vector.broadcast %229 : vector<1x128xf32> to vector<8x128xf32>
    %231 = arith.mulf %227, %230 : vector<8x128xf32>
    %c2_289 = arith.constant 2 : index
    %c2_290 = arith.constant 2 : index
    %c0_291 = arith.constant 0 : index
    %c0_292 = arith.constant 0 : index
    %c0_293 = arith.constant 0 : index
    %232 = vector.load %arg1[%c2_289, %c2_290, %c0_291, %c0_292, %c0_293] : memref<4x4x4x27x128xf32, #tpu.memory_space<vmem>>, vector<1x1x1x27x128xf32>
    %233 = vector.shape_cast %232 : vector<1x1x1x27x128xf32> to vector<27x128xf32>
    %cst_294 = arith.constant dense<0.000000e+00> : vector<8x128xf32>
    %234 = tpu.matmul %0, %233, %cst_294 {dimension_numbers = #tpu.dot_dimension_numbers<[1], [0], [0], [1], [0, 0, 1, 1], [], []>} : vector<8x27xf32>, vector<27x128xf32>, vector<8x128xf32> -> vector<8x128xf32>
    %c2_295 = arith.constant 2 : index
    %c2_296 = arith.constant 2 : index
    %c1_297 = arith.constant 1 : index
    %c0_298 = arith.constant 0 : index
    %c0_299 = arith.constant 0 : index
    %235 = vector.load %arg1[%c2_295, %c2_296, %c1_297, %c0_298, %c0_299] : memref<4x4x4x27x128xf32, #tpu.memory_space<vmem>>, vector<1x1x1x27x128xf32>
    %236 = vector.shape_cast %235 : vector<1x1x1x27x128xf32> to vector<27x128xf32>
    %cst_300 = arith.constant dense<0.000000e+00> : vector<8x128xf32>
    %237 = tpu.matmul %0, %236, %cst_300 {dimension_numbers = #tpu.dot_dimension_numbers<[1], [0], [0], [1], [0, 0, 1, 1], [], []>} : vector<8x27xf32>, vector<27x128xf32>, vector<8x128xf32> -> vector<8x128xf32>
    %238 = arith.maximumf %234, %237 : vector<8x128xf32>
    %c2_301 = arith.constant 2 : index
    %c2_302 = arith.constant 2 : index
    %c2_303 = arith.constant 2 : index
    %c0_304 = arith.constant 0 : index
    %c0_305 = arith.constant 0 : index
    %239 = vector.load %arg1[%c2_301, %c2_302, %c2_303, %c0_304, %c0_305] : memref<4x4x4x27x128xf32, #tpu.memory_space<vmem>>, vector<1x1x1x27x128xf32>
    %240 = vector.shape_cast %239 : vector<1x1x1x27x128xf32> to vector<27x128xf32>
    %cst_306 = arith.constant dense<0.000000e+00> : vector<8x128xf32>
    %241 = tpu.matmul %0, %240, %cst_306 {dimension_numbers = #tpu.dot_dimension_numbers<[1], [0], [0], [1], [0, 0, 1, 1], [], []>} : vector<8x27xf32>, vector<27x128xf32>, vector<8x128xf32> -> vector<8x128xf32>
    %242 = arith.maximumf %238, %241 : vector<8x128xf32>
    %c2_307 = arith.constant 2 : index
    %c2_308 = arith.constant 2 : index
    %c3_309 = arith.constant 3 : index
    %c0_310 = arith.constant 0 : index
    %c0_311 = arith.constant 0 : index
    %243 = vector.load %arg1[%c2_307, %c2_308, %c3_309, %c0_310, %c0_311] : memref<4x4x4x27x128xf32, #tpu.memory_space<vmem>>, vector<1x1x1x27x128xf32>
    %244 = vector.shape_cast %243 : vector<1x1x1x27x128xf32> to vector<27x128xf32>
    %cst_312 = arith.constant dense<0.000000e+00> : vector<8x128xf32>
    %245 = tpu.matmul %0, %244, %cst_312 {dimension_numbers = #tpu.dot_dimension_numbers<[1], [0], [0], [1], [0, 0, 1, 1], [], []>} : vector<8x27xf32>, vector<27x128xf32>, vector<8x128xf32> -> vector<8x128xf32>
    %246 = arith.maximumf %242, %245 : vector<8x128xf32>
    %247 = vector.broadcast %1 : vector<8x1xf32> to vector<8x128xf32>
    %248 = arith.addf %246, %247 : vector<8x128xf32>
    %cst_313 = arith.constant 0.000000e+00 : f32
    %249 = vector.broadcast %cst_313 : f32 to vector<8x128xf32>
    %250 = arith.maximumf %248, %249 : vector<8x128xf32>
    %c2_314 = arith.constant 2 : index
    %c2_315 = arith.constant 2 : index
    %c0_316 = arith.constant 0 : index
    %c0_317 = arith.constant 0 : index
    %251 = vector.load %arg4[%c2_314, %c2_315, %c0_316, %c0_317] : memref<4x4x1x128xf32, #tpu.memory_space<vmem>>, vector<1x1x1x128xf32>
    %252 = vector.shape_cast %251 : vector<1x1x1x128xf32> to vector<1x128xf32>
    %253 = vector.broadcast %252 : vector<1x128xf32> to vector<8x128xf32>
    %254 = arith.mulf %250, %253 : vector<8x128xf32>
    %c2_318 = arith.constant 2 : index
    %c3_319 = arith.constant 3 : index
    %c0_320 = arith.constant 0 : index
    %c0_321 = arith.constant 0 : index
    %c0_322 = arith.constant 0 : index
    %255 = vector.load %arg1[%c2_318, %c3_319, %c0_320, %c0_321, %c0_322] : memref<4x4x4x27x128xf32, #tpu.memory_space<vmem>>, vector<1x1x1x27x128xf32>
    %256 = vector.shape_cast %255 : vector<1x1x1x27x128xf32> to vector<27x128xf32>
    %cst_323 = arith.constant dense<0.000000e+00> : vector<8x128xf32>
    %257 = tpu.matmul %0, %256, %cst_323 {dimension_numbers = #tpu.dot_dimension_numbers<[1], [0], [0], [1], [0, 0, 1, 1], [], []>} : vector<8x27xf32>, vector<27x128xf32>, vector<8x128xf32> -> vector<8x128xf32>
    %c2_324 = arith.constant 2 : index
    %c3_325 = arith.constant 3 : index
    %c1_326 = arith.constant 1 : index
    %c0_327 = arith.constant 0 : index
    %c0_328 = arith.constant 0 : index
    %258 = vector.load %arg1[%c2_324, %c3_325, %c1_326, %c0_327, %c0_328] : memref<4x4x4x27x128xf32, #tpu.memory_space<vmem>>, vector<1x1x1x27x128xf32>
    %259 = vector.shape_cast %258 : vector<1x1x1x27x128xf32> to vector<27x128xf32>
    %cst_329 = arith.constant dense<0.000000e+00> : vector<8x128xf32>
    %260 = tpu.matmul %0, %259, %cst_329 {dimension_numbers = #tpu.dot_dimension_numbers<[1], [0], [0], [1], [0, 0, 1, 1], [], []>} : vector<8x27xf32>, vector<27x128xf32>, vector<8x128xf32> -> vector<8x128xf32>
    %261 = arith.maximumf %257, %260 : vector<8x128xf32>
    %c2_330 = arith.constant 2 : index
    %c3_331 = arith.constant 3 : index
    %c2_332 = arith.constant 2 : index
    %c0_333 = arith.constant 0 : index
    %c0_334 = arith.constant 0 : index
    %262 = vector.load %arg1[%c2_330, %c3_331, %c2_332, %c0_333, %c0_334] : memref<4x4x4x27x128xf32, #tpu.memory_space<vmem>>, vector<1x1x1x27x128xf32>
    %263 = vector.shape_cast %262 : vector<1x1x1x27x128xf32> to vector<27x128xf32>
    %cst_335 = arith.constant dense<0.000000e+00> : vector<8x128xf32>
    %264 = tpu.matmul %0, %263, %cst_335 {dimension_numbers = #tpu.dot_dimension_numbers<[1], [0], [0], [1], [0, 0, 1, 1], [], []>} : vector<8x27xf32>, vector<27x128xf32>, vector<8x128xf32> -> vector<8x128xf32>
    %265 = arith.maximumf %261, %264 : vector<8x128xf32>
    %c2_336 = arith.constant 2 : index
    %c3_337 = arith.constant 3 : index
    %c3_338 = arith.constant 3 : index
    %c0_339 = arith.constant 0 : index
    %c0_340 = arith.constant 0 : index
    %266 = vector.load %arg1[%c2_336, %c3_337, %c3_338, %c0_339, %c0_340] : memref<4x4x4x27x128xf32, #tpu.memory_space<vmem>>, vector<1x1x1x27x128xf32>
    %267 = vector.shape_cast %266 : vector<1x1x1x27x128xf32> to vector<27x128xf32>
    %cst_341 = arith.constant dense<0.000000e+00> : vector<8x128xf32>
    %268 = tpu.matmul %0, %267, %cst_341 {dimension_numbers = #tpu.dot_dimension_numbers<[1], [0], [0], [1], [0, 0, 1, 1], [], []>} : vector<8x27xf32>, vector<27x128xf32>, vector<8x128xf32> -> vector<8x128xf32>
    %269 = arith.maximumf %265, %268 : vector<8x128xf32>
    %270 = vector.broadcast %1 : vector<8x1xf32> to vector<8x128xf32>
    %271 = arith.addf %269, %270 : vector<8x128xf32>
    %cst_342 = arith.constant 0.000000e+00 : f32
    %272 = vector.broadcast %cst_342 : f32 to vector<8x128xf32>
    %273 = arith.maximumf %271, %272 : vector<8x128xf32>
    %c2_343 = arith.constant 2 : index
    %c3_344 = arith.constant 3 : index
    %c0_345 = arith.constant 0 : index
    %c0_346 = arith.constant 0 : index
    %274 = vector.load %arg4[%c2_343, %c3_344, %c0_345, %c0_346] : memref<4x4x1x128xf32, #tpu.memory_space<vmem>>, vector<1x1x1x128xf32>
    %275 = vector.shape_cast %274 : vector<1x1x1x128xf32> to vector<1x128xf32>
    %276 = vector.broadcast %275 : vector<1x128xf32> to vector<8x128xf32>
    %277 = arith.mulf %273, %276 : vector<8x128xf32>
    %c3_347 = arith.constant 3 : index
    %c0_348 = arith.constant 0 : index
    %c0_349 = arith.constant 0 : index
    %c0_350 = arith.constant 0 : index
    %c0_351 = arith.constant 0 : index
    %278 = vector.load %arg1[%c3_347, %c0_348, %c0_349, %c0_350, %c0_351] : memref<4x4x4x27x128xf32, #tpu.memory_space<vmem>>, vector<1x1x1x27x128xf32>
    %279 = vector.shape_cast %278 : vector<1x1x1x27x128xf32> to vector<27x128xf32>
    %cst_352 = arith.constant dense<0.000000e+00> : vector<8x128xf32>
    %280 = tpu.matmul %0, %279, %cst_352 {dimension_numbers = #tpu.dot_dimension_numbers<[1], [0], [0], [1], [0, 0, 1, 1], [], []>} : vector<8x27xf32>, vector<27x128xf32>, vector<8x128xf32> -> vector<8x128xf32>
    %c3_353 = arith.constant 3 : index
    %c0_354 = arith.constant 0 : index
    %c1_355 = arith.constant 1 : index
    %c0_356 = arith.constant 0 : index
    %c0_357 = arith.constant 0 : index
    %281 = vector.load %arg1[%c3_353, %c0_354, %c1_355, %c0_356, %c0_357] : memref<4x4x4x27x128xf32, #tpu.memory_space<vmem>>, vector<1x1x1x27x128xf32>
    %282 = vector.shape_cast %281 : vector<1x1x1x27x128xf32> to vector<27x128xf32>
    %cst_358 = arith.constant dense<0.000000e+00> : vector<8x128xf32>
    %283 = tpu.matmul %0, %282, %cst_358 {dimension_numbers = #tpu.dot_dimension_numbers<[1], [0], [0], [1], [0, 0, 1, 1], [], []>} : vector<8x27xf32>, vector<27x128xf32>, vector<8x128xf32> -> vector<8x128xf32>
    %284 = arith.maximumf %280, %283 : vector<8x128xf32>
    %c3_359 = arith.constant 3 : index
    %c0_360 = arith.constant 0 : index
    %c2_361 = arith.constant 2 : index
    %c0_362 = arith.constant 0 : index
    %c0_363 = arith.constant 0 : index
    %285 = vector.load %arg1[%c3_359, %c0_360, %c2_361, %c0_362, %c0_363] : memref<4x4x4x27x128xf32, #tpu.memory_space<vmem>>, vector<1x1x1x27x128xf32>
    %286 = vector.shape_cast %285 : vector<1x1x1x27x128xf32> to vector<27x128xf32>
    %cst_364 = arith.constant dense<0.000000e+00> : vector<8x128xf32>
    %287 = tpu.matmul %0, %286, %cst_364 {dimension_numbers = #tpu.dot_dimension_numbers<[1], [0], [0], [1], [0, 0, 1, 1], [], []>} : vector<8x27xf32>, vector<27x128xf32>, vector<8x128xf32> -> vector<8x128xf32>
    %288 = arith.maximumf %284, %287 : vector<8x128xf32>
    %c3_365 = arith.constant 3 : index
    %c0_366 = arith.constant 0 : index
    %c3_367 = arith.constant 3 : index
    %c0_368 = arith.constant 0 : index
    %c0_369 = arith.constant 0 : index
    %289 = vector.load %arg1[%c3_365, %c0_366, %c3_367, %c0_368, %c0_369] : memref<4x4x4x27x128xf32, #tpu.memory_space<vmem>>, vector<1x1x1x27x128xf32>
    %290 = vector.shape_cast %289 : vector<1x1x1x27x128xf32> to vector<27x128xf32>
    %cst_370 = arith.constant dense<0.000000e+00> : vector<8x128xf32>
    %291 = tpu.matmul %0, %290, %cst_370 {dimension_numbers = #tpu.dot_dimension_numbers<[1], [0], [0], [1], [0, 0, 1, 1], [], []>} : vector<8x27xf32>, vector<27x128xf32>, vector<8x128xf32> -> vector<8x128xf32>
    %292 = arith.maximumf %288, %291 : vector<8x128xf32>
    %293 = vector.broadcast %1 : vector<8x1xf32> to vector<8x128xf32>
    %294 = arith.addf %292, %293 : vector<8x128xf32>
    %cst_371 = arith.constant 0.000000e+00 : f32
    %295 = vector.broadcast %cst_371 : f32 to vector<8x128xf32>
    %296 = arith.maximumf %294, %295 : vector<8x128xf32>
    %c3_372 = arith.constant 3 : index
    %c0_373 = arith.constant 0 : index
    %c0_374 = arith.constant 0 : index
    %c0_375 = arith.constant 0 : index
    %297 = vector.load %arg4[%c3_372, %c0_373, %c0_374, %c0_375] : memref<4x4x1x128xf32, #tpu.memory_space<vmem>>, vector<1x1x1x128xf32>
    %298 = vector.shape_cast %297 : vector<1x1x1x128xf32> to vector<1x128xf32>
    %299 = vector.broadcast %298 : vector<1x128xf32> to vector<8x128xf32>
    %300 = arith.mulf %296, %299 : vector<8x128xf32>
    %c3_376 = arith.constant 3 : index
    %c1_377 = arith.constant 1 : index
    %c0_378 = arith.constant 0 : index
    %c0_379 = arith.constant 0 : index
    %c0_380 = arith.constant 0 : index
    %301 = vector.load %arg1[%c3_376, %c1_377, %c0_378, %c0_379, %c0_380] : memref<4x4x4x27x128xf32, #tpu.memory_space<vmem>>, vector<1x1x1x27x128xf32>
    %302 = vector.shape_cast %301 : vector<1x1x1x27x128xf32> to vector<27x128xf32>
    %cst_381 = arith.constant dense<0.000000e+00> : vector<8x128xf32>
    %303 = tpu.matmul %0, %302, %cst_381 {dimension_numbers = #tpu.dot_dimension_numbers<[1], [0], [0], [1], [0, 0, 1, 1], [], []>} : vector<8x27xf32>, vector<27x128xf32>, vector<8x128xf32> -> vector<8x128xf32>
    %c3_382 = arith.constant 3 : index
    %c1_383 = arith.constant 1 : index
    %c1_384 = arith.constant 1 : index
    %c0_385 = arith.constant 0 : index
    %c0_386 = arith.constant 0 : index
    %304 = vector.load %arg1[%c3_382, %c1_383, %c1_384, %c0_385, %c0_386] : memref<4x4x4x27x128xf32, #tpu.memory_space<vmem>>, vector<1x1x1x27x128xf32>
    %305 = vector.shape_cast %304 : vector<1x1x1x27x128xf32> to vector<27x128xf32>
    %cst_387 = arith.constant dense<0.000000e+00> : vector<8x128xf32>
    %306 = tpu.matmul %0, %305, %cst_387 {dimension_numbers = #tpu.dot_dimension_numbers<[1], [0], [0], [1], [0, 0, 1, 1], [], []>} : vector<8x27xf32>, vector<27x128xf32>, vector<8x128xf32> -> vector<8x128xf32>
    %307 = arith.maximumf %303, %306 : vector<8x128xf32>
    %c3_388 = arith.constant 3 : index
    %c1_389 = arith.constant 1 : index
    %c2_390 = arith.constant 2 : index
    %c0_391 = arith.constant 0 : index
    %c0_392 = arith.constant 0 : index
    %308 = vector.load %arg1[%c3_388, %c1_389, %c2_390, %c0_391, %c0_392] : memref<4x4x4x27x128xf32, #tpu.memory_space<vmem>>, vector<1x1x1x27x128xf32>
    %309 = vector.shape_cast %308 : vector<1x1x1x27x128xf32> to vector<27x128xf32>
    %cst_393 = arith.constant dense<0.000000e+00> : vector<8x128xf32>
    %310 = tpu.matmul %0, %309, %cst_393 {dimension_numbers = #tpu.dot_dimension_numbers<[1], [0], [0], [1], [0, 0, 1, 1], [], []>} : vector<8x27xf32>, vector<27x128xf32>, vector<8x128xf32> -> vector<8x128xf32>
    %311 = arith.maximumf %307, %310 : vector<8x128xf32>
    %c3_394 = arith.constant 3 : index
    %c1_395 = arith.constant 1 : index
    %c3_396 = arith.constant 3 : index
    %c0_397 = arith.constant 0 : index
    %c0_398 = arith.constant 0 : index
    %312 = vector.load %arg1[%c3_394, %c1_395, %c3_396, %c0_397, %c0_398] : memref<4x4x4x27x128xf32, #tpu.memory_space<vmem>>, vector<1x1x1x27x128xf32>
    %313 = vector.shape_cast %312 : vector<1x1x1x27x128xf32> to vector<27x128xf32>
    %cst_399 = arith.constant dense<0.000000e+00> : vector<8x128xf32>
    %314 = tpu.matmul %0, %313, %cst_399 {dimension_numbers = #tpu.dot_dimension_numbers<[1], [0], [0], [1], [0, 0, 1, 1], [], []>} : vector<8x27xf32>, vector<27x128xf32>, vector<8x128xf32> -> vector<8x128xf32>
    %315 = arith.maximumf %311, %314 : vector<8x128xf32>
    %316 = vector.broadcast %1 : vector<8x1xf32> to vector<8x128xf32>
    %317 = arith.addf %315, %316 : vector<8x128xf32>
    %cst_400 = arith.constant 0.000000e+00 : f32
    %318 = vector.broadcast %cst_400 : f32 to vector<8x128xf32>
    %319 = arith.maximumf %317, %318 : vector<8x128xf32>
    %c3_401 = arith.constant 3 : index
    %c1_402 = arith.constant 1 : index
    %c0_403 = arith.constant 0 : index
    %c0_404 = arith.constant 0 : index
    %320 = vector.load %arg4[%c3_401, %c1_402, %c0_403, %c0_404] : memref<4x4x1x128xf32, #tpu.memory_space<vmem>>, vector<1x1x1x128xf32>
    %321 = vector.shape_cast %320 : vector<1x1x1x128xf32> to vector<1x128xf32>
    %322 = vector.broadcast %321 : vector<1x128xf32> to vector<8x128xf32>
    %323 = arith.mulf %319, %322 : vector<8x128xf32>
    %c3_405 = arith.constant 3 : index
    %c2_406 = arith.constant 2 : index
    %c0_407 = arith.constant 0 : index
    %c0_408 = arith.constant 0 : index
    %c0_409 = arith.constant 0 : index
    %324 = vector.load %arg1[%c3_405, %c2_406, %c0_407, %c0_408, %c0_409] : memref<4x4x4x27x128xf32, #tpu.memory_space<vmem>>, vector<1x1x1x27x128xf32>
    %325 = vector.shape_cast %324 : vector<1x1x1x27x128xf32> to vector<27x128xf32>
    %cst_410 = arith.constant dense<0.000000e+00> : vector<8x128xf32>
    %326 = tpu.matmul %0, %325, %cst_410 {dimension_numbers = #tpu.dot_dimension_numbers<[1], [0], [0], [1], [0, 0, 1, 1], [], []>} : vector<8x27xf32>, vector<27x128xf32>, vector<8x128xf32> -> vector<8x128xf32>
    %c3_411 = arith.constant 3 : index
    %c2_412 = arith.constant 2 : index
    %c1_413 = arith.constant 1 : index
    %c0_414 = arith.constant 0 : index
    %c0_415 = arith.constant 0 : index
    %327 = vector.load %arg1[%c3_411, %c2_412, %c1_413, %c0_414, %c0_415] : memref<4x4x4x27x128xf32, #tpu.memory_space<vmem>>, vector<1x1x1x27x128xf32>
    %328 = vector.shape_cast %327 : vector<1x1x1x27x128xf32> to vector<27x128xf32>
    %cst_416 = arith.constant dense<0.000000e+00> : vector<8x128xf32>
    %329 = tpu.matmul %0, %328, %cst_416 {dimension_numbers = #tpu.dot_dimension_numbers<[1], [0], [0], [1], [0, 0, 1, 1], [], []>} : vector<8x27xf32>, vector<27x128xf32>, vector<8x128xf32> -> vector<8x128xf32>
    %330 = arith.maximumf %326, %329 : vector<8x128xf32>
    %c3_417 = arith.constant 3 : index
    %c2_418 = arith.constant 2 : index
    %c2_419 = arith.constant 2 : index
    %c0_420 = arith.constant 0 : index
    %c0_421 = arith.constant 0 : index
    %331 = vector.load %arg1[%c3_417, %c2_418, %c2_419, %c0_420, %c0_421] : memref<4x4x4x27x128xf32, #tpu.memory_space<vmem>>, vector<1x1x1x27x128xf32>
    %332 = vector.shape_cast %331 : vector<1x1x1x27x128xf32> to vector<27x128xf32>
    %cst_422 = arith.constant dense<0.000000e+00> : vector<8x128xf32>
    %333 = tpu.matmul %0, %332, %cst_422 {dimension_numbers = #tpu.dot_dimension_numbers<[1], [0], [0], [1], [0, 0, 1, 1], [], []>} : vector<8x27xf32>, vector<27x128xf32>, vector<8x128xf32> -> vector<8x128xf32>
    %334 = arith.maximumf %330, %333 : vector<8x128xf32>
    %c3_423 = arith.constant 3 : index
    %c2_424 = arith.constant 2 : index
    %c3_425 = arith.constant 3 : index
    %c0_426 = arith.constant 0 : index
    %c0_427 = arith.constant 0 : index
    %335 = vector.load %arg1[%c3_423, %c2_424, %c3_425, %c0_426, %c0_427] : memref<4x4x4x27x128xf32, #tpu.memory_space<vmem>>, vector<1x1x1x27x128xf32>
    %336 = vector.shape_cast %335 : vector<1x1x1x27x128xf32> to vector<27x128xf32>
    %cst_428 = arith.constant dense<0.000000e+00> : vector<8x128xf32>
    %337 = tpu.matmul %0, %336, %cst_428 {dimension_numbers = #tpu.dot_dimension_numbers<[1], [0], [0], [1], [0, 0, 1, 1], [], []>} : vector<8x27xf32>, vector<27x128xf32>, vector<8x128xf32> -> vector<8x128xf32>
    %338 = arith.maximumf %334, %337 : vector<8x128xf32>
    %339 = vector.broadcast %1 : vector<8x1xf32> to vector<8x128xf32>
    %340 = arith.addf %338, %339 : vector<8x128xf32>
    %cst_429 = arith.constant 0.000000e+00 : f32
    %341 = vector.broadcast %cst_429 : f32 to vector<8x128xf32>
    %342 = arith.maximumf %340, %341 : vector<8x128xf32>
    %c3_430 = arith.constant 3 : index
    %c2_431 = arith.constant 2 : index
    %c0_432 = arith.constant 0 : index
    %c0_433 = arith.constant 0 : index
    %343 = vector.load %arg4[%c3_430, %c2_431, %c0_432, %c0_433] : memref<4x4x1x128xf32, #tpu.memory_space<vmem>>, vector<1x1x1x128xf32>
    %344 = vector.shape_cast %343 : vector<1x1x1x128xf32> to vector<1x128xf32>
    %345 = vector.broadcast %344 : vector<1x128xf32> to vector<8x128xf32>
    %346 = arith.mulf %342, %345 : vector<8x128xf32>
    %c3_434 = arith.constant 3 : index
    %c3_435 = arith.constant 3 : index
    %c0_436 = arith.constant 0 : index
    %c0_437 = arith.constant 0 : index
    %c0_438 = arith.constant 0 : index
    %347 = vector.load %arg1[%c3_434, %c3_435, %c0_436, %c0_437, %c0_438] : memref<4x4x4x27x128xf32, #tpu.memory_space<vmem>>, vector<1x1x1x27x128xf32>
    %348 = vector.shape_cast %347 : vector<1x1x1x27x128xf32> to vector<27x128xf32>
    %cst_439 = arith.constant dense<0.000000e+00> : vector<8x128xf32>
    %349 = tpu.matmul %0, %348, %cst_439 {dimension_numbers = #tpu.dot_dimension_numbers<[1], [0], [0], [1], [0, 0, 1, 1], [], []>} : vector<8x27xf32>, vector<27x128xf32>, vector<8x128xf32> -> vector<8x128xf32>
    %c3_440 = arith.constant 3 : index
    %c3_441 = arith.constant 3 : index
    %c1_442 = arith.constant 1 : index
    %c0_443 = arith.constant 0 : index
    %c0_444 = arith.constant 0 : index
    %350 = vector.load %arg1[%c3_440, %c3_441, %c1_442, %c0_443, %c0_444] : memref<4x4x4x27x128xf32, #tpu.memory_space<vmem>>, vector<1x1x1x27x128xf32>
    %351 = vector.shape_cast %350 : vector<1x1x1x27x128xf32> to vector<27x128xf32>
    %cst_445 = arith.constant dense<0.000000e+00> : vector<8x128xf32>
    %352 = tpu.matmul %0, %351, %cst_445 {dimension_numbers = #tpu.dot_dimension_numbers<[1], [0], [0], [1], [0, 0, 1, 1], [], []>} : vector<8x27xf32>, vector<27x128xf32>, vector<8x128xf32> -> vector<8x128xf32>
    %353 = arith.maximumf %349, %352 : vector<8x128xf32>
    %c3_446 = arith.constant 3 : index
    %c3_447 = arith.constant 3 : index
    %c2_448 = arith.constant 2 : index
    %c0_449 = arith.constant 0 : index
    %c0_450 = arith.constant 0 : index
    %354 = vector.load %arg1[%c3_446, %c3_447, %c2_448, %c0_449, %c0_450] : memref<4x4x4x27x128xf32, #tpu.memory_space<vmem>>, vector<1x1x1x27x128xf32>
    %355 = vector.shape_cast %354 : vector<1x1x1x27x128xf32> to vector<27x128xf32>
    %cst_451 = arith.constant dense<0.000000e+00> : vector<8x128xf32>
    %356 = tpu.matmul %0, %355, %cst_451 {dimension_numbers = #tpu.dot_dimension_numbers<[1], [0], [0], [1], [0, 0, 1, 1], [], []>} : vector<8x27xf32>, vector<27x128xf32>, vector<8x128xf32> -> vector<8x128xf32>
    %357 = arith.maximumf %353, %356 : vector<8x128xf32>
    %c3_452 = arith.constant 3 : index
    %c3_453 = arith.constant 3 : index
    %c3_454 = arith.constant 3 : index
    %c0_455 = arith.constant 0 : index
    %c0_456 = arith.constant 0 : index
    %358 = vector.load %arg1[%c3_452, %c3_453, %c3_454, %c0_455, %c0_456] : memref<4x4x4x27x128xf32, #tpu.memory_space<vmem>>, vector<1x1x1x27x128xf32>
    %359 = vector.shape_cast %358 : vector<1x1x1x27x128xf32> to vector<27x128xf32>
    %cst_457 = arith.constant dense<0.000000e+00> : vector<8x128xf32>
    %360 = tpu.matmul %0, %359, %cst_457 {dimension_numbers = #tpu.dot_dimension_numbers<[1], [0], [0], [1], [0, 0, 1, 1], [], []>} : vector<8x27xf32>, vector<27x128xf32>, vector<8x128xf32> -> vector<8x128xf32>
    %361 = arith.maximumf %357, %360 : vector<8x128xf32>
    %362 = vector.broadcast %1 : vector<8x1xf32> to vector<8x128xf32>
    %363 = arith.addf %361, %362 : vector<8x128xf32>
    %cst_458 = arith.constant 0.000000e+00 : f32
    %364 = vector.broadcast %cst_458 : f32 to vector<8x128xf32>
    %365 = arith.maximumf %363, %364 : vector<8x128xf32>
    %c3_459 = arith.constant 3 : index
    %c3_460 = arith.constant 3 : index
    %c0_461 = arith.constant 0 : index
    %c0_462 = arith.constant 0 : index
    %366 = vector.load %arg4[%c3_459, %c3_460, %c0_461, %c0_462] : memref<4x4x1x128xf32, #tpu.memory_space<vmem>>, vector<1x1x1x128xf32>
    %367 = vector.shape_cast %366 : vector<1x1x1x128xf32> to vector<1x128xf32>
    %368 = vector.broadcast %367 : vector<1x128xf32> to vector<8x128xf32>
    %369 = arith.mulf %365, %368 : vector<8x128xf32>
    %c0_463 = arith.constant 0 : index
    %c0_464 = arith.constant 0 : index
    %370 = vector.load %arg6[%c0_463, %c0_464] : memref<16x1xf32, #tpu.memory_space<vmem>>, vector<16x1xf32>
    %c0_465 = arith.constant 0 : index
    %c0_466 = arith.constant 0 : index
    %c0_467 = arith.constant 0 : index
    %371 = vector.load %arg5[%c0_465, %c0_466, %c0_467] : memref<9x16x8xf32, #tpu.memory_space<vmem>>, vector<1x16x8xf32>
    %372 = vector.shape_cast %371 : vector<1x16x8xf32> to vector<16x8xf32>
    %cst_468 = arith.constant dense<0.000000e+00> : vector<16x128xf32>
    %373 = tpu.matmul %372, %24, %cst_468 {dimension_numbers = #tpu.dot_dimension_numbers<[1], [0], [0], [1], [0, 0, 1, 1], [], []>} : vector<16x8xf32>, vector<8x128xf32>, vector<16x128xf32> -> vector<16x128xf32>
    %c1_469 = arith.constant 1 : index
    %c0_470 = arith.constant 0 : index
    %c0_471 = arith.constant 0 : index
    %374 = vector.load %arg5[%c1_469, %c0_470, %c0_471] : memref<9x16x8xf32, #tpu.memory_space<vmem>>, vector<1x16x8xf32>
    %375 = vector.shape_cast %374 : vector<1x16x8xf32> to vector<16x8xf32>
    %cst_472 = arith.constant dense<0.000000e+00> : vector<16x128xf32>
    %376 = tpu.matmul %375, %47, %cst_472 {dimension_numbers = #tpu.dot_dimension_numbers<[1], [0], [0], [1], [0, 0, 1, 1], [], []>} : vector<16x8xf32>, vector<8x128xf32>, vector<16x128xf32> -> vector<16x128xf32>
    %377 = arith.addf %373, %376 : vector<16x128xf32>
    %c2_473 = arith.constant 2 : index
    %c0_474 = arith.constant 0 : index
    %c0_475 = arith.constant 0 : index
    %378 = vector.load %arg5[%c2_473, %c0_474, %c0_475] : memref<9x16x8xf32, #tpu.memory_space<vmem>>, vector<1x16x8xf32>
    %379 = vector.shape_cast %378 : vector<1x16x8xf32> to vector<16x8xf32>
    %cst_476 = arith.constant dense<0.000000e+00> : vector<16x128xf32>
    %380 = tpu.matmul %379, %70, %cst_476 {dimension_numbers = #tpu.dot_dimension_numbers<[1], [0], [0], [1], [0, 0, 1, 1], [], []>} : vector<16x8xf32>, vector<8x128xf32>, vector<16x128xf32> -> vector<16x128xf32>
    %381 = arith.addf %377, %380 : vector<16x128xf32>
    %c3_477 = arith.constant 3 : index
    %c0_478 = arith.constant 0 : index
    %c0_479 = arith.constant 0 : index
    %382 = vector.load %arg5[%c3_477, %c0_478, %c0_479] : memref<9x16x8xf32, #tpu.memory_space<vmem>>, vector<1x16x8xf32>
    %383 = vector.shape_cast %382 : vector<1x16x8xf32> to vector<16x8xf32>
    %cst_480 = arith.constant dense<0.000000e+00> : vector<16x128xf32>
    %384 = tpu.matmul %383, %116, %cst_480 {dimension_numbers = #tpu.dot_dimension_numbers<[1], [0], [0], [1], [0, 0, 1, 1], [], []>} : vector<16x8xf32>, vector<8x128xf32>, vector<16x128xf32> -> vector<16x128xf32>
    %385 = arith.addf %381, %384 : vector<16x128xf32>
    %c4 = arith.constant 4 : index
    %c0_481 = arith.constant 0 : index
    %c0_482 = arith.constant 0 : index
    %386 = vector.load %arg5[%c4, %c0_481, %c0_482] : memref<9x16x8xf32, #tpu.memory_space<vmem>>, vector<1x16x8xf32>
    %387 = vector.shape_cast %386 : vector<1x16x8xf32> to vector<16x8xf32>
    %cst_483 = arith.constant dense<0.000000e+00> : vector<16x128xf32>
    %388 = tpu.matmul %387, %139, %cst_483 {dimension_numbers = #tpu.dot_dimension_numbers<[1], [0], [0], [1], [0, 0, 1, 1], [], []>} : vector<16x8xf32>, vector<8x128xf32>, vector<16x128xf32> -> vector<16x128xf32>
    %389 = arith.addf %385, %388 : vector<16x128xf32>
    %c5 = arith.constant 5 : index
    %c0_484 = arith.constant 0 : index
    %c0_485 = arith.constant 0 : index
    %390 = vector.load %arg5[%c5, %c0_484, %c0_485] : memref<9x16x8xf32, #tpu.memory_space<vmem>>, vector<1x16x8xf32>
    %391 = vector.shape_cast %390 : vector<1x16x8xf32> to vector<16x8xf32>
    %cst_486 = arith.constant dense<0.000000e+00> : vector<16x128xf32>
    %392 = tpu.matmul %391, %162, %cst_486 {dimension_numbers = #tpu.dot_dimension_numbers<[1], [0], [0], [1], [0, 0, 1, 1], [], []>} : vector<16x8xf32>, vector<8x128xf32>, vector<16x128xf32> -> vector<16x128xf32>
    %393 = arith.addf %389, %392 : vector<16x128xf32>
    %c6 = arith.constant 6 : index
    %c0_487 = arith.constant 0 : index
    %c0_488 = arith.constant 0 : index
    %394 = vector.load %arg5[%c6, %c0_487, %c0_488] : memref<9x16x8xf32, #tpu.memory_space<vmem>>, vector<1x16x8xf32>
    %395 = vector.shape_cast %394 : vector<1x16x8xf32> to vector<16x8xf32>
    %cst_489 = arith.constant dense<0.000000e+00> : vector<16x128xf32>
    %396 = tpu.matmul %395, %208, %cst_489 {dimension_numbers = #tpu.dot_dimension_numbers<[1], [0], [0], [1], [0, 0, 1, 1], [], []>} : vector<16x8xf32>, vector<8x128xf32>, vector<16x128xf32> -> vector<16x128xf32>
    %397 = arith.addf %393, %396 : vector<16x128xf32>
    %c7 = arith.constant 7 : index
    %c0_490 = arith.constant 0 : index
    %c0_491 = arith.constant 0 : index
    %398 = vector.load %arg5[%c7, %c0_490, %c0_491] : memref<9x16x8xf32, #tpu.memory_space<vmem>>, vector<1x16x8xf32>
    %399 = vector.shape_cast %398 : vector<1x16x8xf32> to vector<16x8xf32>
    %cst_492 = arith.constant dense<0.000000e+00> : vector<16x128xf32>
    %400 = tpu.matmul %399, %231, %cst_492 {dimension_numbers = #tpu.dot_dimension_numbers<[1], [0], [0], [1], [0, 0, 1, 1], [], []>} : vector<16x8xf32>, vector<8x128xf32>, vector<16x128xf32> -> vector<16x128xf32>
    %401 = arith.addf %397, %400 : vector<16x128xf32>
    %c8 = arith.constant 8 : index
    %c0_493 = arith.constant 0 : index
    %c0_494 = arith.constant 0 : index
    %402 = vector.load %arg5[%c8, %c0_493, %c0_494] : memref<9x16x8xf32, #tpu.memory_space<vmem>>, vector<1x16x8xf32>
    %403 = vector.shape_cast %402 : vector<1x16x8xf32> to vector<16x8xf32>
    %cst_495 = arith.constant dense<0.000000e+00> : vector<16x128xf32>
    %404 = tpu.matmul %403, %254, %cst_495 {dimension_numbers = #tpu.dot_dimension_numbers<[1], [0], [0], [1], [0, 0, 1, 1], [], []>} : vector<16x8xf32>, vector<8x128xf32>, vector<16x128xf32> -> vector<16x128xf32>
    %405 = arith.addf %401, %404 : vector<16x128xf32>
    %c0_496 = arith.constant 0 : index
    %c0_497 = arith.constant 0 : index
    %c0_498 = arith.constant 0 : index
    %406 = vector.load %arg5[%c0_496, %c0_497, %c0_498] : memref<9x16x8xf32, #tpu.memory_space<vmem>>, vector<1x16x8xf32>
    %407 = vector.shape_cast %406 : vector<1x16x8xf32> to vector<16x8xf32>
    %cst_499 = arith.constant dense<0.000000e+00> : vector<16x128xf32>
    %408 = tpu.matmul %407, %47, %cst_499 {dimension_numbers = #tpu.dot_dimension_numbers<[1], [0], [0], [1], [0, 0, 1, 1], [], []>} : vector<16x8xf32>, vector<8x128xf32>, vector<16x128xf32> -> vector<16x128xf32>
    %c1_500 = arith.constant 1 : index
    %c0_501 = arith.constant 0 : index
    %c0_502 = arith.constant 0 : index
    %409 = vector.load %arg5[%c1_500, %c0_501, %c0_502] : memref<9x16x8xf32, #tpu.memory_space<vmem>>, vector<1x16x8xf32>
    %410 = vector.shape_cast %409 : vector<1x16x8xf32> to vector<16x8xf32>
    %cst_503 = arith.constant dense<0.000000e+00> : vector<16x128xf32>
    %411 = tpu.matmul %410, %70, %cst_503 {dimension_numbers = #tpu.dot_dimension_numbers<[1], [0], [0], [1], [0, 0, 1, 1], [], []>} : vector<16x8xf32>, vector<8x128xf32>, vector<16x128xf32> -> vector<16x128xf32>
    %412 = arith.addf %408, %411 : vector<16x128xf32>
    %c2_504 = arith.constant 2 : index
    %c0_505 = arith.constant 0 : index
    %c0_506 = arith.constant 0 : index
    %413 = vector.load %arg5[%c2_504, %c0_505, %c0_506] : memref<9x16x8xf32, #tpu.memory_space<vmem>>, vector<1x16x8xf32>
    %414 = vector.shape_cast %413 : vector<1x16x8xf32> to vector<16x8xf32>
    %cst_507 = arith.constant dense<0.000000e+00> : vector<16x128xf32>
    %415 = tpu.matmul %414, %93, %cst_507 {dimension_numbers = #tpu.dot_dimension_numbers<[1], [0], [0], [1], [0, 0, 1, 1], [], []>} : vector<16x8xf32>, vector<8x128xf32>, vector<16x128xf32> -> vector<16x128xf32>
    %416 = arith.addf %412, %415 : vector<16x128xf32>
    %c3_508 = arith.constant 3 : index
    %c0_509 = arith.constant 0 : index
    %c0_510 = arith.constant 0 : index
    %417 = vector.load %arg5[%c3_508, %c0_509, %c0_510] : memref<9x16x8xf32, #tpu.memory_space<vmem>>, vector<1x16x8xf32>
    %418 = vector.shape_cast %417 : vector<1x16x8xf32> to vector<16x8xf32>
    %cst_511 = arith.constant dense<0.000000e+00> : vector<16x128xf32>
    %419 = tpu.matmul %418, %139, %cst_511 {dimension_numbers = #tpu.dot_dimension_numbers<[1], [0], [0], [1], [0, 0, 1, 1], [], []>} : vector<16x8xf32>, vector<8x128xf32>, vector<16x128xf32> -> vector<16x128xf32>
    %420 = arith.addf %416, %419 : vector<16x128xf32>
    %c4_512 = arith.constant 4 : index
    %c0_513 = arith.constant 0 : index
    %c0_514 = arith.constant 0 : index
    %421 = vector.load %arg5[%c4_512, %c0_513, %c0_514] : memref<9x16x8xf32, #tpu.memory_space<vmem>>, vector<1x16x8xf32>
    %422 = vector.shape_cast %421 : vector<1x16x8xf32> to vector<16x8xf32>
    %cst_515 = arith.constant dense<0.000000e+00> : vector<16x128xf32>
    %423 = tpu.matmul %422, %162, %cst_515 {dimension_numbers = #tpu.dot_dimension_numbers<[1], [0], [0], [1], [0, 0, 1, 1], [], []>} : vector<16x8xf32>, vector<8x128xf32>, vector<16x128xf32> -> vector<16x128xf32>
    %424 = arith.addf %420, %423 : vector<16x128xf32>
    %c5_516 = arith.constant 5 : index
    %c0_517 = arith.constant 0 : index
    %c0_518 = arith.constant 0 : index
    %425 = vector.load %arg5[%c5_516, %c0_517, %c0_518] : memref<9x16x8xf32, #tpu.memory_space<vmem>>, vector<1x16x8xf32>
    %426 = vector.shape_cast %425 : vector<1x16x8xf32> to vector<16x8xf32>
    %cst_519 = arith.constant dense<0.000000e+00> : vector<16x128xf32>
    %427 = tpu.matmul %426, %185, %cst_519 {dimension_numbers = #tpu.dot_dimension_numbers<[1], [0], [0], [1], [0, 0, 1, 1], [], []>} : vector<16x8xf32>, vector<8x128xf32>, vector<16x128xf32> -> vector<16x128xf32>
    %428 = arith.addf %424, %427 : vector<16x128xf32>
    %c6_520 = arith.constant 6 : index
    %c0_521 = arith.constant 0 : index
    %c0_522 = arith.constant 0 : index
    %429 = vector.load %arg5[%c6_520, %c0_521, %c0_522] : memref<9x16x8xf32, #tpu.memory_space<vmem>>, vector<1x16x8xf32>
    %430 = vector.shape_cast %429 : vector<1x16x8xf32> to vector<16x8xf32>
    %cst_523 = arith.constant dense<0.000000e+00> : vector<16x128xf32>
    %431 = tpu.matmul %430, %231, %cst_523 {dimension_numbers = #tpu.dot_dimension_numbers<[1], [0], [0], [1], [0, 0, 1, 1], [], []>} : vector<16x8xf32>, vector<8x128xf32>, vector<16x128xf32> -> vector<16x128xf32>
    %432 = arith.addf %428, %431 : vector<16x128xf32>
    %c7_524 = arith.constant 7 : index
    %c0_525 = arith.constant 0 : index
    %c0_526 = arith.constant 0 : index
    %433 = vector.load %arg5[%c7_524, %c0_525, %c0_526] : memref<9x16x8xf32, #tpu.memory_space<vmem>>, vector<1x16x8xf32>
    %434 = vector.shape_cast %433 : vector<1x16x8xf32> to vector<16x8xf32>
    %cst_527 = arith.constant dense<0.000000e+00> : vector<16x128xf32>
    %435 = tpu.matmul %434, %254, %cst_527 {dimension_numbers = #tpu.dot_dimension_numbers<[1], [0], [0], [1], [0, 0, 1, 1], [], []>} : vector<16x8xf32>, vector<8x128xf32>, vector<16x128xf32> -> vector<16x128xf32>
    %436 = arith.addf %432, %435 : vector<16x128xf32>
    %c8_528 = arith.constant 8 : index
    %c0_529 = arith.constant 0 : index
    %c0_530 = arith.constant 0 : index
    %437 = vector.load %arg5[%c8_528, %c0_529, %c0_530] : memref<9x16x8xf32, #tpu.memory_space<vmem>>, vector<1x16x8xf32>
    %438 = vector.shape_cast %437 : vector<1x16x8xf32> to vector<16x8xf32>
    %cst_531 = arith.constant dense<0.000000e+00> : vector<16x128xf32>
    %439 = tpu.matmul %438, %277, %cst_531 {dimension_numbers = #tpu.dot_dimension_numbers<[1], [0], [0], [1], [0, 0, 1, 1], [], []>} : vector<16x8xf32>, vector<8x128xf32>, vector<16x128xf32> -> vector<16x128xf32>
    %440 = arith.addf %436, %439 : vector<16x128xf32>
    %441 = arith.maximumf %405, %440 : vector<16x128xf32>
    %c0_532 = arith.constant 0 : index
    %c0_533 = arith.constant 0 : index
    %c0_534 = arith.constant 0 : index
    %442 = vector.load %arg5[%c0_532, %c0_533, %c0_534] : memref<9x16x8xf32, #tpu.memory_space<vmem>>, vector<1x16x8xf32>
    %443 = vector.shape_cast %442 : vector<1x16x8xf32> to vector<16x8xf32>
    %cst_535 = arith.constant dense<0.000000e+00> : vector<16x128xf32>
    %444 = tpu.matmul %443, %116, %cst_535 {dimension_numbers = #tpu.dot_dimension_numbers<[1], [0], [0], [1], [0, 0, 1, 1], [], []>} : vector<16x8xf32>, vector<8x128xf32>, vector<16x128xf32> -> vector<16x128xf32>
    %c1_536 = arith.constant 1 : index
    %c0_537 = arith.constant 0 : index
    %c0_538 = arith.constant 0 : index
    %445 = vector.load %arg5[%c1_536, %c0_537, %c0_538] : memref<9x16x8xf32, #tpu.memory_space<vmem>>, vector<1x16x8xf32>
    %446 = vector.shape_cast %445 : vector<1x16x8xf32> to vector<16x8xf32>
    %cst_539 = arith.constant dense<0.000000e+00> : vector<16x128xf32>
    %447 = tpu.matmul %446, %139, %cst_539 {dimension_numbers = #tpu.dot_dimension_numbers<[1], [0], [0], [1], [0, 0, 1, 1], [], []>} : vector<16x8xf32>, vector<8x128xf32>, vector<16x128xf32> -> vector<16x128xf32>
    %448 = arith.addf %444, %447 : vector<16x128xf32>
    %c2_540 = arith.constant 2 : index
    %c0_541 = arith.constant 0 : index
    %c0_542 = arith.constant 0 : index
    %449 = vector.load %arg5[%c2_540, %c0_541, %c0_542] : memref<9x16x8xf32, #tpu.memory_space<vmem>>, vector<1x16x8xf32>
    %450 = vector.shape_cast %449 : vector<1x16x8xf32> to vector<16x8xf32>
    %cst_543 = arith.constant dense<0.000000e+00> : vector<16x128xf32>
    %451 = tpu.matmul %450, %162, %cst_543 {dimension_numbers = #tpu.dot_dimension_numbers<[1], [0], [0], [1], [0, 0, 1, 1], [], []>} : vector<16x8xf32>, vector<8x128xf32>, vector<16x128xf32> -> vector<16x128xf32>
    %452 = arith.addf %448, %451 : vector<16x128xf32>
    %c3_544 = arith.constant 3 : index
    %c0_545 = arith.constant 0 : index
    %c0_546 = arith.constant 0 : index
    %453 = vector.load %arg5[%c3_544, %c0_545, %c0_546] : memref<9x16x8xf32, #tpu.memory_space<vmem>>, vector<1x16x8xf32>
    %454 = vector.shape_cast %453 : vector<1x16x8xf32> to vector<16x8xf32>
    %cst_547 = arith.constant dense<0.000000e+00> : vector<16x128xf32>
    %455 = tpu.matmul %454, %208, %cst_547 {dimension_numbers = #tpu.dot_dimension_numbers<[1], [0], [0], [1], [0, 0, 1, 1], [], []>} : vector<16x8xf32>, vector<8x128xf32>, vector<16x128xf32> -> vector<16x128xf32>
    %456 = arith.addf %452, %455 : vector<16x128xf32>
    %c4_548 = arith.constant 4 : index
    %c0_549 = arith.constant 0 : index
    %c0_550 = arith.constant 0 : index
    %457 = vector.load %arg5[%c4_548, %c0_549, %c0_550] : memref<9x16x8xf32, #tpu.memory_space<vmem>>, vector<1x16x8xf32>
    %458 = vector.shape_cast %457 : vector<1x16x8xf32> to vector<16x8xf32>
    %cst_551 = arith.constant dense<0.000000e+00> : vector<16x128xf32>
    %459 = tpu.matmul %458, %231, %cst_551 {dimension_numbers = #tpu.dot_dimension_numbers<[1], [0], [0], [1], [0, 0, 1, 1], [], []>} : vector<16x8xf32>, vector<8x128xf32>, vector<16x128xf32> -> vector<16x128xf32>
    %460 = arith.addf %456, %459 : vector<16x128xf32>
    %c5_552 = arith.constant 5 : index
    %c0_553 = arith.constant 0 : index
    %c0_554 = arith.constant 0 : index
    %461 = vector.load %arg5[%c5_552, %c0_553, %c0_554] : memref<9x16x8xf32, #tpu.memory_space<vmem>>, vector<1x16x8xf32>
    %462 = vector.shape_cast %461 : vector<1x16x8xf32> to vector<16x8xf32>
    %cst_555 = arith.constant dense<0.000000e+00> : vector<16x128xf32>
    %463 = tpu.matmul %462, %254, %cst_555 {dimension_numbers = #tpu.dot_dimension_numbers<[1], [0], [0], [1], [0, 0, 1, 1], [], []>} : vector<16x8xf32>, vector<8x128xf32>, vector<16x128xf32> -> vector<16x128xf32>
    %464 = arith.addf %460, %463 : vector<16x128xf32>
    %c6_556 = arith.constant 6 : index
    %c0_557 = arith.constant 0 : index
    %c0_558 = arith.constant 0 : index
    %465 = vector.load %arg5[%c6_556, %c0_557, %c0_558] : memref<9x16x8xf32, #tpu.memory_space<vmem>>, vector<1x16x8xf32>
    %466 = vector.shape_cast %465 : vector<1x16x8xf32> to vector<16x8xf32>
    %cst_559 = arith.constant dense<0.000000e+00> : vector<16x128xf32>
    %467 = tpu.matmul %466, %300, %cst_559 {dimension_numbers = #tpu.dot_dimension_numbers<[1], [0], [0], [1], [0, 0, 1, 1], [], []>} : vector<16x8xf32>, vector<8x128xf32>, vector<16x128xf32> -> vector<16x128xf32>
    %468 = arith.addf %464, %467 : vector<16x128xf32>
    %c7_560 = arith.constant 7 : index
    %c0_561 = arith.constant 0 : index
    %c0_562 = arith.constant 0 : index
    %469 = vector.load %arg5[%c7_560, %c0_561, %c0_562] : memref<9x16x8xf32, #tpu.memory_space<vmem>>, vector<1x16x8xf32>
    %470 = vector.shape_cast %469 : vector<1x16x8xf32> to vector<16x8xf32>
    %cst_563 = arith.constant dense<0.000000e+00> : vector<16x128xf32>
    %471 = tpu.matmul %470, %323, %cst_563 {dimension_numbers = #tpu.dot_dimension_numbers<[1], [0], [0], [1], [0, 0, 1, 1], [], []>} : vector<16x8xf32>, vector<8x128xf32>, vector<16x128xf32> -> vector<16x128xf32>
    %472 = arith.addf %468, %471 : vector<16x128xf32>
    %c8_564 = arith.constant 8 : index
    %c0_565 = arith.constant 0 : index
    %c0_566 = arith.constant 0 : index
    %473 = vector.load %arg5[%c8_564, %c0_565, %c0_566] : memref<9x16x8xf32, #tpu.memory_space<vmem>>, vector<1x16x8xf32>
    %474 = vector.shape_cast %473 : vector<1x16x8xf32> to vector<16x8xf32>
    %cst_567 = arith.constant dense<0.000000e+00> : vector<16x128xf32>
    %475 = tpu.matmul %474, %346, %cst_567 {dimension_numbers = #tpu.dot_dimension_numbers<[1], [0], [0], [1], [0, 0, 1, 1], [], []>} : vector<16x8xf32>, vector<8x128xf32>, vector<16x128xf32> -> vector<16x128xf32>
    %476 = arith.addf %472, %475 : vector<16x128xf32>
    %477 = arith.maximumf %441, %476 : vector<16x128xf32>
    %c0_568 = arith.constant 0 : index
    %c0_569 = arith.constant 0 : index
    %c0_570 = arith.constant 0 : index
    %478 = vector.load %arg5[%c0_568, %c0_569, %c0_570] : memref<9x16x8xf32, #tpu.memory_space<vmem>>, vector<1x16x8xf32>
    %479 = vector.shape_cast %478 : vector<1x16x8xf32> to vector<16x8xf32>
    %cst_571 = arith.constant dense<0.000000e+00> : vector<16x128xf32>
    %480 = tpu.matmul %479, %139, %cst_571 {dimension_numbers = #tpu.dot_dimension_numbers<[1], [0], [0], [1], [0, 0, 1, 1], [], []>} : vector<16x8xf32>, vector<8x128xf32>, vector<16x128xf32> -> vector<16x128xf32>
    %c1_572 = arith.constant 1 : index
    %c0_573 = arith.constant 0 : index
    %c0_574 = arith.constant 0 : index
    %481 = vector.load %arg5[%c1_572, %c0_573, %c0_574] : memref<9x16x8xf32, #tpu.memory_space<vmem>>, vector<1x16x8xf32>
    %482 = vector.shape_cast %481 : vector<1x16x8xf32> to vector<16x8xf32>
    %cst_575 = arith.constant dense<0.000000e+00> : vector<16x128xf32>
    %483 = tpu.matmul %482, %162, %cst_575 {dimension_numbers = #tpu.dot_dimension_numbers<[1], [0], [0], [1], [0, 0, 1, 1], [], []>} : vector<16x8xf32>, vector<8x128xf32>, vector<16x128xf32> -> vector<16x128xf32>
    %484 = arith.addf %480, %483 : vector<16x128xf32>
    %c2_576 = arith.constant 2 : index
    %c0_577 = arith.constant 0 : index
    %c0_578 = arith.constant 0 : index
    %485 = vector.load %arg5[%c2_576, %c0_577, %c0_578] : memref<9x16x8xf32, #tpu.memory_space<vmem>>, vector<1x16x8xf32>
    %486 = vector.shape_cast %485 : vector<1x16x8xf32> to vector<16x8xf32>
    %cst_579 = arith.constant dense<0.000000e+00> : vector<16x128xf32>
    %487 = tpu.matmul %486, %185, %cst_579 {dimension_numbers = #tpu.dot_dimension_numbers<[1], [0], [0], [1], [0, 0, 1, 1], [], []>} : vector<16x8xf32>, vector<8x128xf32>, vector<16x128xf32> -> vector<16x128xf32>
    %488 = arith.addf %484, %487 : vector<16x128xf32>
    %c3_580 = arith.constant 3 : index
    %c0_581 = arith.constant 0 : index
    %c0_582 = arith.constant 0 : index
    %489 = vector.load %arg5[%c3_580, %c0_581, %c0_582] : memref<9x16x8xf32, #tpu.memory_space<vmem>>, vector<1x16x8xf32>
    %490 = vector.shape_cast %489 : vector<1x16x8xf32> to vector<16x8xf32>
    %cst_583 = arith.constant dense<0.000000e+00> : vector<16x128xf32>
    %491 = tpu.matmul %490, %231, %cst_583 {dimension_numbers = #tpu.dot_dimension_numbers<[1], [0], [0], [1], [0, 0, 1, 1], [], []>} : vector<16x8xf32>, vector<8x128xf32>, vector<16x128xf32> -> vector<16x128xf32>
    %492 = arith.addf %488, %491 : vector<16x128xf32>
    %c4_584 = arith.constant 4 : index
    %c0_585 = arith.constant 0 : index
    %c0_586 = arith.constant 0 : index
    %493 = vector.load %arg5[%c4_584, %c0_585, %c0_586] : memref<9x16x8xf32, #tpu.memory_space<vmem>>, vector<1x16x8xf32>
    %494 = vector.shape_cast %493 : vector<1x16x8xf32> to vector<16x8xf32>
    %cst_587 = arith.constant dense<0.000000e+00> : vector<16x128xf32>
    %495 = tpu.matmul %494, %254, %cst_587 {dimension_numbers = #tpu.dot_dimension_numbers<[1], [0], [0], [1], [0, 0, 1, 1], [], []>} : vector<16x8xf32>, vector<8x128xf32>, vector<16x128xf32> -> vector<16x128xf32>
    %496 = arith.addf %492, %495 : vector<16x128xf32>
    %c5_588 = arith.constant 5 : index
    %c0_589 = arith.constant 0 : index
    %c0_590 = arith.constant 0 : index
    %497 = vector.load %arg5[%c5_588, %c0_589, %c0_590] : memref<9x16x8xf32, #tpu.memory_space<vmem>>, vector<1x16x8xf32>
    %498 = vector.shape_cast %497 : vector<1x16x8xf32> to vector<16x8xf32>
    %cst_591 = arith.constant dense<0.000000e+00> : vector<16x128xf32>
    %499 = tpu.matmul %498, %277, %cst_591 {dimension_numbers = #tpu.dot_dimension_numbers<[1], [0], [0], [1], [0, 0, 1, 1], [], []>} : vector<16x8xf32>, vector<8x128xf32>, vector<16x128xf32> -> vector<16x128xf32>
    %500 = arith.addf %496, %499 : vector<16x128xf32>
    %c6_592 = arith.constant 6 : index
    %c0_593 = arith.constant 0 : index
    %c0_594 = arith.constant 0 : index
    %501 = vector.load %arg5[%c6_592, %c0_593, %c0_594] : memref<9x16x8xf32, #tpu.memory_space<vmem>>, vector<1x16x8xf32>
    %502 = vector.shape_cast %501 : vector<1x16x8xf32> to vector<16x8xf32>
    %cst_595 = arith.constant dense<0.000000e+00> : vector<16x128xf32>
    %503 = tpu.matmul %502, %323, %cst_595 {dimension_numbers = #tpu.dot_dimension_numbers<[1], [0], [0], [1], [0, 0, 1, 1], [], []>} : vector<16x8xf32>, vector<8x128xf32>, vector<16x128xf32> -> vector<16x128xf32>
    %504 = arith.addf %500, %503 : vector<16x128xf32>
    %c7_596 = arith.constant 7 : index
    %c0_597 = arith.constant 0 : index
    %c0_598 = arith.constant 0 : index
    %505 = vector.load %arg5[%c7_596, %c0_597, %c0_598] : memref<9x16x8xf32, #tpu.memory_space<vmem>>, vector<1x16x8xf32>
    %506 = vector.shape_cast %505 : vector<1x16x8xf32> to vector<16x8xf32>
    %cst_599 = arith.constant dense<0.000000e+00> : vector<16x128xf32>
    %507 = tpu.matmul %506, %346, %cst_599 {dimension_numbers = #tpu.dot_dimension_numbers<[1], [0], [0], [1], [0, 0, 1, 1], [], []>} : vector<16x8xf32>, vector<8x128xf32>, vector<16x128xf32> -> vector<16x128xf32>
    %508 = arith.addf %504, %507 : vector<16x128xf32>
    %c8_600 = arith.constant 8 : index
    %c0_601 = arith.constant 0 : index
    %c0_602 = arith.constant 0 : index
    %509 = vector.load %arg5[%c8_600, %c0_601, %c0_602] : memref<9x16x8xf32, #tpu.memory_space<vmem>>, vector<1x16x8xf32>
    %510 = vector.shape_cast %509 : vector<1x16x8xf32> to vector<16x8xf32>
    %cst_603 = arith.constant dense<0.000000e+00> : vector<16x128xf32>
    %511 = tpu.matmul %510, %369, %cst_603 {dimension_numbers = #tpu.dot_dimension_numbers<[1], [0], [0], [1], [0, 0, 1, 1], [], []>} : vector<16x8xf32>, vector<8x128xf32>, vector<16x128xf32> -> vector<16x128xf32>
    %512 = arith.addf %508, %511 : vector<16x128xf32>
    %513 = arith.maximumf %477, %512 : vector<16x128xf32>
    %514 = vector.broadcast %370 : vector<16x1xf32> to vector<16x128xf32>
    %515 = arith.addf %513, %514 : vector<16x128xf32>
    %cst_604 = arith.constant 0.000000e+00 : f32
    %516 = vector.broadcast %cst_604 : f32 to vector<16x128xf32>
    %517 = arith.maximumf %515, %516 : vector<16x128xf32>
    %c0_605 = arith.constant 0 : index
    %c0_606 = arith.constant 0 : index
    %518 = vector.load %arg17[%c0_605, %c0_606] : memref<16x128xf32, #tpu.memory_space<vmem>>, vector<16x128xf32>
    tpu.vector_store %arg17[%c0_605, %c0_606], %517 {strides = array<i32>} : memref<16x128xf32, #tpu.memory_space<vmem>>, vector<16x128xf32>,
    %c0_607 = arith.constant 0 : index
    %c0_608 = arith.constant 0 : index
    %519 = vector.load %arg17[%c0_607, %c0_608] : memref<16x128xf32, #tpu.memory_space<vmem>>, vector<1x128xf32>
    %c0_609 = arith.constant 0 : index
    %c0_610 = arith.constant 0 : index
    %c0_611 = arith.constant 0 : index
    %520 = vector.load %arg7[%c0_609, %c0_610, %c0_611] : memref<16x128x128xf32, #tpu.memory_space<vmem>>, vector<1x128x128xf32>
    %521 = vector.shape_cast %520 : vector<1x128x128xf32> to vector<128x128xf32>
    %cst_612 = arith.constant dense<0.000000e+00> : vector<1x128xf32>
    %522 = tpu.matmul %519, %521, %cst_612 {dimension_numbers = #tpu.dot_dimension_numbers<[1], [0], [0], [1], [0, 0, 1, 1], [], []>} : vector<1x128xf32>, vector<128x128xf32>, vector<1x128xf32> -> vector<1x128xf32>
    %c1_613 = arith.constant 1 : index
    %c0_614 = arith.constant 0 : index
    %523 = vector.load %arg17[%c1_613, %c0_614] : memref<16x128xf32, #tpu.memory_space<vmem>>, vector<1x128xf32>
    %c1_615 = arith.constant 1 : index
    %c0_616 = arith.constant 0 : index
    %c0_617 = arith.constant 0 : index
    %524 = vector.load %arg7[%c1_615, %c0_616, %c0_617] : memref<16x128x128xf32, #tpu.memory_space<vmem>>, vector<1x128x128xf32>
    %525 = vector.shape_cast %524 : vector<1x128x128xf32> to vector<128x128xf32>
    %cst_618 = arith.constant dense<0.000000e+00> : vector<1x128xf32>
    %526 = tpu.matmul %523, %525, %cst_618 {dimension_numbers = #tpu.dot_dimension_numbers<[1], [0], [0], [1], [0, 0, 1, 1], [], []>} : vector<1x128xf32>, vector<128x128xf32>, vector<1x128xf32> -> vector<1x128xf32>
    %527 = arith.addf %522, %526 : vector<1x128xf32>
    %c2_619 = arith.constant 2 : index
    %c0_620 = arith.constant 0 : index
    %528 = vector.load %arg17[%c2_619, %c0_620] : memref<16x128xf32, #tpu.memory_space<vmem>>, vector<1x128xf32>
    %c2_621 = arith.constant 2 : index
    %c0_622 = arith.constant 0 : index
    %c0_623 = arith.constant 0 : index
    %529 = vector.load %arg7[%c2_621, %c0_622, %c0_623] : memref<16x128x128xf32, #tpu.memory_space<vmem>>, vector<1x128x128xf32>
    %530 = vector.shape_cast %529 : vector<1x128x128xf32> to vector<128x128xf32>
    %cst_624 = arith.constant dense<0.000000e+00> : vector<1x128xf32>
    %531 = tpu.matmul %528, %530, %cst_624 {dimension_numbers = #tpu.dot_dimension_numbers<[1], [0], [0], [1], [0, 0, 1, 1], [], []>} : vector<1x128xf32>, vector<128x128xf32>, vector<1x128xf32> -> vector<1x128xf32>
    %532 = arith.addf %527, %531 : vector<1x128xf32>
    %c3_625 = arith.constant 3 : index
    %c0_626 = arith.constant 0 : index
    %533 = vector.load %arg17[%c3_625, %c0_626] : memref<16x128xf32, #tpu.memory_space<vmem>>, vector<1x128xf32>
    %c3_627 = arith.constant 3 : index
    %c0_628 = arith.constant 0 : index
    %c0_629 = arith.constant 0 : index
    %534 = vector.load %arg7[%c3_627, %c0_628, %c0_629] : memref<16x128x128xf32, #tpu.memory_space<vmem>>, vector<1x128x128xf32>
    %535 = vector.shape_cast %534 : vector<1x128x128xf32> to vector<128x128xf32>
    %cst_630 = arith.constant dense<0.000000e+00> : vector<1x128xf32>
    %536 = tpu.matmul %533, %535, %cst_630 {dimension_numbers = #tpu.dot_dimension_numbers<[1], [0], [0], [1], [0, 0, 1, 1], [], []>} : vector<1x128xf32>, vector<128x128xf32>, vector<1x128xf32> -> vector<1x128xf32>
    %537 = arith.addf %532, %536 : vector<1x128xf32>
    %c4_631 = arith.constant 4 : index
    %c0_632 = arith.constant 0 : index
    %538 = vector.load %arg17[%c4_631, %c0_632] : memref<16x128xf32, #tpu.memory_space<vmem>>, vector<1x128xf32>
    %c4_633 = arith.constant 4 : index
    %c0_634 = arith.constant 0 : index
    %c0_635 = arith.constant 0 : index
    %539 = vector.load %arg7[%c4_633, %c0_634, %c0_635] : memref<16x128x128xf32, #tpu.memory_space<vmem>>, vector<1x128x128xf32>
    %540 = vector.shape_cast %539 : vector<1x128x128xf32> to vector<128x128xf32>
    %cst_636 = arith.constant dense<0.000000e+00> : vector<1x128xf32>
    %541 = tpu.matmul %538, %540, %cst_636 {dimension_numbers = #tpu.dot_dimension_numbers<[1], [0], [0], [1], [0, 0, 1, 1], [], []>} : vector<1x128xf32>, vector<128x128xf32>, vector<1x128xf32> -> vector<1x128xf32>
    %542 = arith.addf %537, %541 : vector<1x128xf32>
    %c5_637 = arith.constant 5 : index
    %c0_638 = arith.constant 0 : index
    %543 = vector.load %arg17[%c5_637, %c0_638] : memref<16x128xf32, #tpu.memory_space<vmem>>, vector<1x128xf32>
    %c5_639 = arith.constant 5 : index
    %c0_640 = arith.constant 0 : index
    %c0_641 = arith.constant 0 : index
    %544 = vector.load %arg7[%c5_639, %c0_640, %c0_641] : memref<16x128x128xf32, #tpu.memory_space<vmem>>, vector<1x128x128xf32>
    %545 = vector.shape_cast %544 : vector<1x128x128xf32> to vector<128x128xf32>
    %cst_642 = arith.constant dense<0.000000e+00> : vector<1x128xf32>
    %546 = tpu.matmul %543, %545, %cst_642 {dimension_numbers = #tpu.dot_dimension_numbers<[1], [0], [0], [1], [0, 0, 1, 1], [], []>} : vector<1x128xf32>, vector<128x128xf32>, vector<1x128xf32> -> vector<1x128xf32>
    %547 = arith.addf %542, %546 : vector<1x128xf32>
    %c6_643 = arith.constant 6 : index
    %c0_644 = arith.constant 0 : index
    %548 = vector.load %arg17[%c6_643, %c0_644] : memref<16x128xf32, #tpu.memory_space<vmem>>, vector<1x128xf32>
    %c6_645 = arith.constant 6 : index
    %c0_646 = arith.constant 0 : index
    %c0_647 = arith.constant 0 : index
    %549 = vector.load %arg7[%c6_645, %c0_646, %c0_647] : memref<16x128x128xf32, #tpu.memory_space<vmem>>, vector<1x128x128xf32>
    %550 = vector.shape_cast %549 : vector<1x128x128xf32> to vector<128x128xf32>
    %cst_648 = arith.constant dense<0.000000e+00> : vector<1x128xf32>
    %551 = tpu.matmul %548, %550, %cst_648 {dimension_numbers = #tpu.dot_dimension_numbers<[1], [0], [0], [1], [0, 0, 1, 1], [], []>} : vector<1x128xf32>, vector<128x128xf32>, vector<1x128xf32> -> vector<1x128xf32>
    %552 = arith.addf %547, %551 : vector<1x128xf32>
    %c7_649 = arith.constant 7 : index
    %c0_650 = arith.constant 0 : index
    %553 = vector.load %arg17[%c7_649, %c0_650] : memref<16x128xf32, #tpu.memory_space<vmem>>, vector<1x128xf32>
    %c7_651 = arith.constant 7 : index
    %c0_652 = arith.constant 0 : index
    %c0_653 = arith.constant 0 : index
    %554 = vector.load %arg7[%c7_651, %c0_652, %c0_653] : memref<16x128x128xf32, #tpu.memory_space<vmem>>, vector<1x128x128xf32>
    %555 = vector.shape_cast %554 : vector<1x128x128xf32> to vector<128x128xf32>
    %cst_654 = arith.constant dense<0.000000e+00> : vector<1x128xf32>
    %556 = tpu.matmul %553, %555, %cst_654 {dimension_numbers = #tpu.dot_dimension_numbers<[1], [0], [0], [1], [0, 0, 1, 1], [], []>} : vector<1x128xf32>, vector<128x128xf32>, vector<1x128xf32> -> vector<1x128xf32>
    %557 = arith.addf %552, %556 : vector<1x128xf32>
    %c8_655 = arith.constant 8 : index
    %c0_656 = arith.constant 0 : index
    %558 = vector.load %arg17[%c8_655, %c0_656] : memref<16x128xf32, #tpu.memory_space<vmem>>, vector<1x128xf32>
    %c8_657 = arith.constant 8 : index
    %c0_658 = arith.constant 0 : index
    %c0_659 = arith.constant 0 : index
    %559 = vector.load %arg7[%c8_657, %c0_658, %c0_659] : memref<16x128x128xf32, #tpu.memory_space<vmem>>, vector<1x128x128xf32>
    %560 = vector.shape_cast %559 : vector<1x128x128xf32> to vector<128x128xf32>
    %cst_660 = arith.constant dense<0.000000e+00> : vector<1x128xf32>
    %561 = tpu.matmul %558, %560, %cst_660 {dimension_numbers = #tpu.dot_dimension_numbers<[1], [0], [0], [1], [0, 0, 1, 1], [], []>} : vector<1x128xf32>, vector<128x128xf32>, vector<1x128xf32> -> vector<1x128xf32>
    %562 = arith.addf %557, %561 : vector<1x128xf32>
    %c9 = arith.constant 9 : index
    %c0_661 = arith.constant 0 : index
    %563 = vector.load %arg17[%c9, %c0_661] : memref<16x128xf32, #tpu.memory_space<vmem>>, vector<1x128xf32>
    %c9_662 = arith.constant 9 : index
    %c0_663 = arith.constant 0 : index
    %c0_664 = arith.constant 0 : index
    %564 = vector.load %arg7[%c9_662, %c0_663, %c0_664] : memref<16x128x128xf32, #tpu.memory_space<vmem>>, vector<1x128x128xf32>
    %565 = vector.shape_cast %564 : vector<1x128x128xf32> to vector<128x128xf32>
    %cst_665 = arith.constant dense<0.000000e+00> : vector<1x128xf32>
    %566 = tpu.matmul %563, %565, %cst_665 {dimension_numbers = #tpu.dot_dimension_numbers<[1], [0], [0], [1], [0, 0, 1, 1], [], []>} : vector<1x128xf32>, vector<128x128xf32>, vector<1x128xf32> -> vector<1x128xf32>
    %567 = arith.addf %562, %566 : vector<1x128xf32>
    %c10 = arith.constant 10 : index
    %c0_666 = arith.constant 0 : index
    %568 = vector.load %arg17[%c10, %c0_666] : memref<16x128xf32, #tpu.memory_space<vmem>>, vector<1x128xf32>
    %c10_667 = arith.constant 10 : index
    %c0_668 = arith.constant 0 : index
    %c0_669 = arith.constant 0 : index
    %569 = vector.load %arg7[%c10_667, %c0_668, %c0_669] : memref<16x128x128xf32, #tpu.memory_space<vmem>>, vector<1x128x128xf32>
    %570 = vector.shape_cast %569 : vector<1x128x128xf32> to vector<128x128xf32>
    %cst_670 = arith.constant dense<0.000000e+00> : vector<1x128xf32>
    %571 = tpu.matmul %568, %570, %cst_670 {dimension_numbers = #tpu.dot_dimension_numbers<[1], [0], [0], [1], [0, 0, 1, 1], [], []>} : vector<1x128xf32>, vector<128x128xf32>, vector<1x128xf32> -> vector<1x128xf32>
    %572 = arith.addf %567, %571 : vector<1x128xf32>
    %c11 = arith.constant 11 : index
    %c0_671 = arith.constant 0 : index
    %573 = vector.load %arg17[%c11, %c0_671] : memref<16x128xf32, #tpu.memory_space<vmem>>, vector<1x128xf32>
    %c11_672 = arith.constant 11 : index
    %c0_673 = arith.constant 0 : index
    %c0_674 = arith.constant 0 : index
    %574 = vector.load %arg7[%c11_672, %c0_673, %c0_674] : memref<16x128x128xf32, #tpu.memory_space<vmem>>, vector<1x128x128xf32>
    %575 = vector.shape_cast %574 : vector<1x128x128xf32> to vector<128x128xf32>
    %cst_675 = arith.constant dense<0.000000e+00> : vector<1x128xf32>
    %576 = tpu.matmul %573, %575, %cst_675 {dimension_numbers = #tpu.dot_dimension_numbers<[1], [0], [0], [1], [0, 0, 1, 1], [], []>} : vector<1x128xf32>, vector<128x128xf32>, vector<1x128xf32> -> vector<1x128xf32>
    %577 = arith.addf %572, %576 : vector<1x128xf32>
    %c12 = arith.constant 12 : index
    %c0_676 = arith.constant 0 : index
    %578 = vector.load %arg17[%c12, %c0_676] : memref<16x128xf32, #tpu.memory_space<vmem>>, vector<1x128xf32>
    %c12_677 = arith.constant 12 : index
    %c0_678 = arith.constant 0 : index
    %c0_679 = arith.constant 0 : index
    %579 = vector.load %arg7[%c12_677, %c0_678, %c0_679] : memref<16x128x128xf32, #tpu.memory_space<vmem>>, vector<1x128x128xf32>
    %580 = vector.shape_cast %579 : vector<1x128x128xf32> to vector<128x128xf32>
    %cst_680 = arith.constant dense<0.000000e+00> : vector<1x128xf32>
    %581 = tpu.matmul %578, %580, %cst_680 {dimension_numbers = #tpu.dot_dimension_numbers<[1], [0], [0], [1], [0, 0, 1, 1], [], []>} : vector<1x128xf32>, vector<128x128xf32>, vector<1x128xf32> -> vector<1x128xf32>
    %582 = arith.addf %577, %581 : vector<1x128xf32>
    %c13 = arith.constant 13 : index
    %c0_681 = arith.constant 0 : index
    %583 = vector.load %arg17[%c13, %c0_681] : memref<16x128xf32, #tpu.memory_space<vmem>>, vector<1x128xf32>
    %c13_682 = arith.constant 13 : index
    %c0_683 = arith.constant 0 : index
    %c0_684 = arith.constant 0 : index
    %584 = vector.load %arg7[%c13_682, %c0_683, %c0_684] : memref<16x128x128xf32, #tpu.memory_space<vmem>>, vector<1x128x128xf32>
    %585 = vector.shape_cast %584 : vector<1x128x128xf32> to vector<128x128xf32>
    %cst_685 = arith.constant dense<0.000000e+00> : vector<1x128xf32>
    %586 = tpu.matmul %583, %585, %cst_685 {dimension_numbers = #tpu.dot_dimension_numbers<[1], [0], [0], [1], [0, 0, 1, 1], [], []>} : vector<1x128xf32>, vector<128x128xf32>, vector<1x128xf32> -> vector<1x128xf32>
    %587 = arith.addf %582, %586 : vector<1x128xf32>
    %c14 = arith.constant 14 : index
    %c0_686 = arith.constant 0 : index
    %588 = vector.load %arg17[%c14, %c0_686] : memref<16x128xf32, #tpu.memory_space<vmem>>, vector<1x128xf32>
    %c14_687 = arith.constant 14 : index
    %c0_688 = arith.constant 0 : index
    %c0_689 = arith.constant 0 : index
    %589 = vector.load %arg7[%c14_687, %c0_688, %c0_689] : memref<16x128x128xf32, #tpu.memory_space<vmem>>, vector<1x128x128xf32>
    %590 = vector.shape_cast %589 : vector<1x128x128xf32> to vector<128x128xf32>
    %cst_690 = arith.constant dense<0.000000e+00> : vector<1x128xf32>
    %591 = tpu.matmul %588, %590, %cst_690 {dimension_numbers = #tpu.dot_dimension_numbers<[1], [0], [0], [1], [0, 0, 1, 1], [], []>} : vector<1x128xf32>, vector<128x128xf32>, vector<1x128xf32> -> vector<1x128xf32>
    %592 = arith.addf %587, %591 : vector<1x128xf32>
    %c15 = arith.constant 15 : index
    %c0_691 = arith.constant 0 : index
    %593 = vector.load %arg17[%c15, %c0_691] : memref<16x128xf32, #tpu.memory_space<vmem>>, vector<1x128xf32>
    %c15_692 = arith.constant 15 : index
    %c0_693 = arith.constant 0 : index
    %c0_694 = arith.constant 0 : index
    %594 = vector.load %arg7[%c15_692, %c0_693, %c0_694] : memref<16x128x128xf32, #tpu.memory_space<vmem>>, vector<1x128x128xf32>
    %595 = vector.shape_cast %594 : vector<1x128x128xf32> to vector<128x128xf32>
    %cst_695 = arith.constant dense<0.000000e+00> : vector<1x128xf32>
    %596 = tpu.matmul %593, %595, %cst_695 {dimension_numbers = #tpu.dot_dimension_numbers<[1], [0], [0], [1], [0, 0, 1, 1], [], []>} : vector<1x128xf32>, vector<128x128xf32>, vector<1x128xf32> -> vector<1x128xf32>
    %597 = arith.addf %592, %596 : vector<1x128xf32>
    %c0_696 = arith.constant 0 : index
    %c0_697 = arith.constant 0 : index
    %598 = vector.load %arg8[%c0_696, %c0_697] : memref<1x128xf32, #tpu.memory_space<vmem>>, vector<1x128xf32>
    %599 = arith.addf %597, %598 : vector<1x128xf32>
    %cst_698 = arith.constant 0.000000e+00 : f32
    %600 = vector.broadcast %cst_698 : f32 to vector<1x128xf32>
    %601 = arith.maximumf %599, %600 : vector<1x128xf32>
    %c0_699 = arith.constant 0 : index
    %c0_700 = arith.constant 0 : index
    %602 = vector.load %arg9[%c0_699, %c0_700] : memref<128x128xf32, #tpu.memory_space<vmem>>, vector<128x128xf32>
    %cst_701 = arith.constant dense<0.000000e+00> : vector<1x128xf32>
    %603 = tpu.matmul %601, %602, %cst_701 {dimension_numbers = #tpu.dot_dimension_numbers<[1], [0], [0], [1], [0, 0, 1, 1], [], []>} : vector<1x128xf32>, vector<128x128xf32>, vector<1x128xf32> -> vector<1x128xf32>
    %c0_702 = arith.constant 0 : index
    %c0_703 = arith.constant 0 : index
    %604 = vector.load %arg10[%c0_702, %c0_703] : memref<1x128xf32, #tpu.memory_space<vmem>>, vector<1x128xf32>
    %605 = arith.addf %603, %604 : vector<1x128xf32>
    %cst_704 = arith.constant 0.000000e+00 : f32
    %606 = vector.broadcast %cst_704 : f32 to vector<1x128xf32>
    %607 = arith.maximumf %605, %606 : vector<1x128xf32>
    %c0_705 = arith.constant 0 : index
    %c0_706 = arith.constant 0 : index
    %608 = vector.load %arg11[%c0_705, %c0_706] : memref<128x128xf32, #tpu.memory_space<vmem>>, vector<128x128xf32>
    %cst_707 = arith.constant dense<0.000000e+00> : vector<1x128xf32>
    %609 = tpu.matmul %607, %608, %cst_707 {dimension_numbers = #tpu.dot_dimension_numbers<[1], [0], [0], [1], [0, 0, 1, 1], [], []>} : vector<1x128xf32>, vector<128x128xf32>, vector<1x128xf32> -> vector<1x128xf32>
    %c0_708 = arith.constant 0 : index
    %c0_709 = arith.constant 0 : index
    %610 = vector.load %arg12[%c0_708, %c0_709] : memref<1x128xf32, #tpu.memory_space<vmem>>, vector<1x128xf32>
    %611 = arith.addf %609, %610 : vector<1x128xf32>
    %cst_710 = arith.constant 0.000000e+00 : f32
    %612 = vector.broadcast %cst_710 : f32 to vector<1x128xf32>
    %613 = arith.maximumf %611, %612 : vector<1x128xf32>
    %c0_711 = arith.constant 0 : index
    %c0_712 = arith.constant 0 : index
    %614 = vector.load %arg13[%c0_711, %c0_712] : memref<1x128xf32, #tpu.memory_space<vmem>>, vector<1x128xf32>
    %615 = arith.mulf %613, %614 : vector<1x128xf32>
    %c0_713 = arith.constant 0 : index
    %c0_714 = arith.constant 0 : index
    %616 = vector.load %arg14[%c0_713, %c0_714] : memref<1x128xf32, #tpu.memory_space<vmem>>, vector<1x128xf32>
    %617 = arith.addf %615, %616 : vector<1x128xf32>
    %c0_715 = arith.constant 0 : index
    %c0_716 = arith.constant 0 : index
    %618 = vector.load %arg15[%c0_715, %c0_716] : memref<128x128xf32, #tpu.memory_space<vmem>>, vector<128x128xf32>
    %cst_717 = arith.constant dense<0.000000e+00> : vector<1x128xf32>
    %619 = tpu.matmul %617, %618, %cst_717 {dimension_numbers = #tpu.dot_dimension_numbers<[1], [0], [0], [1], [0, 0, 1, 1], [], []>} : vector<1x128xf32>, vector<128x128xf32>, vector<1x128xf32> -> vector<1x128xf32>
    %cst_718 = arith.constant 0.707106769 : f32
    %620 = vector.broadcast %cst_718 : f32 to vector<1x128xf32>
    %621 = arith.mulf %619, %620 : vector<1x128xf32>
    %622 = math.absf %621 : vector<1x128xf32>
    %cst_719 = arith.constant 0.327591091 : f32
    %623 = vector.broadcast %cst_719 : f32 to vector<1x128xf32>
    %624 = arith.mulf %623, %622 : vector<1x128xf32>
    %cst_720 = arith.constant 1.000000e+00 : f32
    %625 = vector.broadcast %cst_720 : f32 to vector<1x128xf32>
    %626 = arith.addf %625, %624 : vector<1x128xf32>
    %cst_721 = arith.constant 1.000000e+00 : f32
    %627 = vector.broadcast %cst_721 : f32 to vector<1x128xf32>
    %628 = arith.divf %627, %626 : vector<1x128xf32>
    %cst_722 = arith.constant 1.06140542 : f32
    %629 = vector.broadcast %cst_722 : f32 to vector<1x128xf32>
    %630 = arith.mulf %629, %628 : vector<1x128xf32>
    %cst_723 = arith.constant 1.45315206 : f32
    %631 = vector.broadcast %cst_723 : f32 to vector<1x128xf32>
    %632 = arith.subf %630, %631 : vector<1x128xf32>
    %633 = arith.mulf %632, %628 : vector<1x128xf32>
    %cst_724 = arith.constant 1.42141378 : f32
    %634 = vector.broadcast %cst_724 : f32 to vector<1x128xf32>
    %635 = arith.addf %633, %634 : vector<1x128xf32>
    %636 = arith.mulf %635, %628 : vector<1x128xf32>
    %cst_725 = arith.constant 0.284496725 : f32
    %637 = vector.broadcast %cst_725 : f32 to vector<1x128xf32>
    %638 = arith.subf %636, %637 : vector<1x128xf32>
    %639 = arith.mulf %638, %628 : vector<1x128xf32>
    %cst_726 = arith.constant 0.254829586 : f32
    %640 = vector.broadcast %cst_726 : f32 to vector<1x128xf32>
    %641 = arith.addf %639, %640 : vector<1x128xf32>
    %642 = arith.mulf %641, %628 : vector<1x128xf32>
    %cst_727 = arith.constant 0.000000e+00 : f32
    %643 = vector.broadcast %cst_727 : f32 to vector<1x128xf32>
    %644 = arith.subf %643, %622 : vector<1x128xf32>
    %645 = arith.mulf %644, %622 : vector<1x128xf32>
    %646 = math.exp %645 : vector<1x128xf32>
    %647 = arith.mulf %642, %646 : vector<1x128xf32>
    %cst_728 = arith.constant 1.000000e+00 : f32
    %648 = vector.broadcast %cst_728 : f32 to vector<1x128xf32>
    %649 = arith.subf %648, %647 : vector<1x128xf32>
    %cst_729 = arith.constant 0.000000e+00 : f32
    %650 = vector.broadcast %cst_729 : f32 to vector<1x128xf32>
    %651 = arith.cmpf oge, %621, %650 : vector<1x128xf32>
    %cst_730 = arith.constant 0.000000e+00 : f32
    %652 = vector.broadcast %cst_730 : f32 to vector<1x128xf32>
    %653 = arith.subf %652, %649 : vector<1x128xf32>
    %654 = arith.select %651, %649, %653 : vector<1x128xi1>, vector<1x128xf32>
    %c0_731 = arith.constant 0 : index
    %c0_732 = arith.constant 0 : index
    %655 = vector.load %arg16[%c0_731, %c0_732] : memref<1x128xf32, #tpu.memory_space<vmem>>, vector<1x128xf32>
    tpu.vector_store %arg16[%c0_731, %c0_732], %654 {strides = array<i32>} : memref<1x128xf32, #tpu.memory_space<vmem>>, vector<1x128xf32>,
    return
  }
  func.func @transform_0(%arg0: i32) -> (i32, i32, i32, i32, i32) {
    %c0_i32 = arith.constant 0 : i32
    %c0_i32_0 = arith.constant 0 : i32
    %c0_i32_1 = arith.constant 0 : i32
    %c0_i32_2 = arith.constant 0 : i32
    %c0_i32_3 = arith.constant 0 : i32
    %c0_i32_4 = arith.constant 0 : i32
    return %c0_i32, %c0_i32_0, %c0_i32_1, %c0_i32_2, %c0_i32_3 : i32, i32, i32, i32, i32
  }
  func.func @transform_1(%arg0: i32) -> (i32, i32) {
    %c0_i32 = arith.constant 0 : i32
    %c0_i32_0 = arith.constant 0 : i32
    %c0_i32_1 = arith.constant 0 : i32
    return %c0_i32, %c0_i32_0 : i32, i32
  }
  func.func @transform_2(%arg0: i32) -> (i32, i32) {
    %c0_i32 = arith.constant 0 : i32
    %c0_i32_0 = arith.constant 0 : i32
    %c0_i32_1 = arith.constant 0 : i32
    return %c0_i32, %c0_i32_0 : i32, i32
  }
  func.func @transform_3(%arg0: i32) -> (i32, i32, i32, i32) {
    %c0_i32 = arith.constant 0 : i32
    %c0_i32_0 = arith.constant 0 : i32
    %c0_i32_1 = arith.constant 0 : i32
    %c0_i32_2 = arith.constant 0 : i32
    %c0_i32_3 = arith.constant 0 : i32
    return %c0_i32, %c0_i32_0, %c0_i32_1, %c0_i32_2 : i32, i32, i32, i32
  }
  func.func @transform_4(%arg0: i32) -> (i32, i32, i32) {
    %c0_i32 = arith.constant 0 : i32
    %c0_i32_0 = arith.constant 0 : i32
    %c0_i32_1 = arith.constant 0 : i32
    %c0_i32_2 = arith.constant 0 : i32
    return %c0_i32, %c0_i32_0, %c0_i32_1 : i32, i32, i32
  }
  func.func @transform_5(%arg0: i32) -> (i32, i32) {
    %c0_i32 = arith.constant 0 : i32
    %c0_i32_0 = arith.constant 0 : i32
    %c0_i32_1 = arith.constant 0 : i32
    return %c0_i32, %c0_i32_0 : i32, i32
  }
  func.func @transform_6(%arg0: i32) -> (i32, i32, i32) {
    %c0_i32 = arith.constant 0 : i32
    %c0_i32_0 = arith.constant 0 : i32
    %c0_i32_1 = arith.constant 0 : i32
    %c0_i32_2 = arith.constant 0 : i32
    return %c0_i32, %c0_i32_0, %c0_i32_1 : i32, i32, i32
  }
  func.func @transform_7(%arg0: i32) -> (i32, i32) {
    %c0_i32 = arith.constant 0 : i32
    %c0_i32_0 = arith.constant 0 : i32
    %c0_i32_1 = arith.constant 0 : i32
    return %c0_i32, %c0_i32_0 : i32, i32
  }
  func.func @transform_8(%arg0: i32) -> (i32, i32) {
    %c0_i32 = arith.constant 0 : i32
    %c0_i32_0 = arith.constant 0 : i32
    %c0_i32_1 = arith.constant 0 : i32
    return %c0_i32, %c0_i32_0 : i32, i32
  }
  func.func @transform_9(%arg0: i32) -> (i32, i32) {
    %c0_i32 = arith.constant 0 : i32
    %c0_i32_0 = arith.constant 0 : i32
    %c0_i32_1 = arith.constant 0 : i32
    return %c0_i32, %c0_i32_0 : i32, i32
  }
  func.func @transform_10(%arg0: i32) -> (i32, i32) {
    %c0_i32 = arith.constant 0 : i32
    %c0_i32_0 = arith.constant 0 : i32
    %c0_i32_1 = arith.constant 0 : i32
    return %c0_i32, %c0_i32_0 : i32, i32
  }
  func.func @transform_11(%arg0: i32) -> (i32, i32) {
    %c0_i32 = arith.constant 0 : i32
    %c0_i32_0 = arith.constant 0 : i32
    %c0_i32_1 = arith.constant 0 : i32
    return %c0_i32, %c0_i32_0 : i32, i32
  }
  func.func @transform_12(%arg0: i32) -> (i32, i32) {
    %c0_i32 = arith.constant 0 : i32
    %c0_i32_0 = arith.constant 0 : i32
    %c0_i32_1 = arith.constant 0 : i32
    return %c0_i32, %c0_i32_0 : i32, i32
  }
  func.func @transform_13(%arg0: i32) -> (i32, i32) {
    %c0_i32 = arith.constant 0 : i32
    %c0_i32_0 = arith.constant 0 : i32
    %c0_i32_1 = arith.constant 0 : i32
    return %c0_i32, %c0_i32_0 : i32, i32
  }
  func.func @transform_14(%arg0: i32) -> (i32, i32) {
    %c0_i32 = arith.constant 0 : i32
    %c0_i32_0 = arith.constant 0 : i32
    %c0_i32_1 = arith.constant 0 : i32
    return %c0_i32, %c0_i32_0 : i32, i32
  }
  func.func @transform_15(%arg0: i32) -> (i32, i32) {
    %c0_i32 = arith.constant 0 : i32
    %c0_i32_0 = arith.constant 0 : i32
    %c0_i32_1 = arith.constant 0 : i32
    return %c0_i32, %c0_i32_0 : i32, i32
  }
}

</mosaic_0001>

<bundles_post_ra>
// kernel: vgg_forward.1
= control target key start
LH: loop header
LB: loop body
LE: loop exit
PB: predicated region body
PF: predicated region fallthrough
CT: control target
= control target key end

     0   :  { %v13877_v0 = vmov 0.0|0.0   ;;  %vm60_vm0 = vcmask 1042432   ;;  %vm13878_vm1 = vmmov 0   ;;  %v13879_v6 = vmov 0.0   ;;  %s16764_s0 = inlined_call_operand.vmem [shape: f32[4,4,4,27,128], index: 0, kind: input, shape index: {}]   ;;  %s16765_s1 = inlined_call_operand.vmem [shape: f32[8,27], index: 1, kind: input, shape index: {}]   ;;  %s16766_s2 = inlined_call_operand.vmem [shape: f32[8,1], index: 2, kind: input, shape index: {}]   ;;  %s16767_s5 = inlined_call_operand.vmem [shape: f32[16,1], index: 5, kind: input, shape index: {}]   ;;  %s16768_s4 = inlined_call_operand.vmem [shape: f32[9,16,8], index: 4, kind: input, shape index: {}]   ;;  %s16769_s3 = inlined_call_operand.vmem [shape: f32[4,4,1,128], index: 3, kind: input, shape index: {}]   ;;  %s16770_s6 = inlined_call_operand.vmem [shape: f32[16,128,128], index: 6, kind: input, shape index: {}]   ;;  %s16771_s8 = inlined_call_operand.vmem [shape: f32[128,128], index: 8, kind: input, shape index: {}]   ;;  %s16772_s10 = inlined_call_operand.vmem [shape: f32[128,128], index: 10, kind: input, shape index: {}]   ;;  %s16773_s7 = inlined_call_operand.vmem [shape: f32[1,128], index: 7, kind: input, shape index: {}]   ;;  %s16774_s14 = inlined_call_operand.vmem [shape: f32[128,128], index: 14, kind: input, shape index: {}]   ;;  %s16775_s9 = inlined_call_operand.vmem [shape: f32[1,128], index: 9, kind: input, shape index: {}]   ;;  %s16776_s11 = inlined_call_operand.vmem [shape: f32[1,128], index: 11, kind: input, shape index: {}]   ;;  %s16777_s12 = inlined_call_operand.vmem [shape: f32[1,128], index: 12, kind: input, shape index: {}]   ;;  %s16778_s13 = inlined_call_operand.vmem [shape: f32[1,128], index: 13, kind: input, shape index: {}]   ;;  %s16779_s15 = inlined_call_operand.vmem [shape: f32[1,128], index: 15, kind: output, shape index: {}]  }
   0x1   :  { %12897 = vmatprep.subr.bf16.mxu1 %v13877_v0  ;;  %v52_v1 = vld [vmem:[%s16764_s0] sm:$0xff]  ;;  %v53_v2 = vld [vmem:[%s16764_s0 + $0x8] sm:$0xff]  ;;  %v54_v3 = vld [vmem:[%s16764_s0 + $0x10] sm:$0xff]  ;;  %12925 = vmatprep.subr.bf16.mxu0 %v13877_v0  ;;  %v13880_v7 = vmov 0   ;;  %vm13881_vm2 = vmmov 1   ;;  %vm56_vm4 = vcmask 220160  }
   0x2   :  { %v12898_v4 = vpack.c.bf16 %v53_v2, %v52_v1  ;;  %v55_v5 = vld [vmem:[%s16764_s0 + $0x18] sm:$0x7]  ;;  %11356 = vmatprep.mubr.msk.f32.mxu1 %vm13878_vm1, %v13879_v6  ;;  %11400 = vmatprep.mubr.msk.f32.mxu0 %vm13878_vm1, %v13879_v6  ;;  %vm13981_vm3 = vmpackc.low %vm60_vm0, %vm13881_vm2  ;;  %v9858_v10 = vld [vmem:[%s16764_s0 + $0x20] sm:$0xff]  ;;  %vm5283_vm5 = vcmask 64512  }
   0x3   :  { %13870 = vset.pattern.permute.xlu0 %v13880_v7  ;;  %13871 = vset.pattern.permute.xlu1 %v13880_v7  ;;  %v12901_v8 = vpack.c.bf16 %v55_v5, %v54_v3  ;;  %v9859_v11 = vld [vmem:[%s16764_s0 + $0x28] sm:$0xff]  ;;  %v9877_v12 = vld [vmem:[%s16764_s0 + $0x80] sm:$0xff]  ;;  %v9879_v15 = vld [vmem:[%s16764_s0 + $0x90] sm:$0xff] }
   0x4   :  { %12899 = vmatpush3.bf16.msra.mxu1 %v12898_v4  ;;  %v9878_v13 = vld [vmem:[%s16764_s0 + $0x88] sm:$0xff]  ;;  %v14005_v16 = vld [vmem:[%s16765_s1] sm:$0xff]  ;;  %v12905_v17 = vpack.c.bf16 %v9859_v11, %v9858_v10  ;;  %v9880_v18 = vld [vmem:[%s16764_s0 + $0x98] sm:$0x7] }
   0x5   :  { %12900 = vmatprep.subr.bf16.mxu1 %v13877_v0  ;;  %v12926_v14 = vpack.c.bf16 %v9878_v13, %v9877_v12  ;;  %v9860_v19 = vld [vmem:[%s16764_s0 + $0x30] sm:$0xff]  ;;  %v9861_v20 = vld [vmem:[%s16764_s0 + $0x38] sm:$0x7]  ;;  %v12929_v21 = vpack.c.bf16 %v9880_v18, %v9879_v15  ;;  %v9889_v22 = vld [vmem:[%s16764_s0 + $0xc0] sm:$0xff] }
   0x6   :  { %v9890_v23 = vld [vmem:[%s16764_s0 + $0xc8] sm:$0xff]  ;;  %v12908_v24 = vpack.c.bf16 %v9861_v20, %v9860_v19  ;;  %v9864_v25 = vld [vmem:[%s16764_s0 + $0x40] sm:$0xff]  ;;  %v9891_v28 = vld [vmem:[%s16764_s0 + $0xd0] sm:$0xff] }
   0x7   :  { %12927 = vmatpush3.bf16.msra.mxu0 %v12926_v14  ;;  %v9865_v26 = vld [vmem:[%s16764_s0 + $0x48] sm:$0xff]  ;;  %v12940_v27 = vpack.c.bf16 %v9890_v23, %v9889_v22  ;;  %v9892_v29 = vld [vmem:[%s16764_s0 + $0xd8] sm:$0x7]  ;;  %v9866_v31 = vld [vmem:[%s16764_s0 + $0x50] sm:$0xff] }
   0x8   :  { %12903 = vmatpush3.bf16.msk.msra.mxu1 %vm13981_vm3, %v12901_v8  ;;  %12928 = vmatprep.subr.bf16.mxu0 %v13877_v0  ;;  %v12912_v30 = vpack.c.bf16 %v9865_v26, %v9864_v25  ;;  %v9867_v32 = vld [vmem:[%s16764_s0 + $0x58] sm:$0x7]  ;;  %v12943_v33 = vpack.c.bf16 %v9892_v29, %v9891_v28  ;;  %v9903_v34 = vld [vmem:[%s16764_s0 + $0x100] sm:$0xff]  ;;  %v9904_v35 = vld [vmem:[%s16764_s0 + $0x108] sm:$0xff] }
   0x9   :  { %12904 = vmatprep.subr.bf16.mxu1 %v13877_v0  ;;  %v12915_v36 = vpack.c.bf16 %v9867_v32, %v9866_v31  ;;  %v9870_v37 = vld [vmem:[%s16764_s0 + $0x60] sm:$0xff]  ;;  %v9871_v38 = vld [vmem:[%s16764_s0 + $0x68] sm:$0xff]  ;;  %v12954_v39 = vpack.c.bf16 %v9904_v35, %v9903_v34  ;;  %v9905_v40 = vld [vmem:[%s16764_s0 + $0x110] sm:$0xff] }
   0xa   :  { %v9906_v41 = vld [vmem:[%s16764_s0 + $0x118] sm:$0x7]  ;;  %v12919_v42 = vpack.c.bf16 %v9871_v38, %v9870_v37  ;;  %v9872_v43 = vld [vmem:[%s16764_s0 + $0x70] sm:$0xff]  ;;  %v9915_v46 = vld [vmem:[%s16764_s0 + $0x140] sm:$0xff] }
   0xb   :  { %11357 = vmatmul.mubr.msk.f32.vlgmr.msra.gmra.mrb[0].mxu1 %vm56_vm4, %v14005_v16  ;;  %12931 = vmatpush3.bf16.msk.msra.mxu0 %vm13981_vm3, %v12929_v21  ;;  %v9873_v44 = vld [vmem:[%s16764_s0 + $0x78] sm:$0x7]  ;;  %v12957_v45 = vpack.c.bf16 %v9906_v41, %v9905_v40  ;;  %v9916_v47 = vld [vmem:[%s16764_s0 + $0x148] sm:$0xff]  ;;  %v9883_v49 = vld [vmem:[%s16764_s0 + $0xa0] sm:$0xff] }
   0xc   :  { %12906 = vmatpush3.bf16.msra.mxu1 %v12905_v17  ;;  %11367 = vmatprep.mubr.msk.f32.mxu1 %vm13878_vm1, %v13879_v6  ;;  %v12922_v48 = vpack.c.bf16 %v9873_v44, %v9872_v43  ;;  %v9884_v50 = vld [vmem:[%s16764_s0 + $0xa8] sm:$0xff]  ;;  %v12968_v51 = vpack.c.bf16 %v9916_v47, %v9915_v46  ;;  %v9917_v52 = vld [vmem:[%s16764_s0 + $0x150] sm:$0xff]  ;;  %v9918_v53 = vld [vmem:[%s16764_s0 + $0x158] sm:$0x7] }
   0xd   :  { %12907 = vmatprep.subr.bf16.mxu1 %v13877_v0  ;;  %12939 = vmatprep.subr.bf16.mxu0 %v13877_v0  ;;  %v12933_v54 = vpack.c.bf16 %v9884_v50, %v9883_v49  ;;  %v9885_v55 = vld [vmem:[%s16764_s0 + $0xb0] sm:$0xff]  ;;  %v9886_v56 = vld [vmem:[%s16764_s0 + $0xb8] sm:$0x7]  ;;  %v12971_v57 = vpack.c.bf16 %v9918_v53, %v9917_v52  ;;  %v9929_v58 = vld [vmem:[%s16764_s0 + $0x180] sm:$0xff] }
   0xe   :  { %11401 = vmatmul.mubr.msk.f32.vlgmr.msra.gmra.mrb[0].mxu0 %vm56_vm4, %v14005_v16  ;;  %v9930_v59 = vld [vmem:[%s16764_s0 + $0x188] sm:$0xff]  ;;  %v12936_v60 = vpack.c.bf16 %v9886_v56, %v9885_v55  ;;  %v9895_v61 = vld [vmem:[%s16764_s0 + $0xe0] sm:$0xff]  ;;  %v9931_v2 = vld [vmem:[%s16764_s0 + $0x190] sm:$0xff] }
   0xf   :  { %12941 = vmatpush3.bf16.msra.mxu0 %v12940_v27  ;;  %11422 = vmatprep.mubr.msk.f32.mxu0 %vm13878_vm1, %v13879_v6  ;;  %v9896_v62 = vld [vmem:[%s16764_s0 + $0xe8] sm:$0xff]  ;;  %v12982_v63 = vpack.c.bf16 %v9930_v59, %v9929_v58  ;;  %v51_v1 = vld [vmem:[%s16766_s2] sm:$0xff]  ;;  %v9932_v3 = vld [vmem:[%s16764_s0 + $0x198] sm:$0x7] }
  0x10   :  { %12910 = vmatpush3.bf16.msk.msra.mxu1 %vm13981_vm3, %v12908_v24  ;;  %12942 = vmatprep.subr.bf16.mxu0 %v13877_v0  ;;  %v12947_v4 = vpack.c.bf16 %v9896_v62, %v9895_v61  ;;  %v9897_v5 = vld [vmem:[%s16764_s0 + $0xf0] sm:$0xff]  ;;  %v9898_v7 = vld [vmem:[%s16764_s0 + $0xf8] sm:$0x7]  ;;  %v12985_v8 = vpack.c.bf16 %v9932_v3, %v9931_v2  ;;  %v9941_v10 = vld [vmem:[%s16764_s0 + $0x1c0] sm:$0xff] }
  0x11   :  { %12911 = vmatprep.subr.bf16.mxu1 %v13877_v0  ;;  %373 = vperm.xlu0 %13870, %v51_v1   ;;  %v9942_v11 = vld [vmem:[%s16764_s0 + $0x1c8] sm:$0xff]  ;;  %v12950_v12 = vpack.c.bf16 %v9898_v7, %v9897_v5  ;;  %v9909_v13 = vld [vmem:[%s16764_s0 + $0x120] sm:$0xff]  ;;  %v9943_v17 = vld [vmem:[%s16764_s0 + $0x1d0] sm:$0xff] }
  0x12   :  { %v9910_v14 = vld [vmem:[%s16764_s0 + $0x128] sm:$0xff]  ;;  %v12996_v15 = vpack.c.bf16 %v9942_v11, %v9941_v10  ;;  %v9944_v18 = vld [vmem:[%s16764_s0 + $0x1d8] sm:$0x7]  ;;  %v9911_v20 = vld [vmem:[%s16764_s0 + $0x130] sm:$0xff] }
  0x13   :  { %11368 = vmatmul.mubr.msk.f32.vlgmr.msra.gmra.mrb[2].mxu1 %vm56_vm4, %v14005_v16  ;;  %12945 = vmatpush3.bf16.msk.msra.mxu0 %vm13981_vm3, %v12943_v33  ;;  %v12961_v19 = vpack.c.bf16 %v9910_v14, %v9909_v13  ;;  %v9912_v21 = vld [vmem:[%s16764_s0 + $0x138] sm:$0x7]  ;;  %v12999_v22 = vpack.c.bf16 %v9944_v18, %v9943_v17  ;;  %v9955_v23 = vld [vmem:[%s16764_s0 + $0x200] sm:$0xff]  ;;  %v9956_v24 = vld [vmem:[%s16764_s0 + $0x208] sm:$0xff] }
  0x14   :  { %12913 = vmatpush3.bf16.msra.mxu1 %v12912_v30  ;;  %11378 = vmatprep.mubr.msk.f32.mxu1 %vm13878_vm1, %v13879_v6  ;;  %v12964_v25 = vpack.c.bf16 %v9912_v21, %v9911_v20  ;;  %v9921_v26 = vld [vmem:[%s16764_s0 + $0x160] sm:$0xff]  ;;  %v9922_v27 = vld [vmem:[%s16764_s0 + $0x168] sm:$0xff]  ;;  %v13010_v28 = vpack.c.bf16 %v9956_v24, %v9955_v23  ;;  %v9957_v29 = vld [vmem:[%s16764_s0 + $0x210] sm:$0xff] }
  0x15   :  { %12914 = vmatprep.subr.bf16.mxu1 %v13877_v0  ;;  %12953 = vmatprep.subr.bf16.mxu0 %v13877_v0  ;;  %v9958_v30 = vld [vmem:[%s16764_s0 + $0x218] sm:$0x7]  ;;  %v12975_v31 = vpack.c.bf16 %v9922_v27, %v9921_v26  ;;  %v9923_v32 = vld [vmem:[%s16764_s0 + $0x170] sm:$0xff]  ;;  %v9967_v35 = vld [vmem:[%s16764_s0 + $0x240] sm:$0xff] }
  0x16   :  { %11423 = vmatmul.mubr.msk.f32.vlgmr.msra.gmra.mrb[2].mxu0 %vm56_vm4, %v14005_v16  ;;  %v9924_v33 = vld [vmem:[%s16764_s0 + $0x178] sm:$0x7]  ;;  %v13013_v34 = vpack.c.bf16 %v9958_v30, %v9957_v29  ;;  %v9935_v38 = vld [vmem:[%s16764_s0 + $0x1a0] sm:$0xff]  ;;  %v9969_v41 = vld [vmem:[%s16764_s0 + $0x250] sm:$0xff] }
  0x17   :  { %12955 = vmatpush3.bf16.msra.mxu0 %v12954_v39  ;;  %11444 = vmatprep.mubr.msk.f32.mxu0 %vm13878_vm1, %v13879_v6  ;;  %v12978_v37 = vpack.c.bf16 %v9924_v33, %v9923_v32  ;;  %v9936_v39 = vld [vmem:[%s16764_s0 + $0x1a8] sm:$0xff]  ;;  %v9937_v44 = vld [vmem:[%s16764_s0 + $0x1b0] sm:$0xff]  ;;  %v9981_v47 = vld [vmem:[%s16764_s0 + $0x280] sm:$0xff] }
  0x18   :  { %12917 = vmatpush3.bf16.msk.msra.mxu1 %vm13981_vm3, %v12915_v36  ;;  %12956 = vmatprep.subr.bf16.mxu0 %v13877_v0  ;;  %v9968_v36 = vld [vmem:[%s16764_s0 + $0x248] sm:$0xff]  ;;  %v12989_v43 = vpack.c.bf16 %v9936_v39, %v9935_v38  ;;  %v9947_v50 = vld [vmem:[%s16764_s0 + $0x1e0] sm:$0xff]  ;;  %v9983_v53 = vld [vmem:[%s16764_s0 + $0x290] sm:$0xff] }
  0x19   :  { %12918 = vmatprep.subr.bf16.mxu1 %v13877_v0  ;;  %v13024_v40 = vpack.c.bf16 %v9968_v36, %v9967_v35  ;;  %v9949_v56 = vld [vmem:[%s16764_s0 + $0x1f0] sm:$0xff]  ;;  %v9993_v59 = vld [vmem:[%s16764_s0 + $0x2c0] sm:$0xff]  ;;  %v9996_v3 = vld [vmem:[%s16764_s0 + $0x2d8] sm:$0x7] }
  0x1a   :  { %v9961_v62 = vld [vmem:[%s16764_s0 + $0x220] sm:$0xff]  ;;  %v9995_v2 = vld [vmem:[%s16764_s0 + $0x2d0] sm:$0xff]  ;;  %v9964_v7 = vld [vmem:[%s16764_s0 + $0x238] sm:$0x7] }
  0x1b   :  { %11379 = vmatmul.mubr.msk.f32.vlgmr.msra.gmra.mrb[4].mxu1 %vm56_vm4, %v14005_v16  ;;  %12959 = vmatpush3.bf16.msk.msra.mxu0 %vm13981_vm3, %v12957_v45  ;;  %v9938_v45 = vld [vmem:[%s16764_s0 + $0x1b8] sm:$0x7]  ;;  %v9963_v5 = vld [vmem:[%s16764_s0 + $0x230] sm:$0xff]  ;;  %v10007_v10 = vld [vmem:[%s16764_s0 + $0x300] sm:$0xff] }
  0x1c   :  { %12920 = vmatpush3.bf16.msra.mxu1 %v12919_v42  ;;  %11389 = vmatprep.mubr.msk.f32.mxu1 %vm13878_vm1, %v13879_v6  ;;  %v9970_v42 = vld [vmem:[%s16764_s0 + $0x258] sm:$0x7]  ;;  %v12992_v49 = vpack.c.bf16 %v9938_v45, %v9937_v44  ;;  %v10008_v11 = vld [vmem:[%s16764_s0 + $0x308] sm:$0xff]  ;;  %v9973_v13 = vld [vmem:[%s16764_s0 + $0x260] sm:$0xff] }
  0x1d   :  { %12921 = vmatprep.subr.bf16.mxu1 %v13877_v0  ;;  %12967 = vmatprep.subr.bf16.mxu0 %v13877_v0  ;;  %v13027_v46 = vpack.c.bf16 %v9970_v42, %v9969_v41  ;;  %v9974_v14 = vld [vmem:[%s16764_s0 + $0x268] sm:$0xff]  ;;  %v10009_v17 = vld [vmem:[%s16764_s0 + $0x310] sm:$0xff]  ;;  %v10010_v18 = vld [vmem:[%s16764_s0 + $0x318] sm:$0x7] }
  0x1e   :  { %11445 = vmatmul.mubr.msk.f32.vlgmr.msra.gmra.mrb[4].mxu0 %vm56_vm4, %v14005_v16  ;;  %v9975_v20 = vld [vmem:[%s16764_s0 + $0x270] sm:$0xff]  ;;  %v9976_v21 = vld [vmem:[%s16764_s0 + $0x278] sm:$0x7]  ;;  %v10019_v23 = vld [vmem:[%s16764_s0 + $0x340] sm:$0xff] }
  0x1f   :  { %12969 = vmatpush3.bf16.msra.mxu0 %v12968_v51  ;;  %11466 = vmatprep.mubr.msk.f32.mxu0 %vm13878_vm1, %v13879_v6  ;;  %v9948_v51 = vld [vmem:[%s16764_s0 + $0x1e8] sm:$0xff]  ;;  %v9987_v26 = vld [vmem:[%s16764_s0 + $0x2a0] sm:$0xff]  ;;  %v10021_v29 = vld [vmem:[%s16764_s0 + $0x350] sm:$0xff] }
  0x20   :  { %12924 = vmatpush3.bf16.msk.msra.mxu1 %vm13981_vm3, %v12922_v48  ;;  %12970 = vmatprep.subr.bf16.mxu0 %v13877_v0  ;;  %v9982_v48 = vld [vmem:[%s16764_s0 + $0x288] sm:$0xff]  ;;  %v13003_v55 = vpack.c.bf16 %v9948_v51, %v9947_v50  ;;  %v10022_v30 = vld [vmem:[%s16764_s0 + $0x358] sm:$0x7]  ;;  %v9989_v32 = vld [vmem:[%s16764_s0 + $0x2b0] sm:$0xff] }
  0x21   :  { %12932 = vmatprep.subr.bf16.mxu1 %v13877_v0  ;;  %v13038_v52 = vpack.c.bf16 %v9982_v48, %v9981_v47  ;;  %v10020_v24 = vld [vmem:[%s16764_s0 + $0x348] sm:$0xff]  ;;  %v9990_v33 = vld [vmem:[%s16764_s0 + $0x2b8] sm:$0x7]  ;;  %v10033_v35 = vld [vmem:[%s16764_s0 + $0x380] sm:$0xff] }
  0x22   :  { %v9988_v27 = vld [vmem:[%s16764_s0 + $0x2a8] sm:$0xff]  ;;  %v9999_v38 = vld [vmem:[%s16764_s0 + $0x2e0] sm:$0xff]  ;;  %v10035_v41 = vld [vmem:[%s16764_s0 + $0x390] sm:$0xff] }
  0x23   :  { %11390 = vmatmul.mubr.msk.f32.vlgmr.msra.gmra.mrb[6].mxu1 %vm56_vm4, %v14005_v16  ;;  %12973 = vmatpush3.bf16.msk.msra.mxu0 %vm13981_vm3, %v12971_v57  ;;  %v9950_v57 = vld [vmem:[%s16764_s0 + $0x1f8] sm:$0x7]  ;;  %v10034_v36 = vld [vmem:[%s16764_s0 + $0x388] sm:$0xff]  ;;  %v10001_v45 = vld [vmem:[%s16764_s0 + $0x2f0] sm:$0xff] }
  0x24   :  { %12934 = vmatpush3.bf16.msra.mxu1 %v12933_v54  ;;  %11411 = vmatprep.mubr.msk.f32.mxu1 %vm13878_vm1, %v13879_v6  ;;  %v9984_v54 = vld [vmem:[%s16764_s0 + $0x298] sm:$0x7]  ;;  %v13006_v61 = vpack.c.bf16 %v9950_v57, %v9949_v56  ;;  %v10000_v39 = vld [vmem:[%s16764_s0 + $0x2e8] sm:$0xff]  ;;  %v10045_v48 = vld [vmem:[%s16764_s0 + $0x3c0] sm:$0xff] }
  0x25   :  { %12935 = vmatprep.subr.bf16.mxu1 %v13877_v0  ;;  %12981 = vmatprep.subr.bf16.mxu0 %v13877_v0  ;;  %v13041_v58 = vpack.c.bf16 %v9984_v54, %v9983_v53  ;;  %v10036_v42 = vld [vmem:[%s16764_s0 + $0x398] sm:$0x7]  ;;  %v13059_v44 = vpack.c.bf16 %v10000_v39, %v9999_v38  ;;  %v10013_v51 = vld [vmem:[%s16764_s0 + $0x320] sm:$0xff]  ;;  %v10047_v54 = vld [vmem:[%s16764_s0 + $0x3d0] sm:$0xff] }
  0x26   :  { %11467 = vmatmul.mubr.msk.f32.vlgmr.msra.gmra.mrb[6].mxu0 %vm56_vm4, %v14005_v16  ;;  %v13097_v47 = vpack.c.bf16 %v10036_v42, %v10035_v41  ;;  %v10015_v57 = vld [vmem:[%s16764_s0 + $0x330] sm:$0xff]  ;;  %v10065_v39 = vld [vmem:[%s16764_s0 + $0x420] sm:$0xff] }
  0x27   :  { %12983 = vmatpush3.bf16.msra.mxu0 %v12982_v63  ;;  %11488 = vmatprep.mubr.msk.f32.mxu0 %vm13878_vm1, %v13879_v6  ;;  %v9962_v63 = vld [vmem:[%s16764_s0 + $0x228] sm:$0xff]  ;;  %v10099_v42 = vld [vmem:[%s16764_s0 + $0x4d0] sm:$0xff] }
  0x28   :  { %12938 = vmatpush3.bf16.msk.msra.mxu1 %vm13981_vm3, %v12936_v60  ;;  %12984 = vmatprep.subr.bf16.mxu0 %v13877_v0  ;;  %v9994_v60 = vld [vmem:[%s16764_s0 + $0x2c8] sm:$0xff] }
  0x29   :  { %12946 = vmatprep.subr.bf16.mxu1 %v13877_v0  ;;  %v13052_v1 = vpack.c.bf16 %v9994_v60, %v9993_v59  ;;  %v10059_v60 = vld [vmem:[%s16764_s0 + $0x400] sm:$0xff] }
  0x2b   :  { %11412 = vmatmul.mubr.msk.f32.vlgmr.msra.gmra.mrb[8].mxu1 %vm56_vm4, %v14005_v16  ;;  %12987 = vmatpush3.bf16.msk.msra.mxu0 %vm13981_vm3, %v12985_v8  ;;  %v13055_v8 = vpack.c.bf16 %v9996_v3, %v9995_v2  ;;  %v10061_v3 = vld [vmem:[%s16764_s0 + $0x410] sm:$0xff] }
  0x2c   :  { %12948 = vmatpush3.bf16.msra.mxu1 %v12947_v4  ;;  %11433 = vmatprep.mubr.msk.f32.mxu1 %vm13878_vm1, %v13879_v6  ;;  %v13017_v4 = vpack.c.bf16 %v9962_v63, %v9961_v62  ;;  %v10025_v63 = vld [vmem:[%s16764_s0 + $0x360] sm:$0xff] }
  0x2d   :  { %12949 = vmatprep.subr.bf16.mxu1 %v13877_v0  ;;  %12995 = vmatprep.subr.bf16.mxu0 %v13877_v0 }
  0x2e   :  { %11489 = vmatmul.mubr.msk.f32.vlgmr.msra.gmra.mrb[8].mxu0 %vm56_vm4, %v14005_v16 }
  0x2f   :  { %12997 = vmatpush3.bf16.msra.mxu0 %v12996_v15  ;;  %11510 = vmatprep.mubr.msk.f32.mxu0 %vm13878_vm1, %v13879_v6  ;;  %v13066_v15 = vpack.c.bf16 %v10008_v11, %v10007_v10  ;;  %v10071_v11 = vld [vmem:[%s16764_s0 + $0x440] sm:$0xff] }
  0x30   :  { %12952 = vmatpush3.bf16.msk.msra.mxu1 %vm13981_vm3, %v12950_v12  ;;  %12998 = vmatprep.subr.bf16.mxu0 %v13877_v0  ;;  %v13020_v12 = vpack.c.bf16 %v9964_v7, %v9963_v5  ;;  %v10027_v7 = vld [vmem:[%s16764_s0 + $0x370] sm:$0xff] }
  0x31   :  { %12960 = vmatprep.subr.bf16.mxu1 %v13877_v0 }
  0x33   :  { %11434 = vmatmul.mubr.msk.f32.vlgmr.msra.gmra.mrb[10].mxu1 %vm56_vm4, %v14005_v16  ;;  %13001 = vmatpush3.bf16.msk.msra.mxu0 %vm13981_vm3, %v12999_v22  ;;  %v13069_v22 = vpack.c.bf16 %v10010_v18, %v10009_v17  ;;  %v10073_v18 = vld [vmem:[%s16764_s0 + $0x450] sm:$0xff] }
  0x34   :  { %12962 = vmatpush3.bf16.msra.mxu1 %v12961_v19  ;;  %11455 = vmatprep.mubr.msk.f32.mxu1 %vm13878_vm1, %v13879_v6  ;;  %v13031_v19 = vpack.c.bf16 %v9974_v14, %v9973_v13  ;;  %v10039_v14 = vld [vmem:[%s16764_s0 + $0x3a0] sm:$0xff] }
  0x35   :  { %12963 = vmatprep.subr.bf16.mxu1 %v13877_v0  ;;  %13009 = vmatprep.subr.bf16.mxu0 %v13877_v0 }
  0x36   :  { %11511 = vmatmul.mubr.msk.f32.vlgmr.msra.gmra.mrb[10].mxu0 %vm56_vm4, %v14005_v16 }
  0x37   :  { %13011 = vmatpush3.bf16.msra.mxu0 %v13010_v28  ;;  %11532 = vmatprep.mubr.msk.f32.mxu0 %vm13878_vm1, %v13879_v6  ;;  %v13080_v28 = vpack.c.bf16 %v10020_v24, %v10019_v23  ;;  %v10085_v24 = vld [vmem:[%s16764_s0 + $0x480] sm:$0xff] }
  0x38   :  { %12966 = vmatpush3.bf16.msk.msra.mxu1 %vm13981_vm3, %v12964_v25  ;;  %13012 = vmatprep.subr.bf16.mxu0 %v13877_v0  ;;  %v13034_v25 = vpack.c.bf16 %v9976_v21, %v9975_v20  ;;  %v10041_v21 = vld [vmem:[%s16764_s0 + $0x3b0] sm:$0xff] }
  0x39   :  { %12974 = vmatprep.subr.bf16.mxu1 %v13877_v0 }
  0x3b   :  { %11456 = vmatmul.mubr.msk.f32.vlgmr.msra.gmra.mrb[12].mxu1 %vm56_vm4, %v14005_v16  ;;  %13015 = vmatpush3.bf16.msk.msra.mxu0 %vm13981_vm3, %v13013_v34  ;;  %v13083_v34 = vpack.c.bf16 %v10022_v30, %v10021_v29  ;;  %v10087_v30 = vld [vmem:[%s16764_s0 + $0x490] sm:$0xff] }
  0x3c   :  { %12976 = vmatpush3.bf16.msra.mxu1 %v12975_v31  ;;  %11477 = vmatprep.mubr.msk.f32.mxu1 %vm13878_vm1, %v13879_v6  ;;  %v13045_v31 = vpack.c.bf16 %v9988_v27, %v9987_v26  ;;  %v10051_v27 = vld [vmem:[%s16764_s0 + $0x3e0] sm:$0xff] }
  0x3d   :  { %12977 = vmatprep.subr.bf16.mxu1 %v13877_v0  ;;  %13023 = vmatprep.subr.bf16.mxu0 %v13877_v0 }
  0x3e   :  { %11533 = vmatmul.mubr.msk.f32.vlgmr.msra.gmra.mrb[12].mxu0 %vm56_vm4, %v14005_v16 }
  0x3f   :  { %13025 = vmatpush3.bf16.msra.mxu0 %v13024_v40  ;;  %11554 = vmatprep.mubr.msk.f32.mxu0 %vm13878_vm1, %v13879_v6  ;;  %v13094_v40 = vpack.c.bf16 %v10034_v36, %v10033_v35  ;;  %v10097_v36 = vld [vmem:[%s16764_s0 + $0x4c0] sm:$0xff] }
  0x40   :  { %12980 = vmatpush3.bf16.msk.msra.mxu1 %vm13981_vm3, %v12978_v37  ;;  %13026 = vmatprep.subr.bf16.mxu0 %v13877_v0  ;;  %v13048_v37 = vpack.c.bf16 %v9990_v33, %v9989_v32  ;;  %v10053_v33 = vld [vmem:[%s16764_s0 + $0x3f0] sm:$0xff] }
  0x41   :  { %12988 = vmatprep.subr.bf16.mxu1 %v13877_v0 }
  0x43   :  { %11478 = vmatmul.mubr.msk.f32.vlgmr.msra.gmra.mrb[14].mxu1 %vm56_vm4, %v14005_v16  ;;  %13029 = vmatpush3.bf16.msk.msra.mxu0 %vm13981_vm3, %v13027_v46  ;;  %v10002_v46 = vld [vmem:[%s16764_s0 + $0x2f8] sm:$0x7] }
  0x44   :  { %12990 = vmatpush3.bf16.msra.mxu1 %v12989_v43  ;;  %11499 = vmatprep.mubr.msk.f32.mxu1 %vm13878_vm1, %v13879_v6  ;;  %v5276_v43 = vld [vmem:[%s16767_s5] sm:$0xff]  ;;  %v13062_v50 = vpack.c.bf16 %v10002_v46, %v10001_v45  ;;  %v10067_v45 = vld [vmem:[%s16764_s0 + $0x430] sm:$0xff]  ;;  %v10068_v46 = vld [vmem:[%s16764_s0 + $0x438] sm:$0x7] }
  0x45   :  { %12991 = vmatprep.subr.bf16.mxu1 %v13877_v0  ;;  %13037 = vmatprep.subr.bf16.mxu0 %v13877_v0 }
  0x46   :  { %11555 = vmatmul.mubr.msk.f32.vlgmr.msra.gmra.mrb[14].mxu0 %vm56_vm4, %v14005_v16  ;;  %8123 = vperm.xlu0 %13870, %v5276_v43   ;;  %v10100_v43 = vld [vmem:[%s16764_s0 + $0x4d8] sm:$0x7] }
  0x47   :  { %13039 = vmatpush3.bf16.msra.mxu0 %v13038_v52  ;;  %11576 = vmatprep.mubr.msk.f32.mxu0 %vm13878_vm1, %v13879_v6  ;;  %v10014_v52 = vld [vmem:[%s16764_s0 + $0x328] sm:$0xff] }
  0x48   :  { %12994 = vmatpush3.bf16.msk.msra.mxu1 %vm13981_vm3, %v12992_v49  ;;  %13040 = vmatprep.subr.bf16.mxu0 %v13877_v0  ;;  %v10046_v49 = vld [vmem:[%s16764_s0 + $0x3c8] sm:$0xff]  ;;  %v13073_v56 = vpack.c.bf16 %v10014_v52, %v10013_v51  ;;  %v10077_v51 = vld [vmem:[%s16764_s0 + $0x460] sm:$0xff] }
  0x49   :  { %13002 = vmatprep.subr.bf16.mxu1 %v13877_v0  ;;  %v13108_v53 = vpack.c.bf16 %v10046_v49, %v10045_v48  ;;  %v10111_v48 = vld [vmem:[%s16764_s0 + $0x500] sm:$0xff]  ;;  %v10112_v49 = vld [vmem:[%s16764_s0 + $0x508] sm:$0xff] }
  0x4a   :  { %v10078_v52 = vld [vmem:[%s16764_s0 + $0x468] sm:$0xff] }
  0x4b   :  { %11500 = vmatmul.mubr.msk.f32.vlgmr.msra.gmra.mrb[16].mxu1 %vm56_vm4, %v14005_v16  ;;  %13043 = vmatpush3.bf16.msk.msra.mxu0 %vm13981_vm3, %v13041_v58  ;;  %v10016_v58 = vld [vmem:[%s16764_s0 + $0x338] sm:$0x7] }
  0x4c   :  { %13004 = vmatpush3.bf16.msra.mxu1 %v13003_v55  ;;  %11521 = vmatprep.mubr.msk.f32.mxu1 %vm13878_vm1, %v13879_v6  ;;  %v10048_v55 = vld [vmem:[%s16764_s0 + $0x3d8] sm:$0x7]  ;;  %v13076_v62 = vpack.c.bf16 %v10016_v58, %v10015_v57  ;;  %v10079_v57 = vld [vmem:[%s16764_s0 + $0x470] sm:$0xff] }
  0x4d   :  { %13005 = vmatprep.subr.bf16.mxu1 %v13877_v0  ;;  %13051 = vmatprep.subr.bf16.mxu0 %v13877_v0  ;;  %v13111_v59 = vpack.c.bf16 %v10048_v55, %v10047_v54  ;;  %v10113_v54 = vld [vmem:[%s16764_s0 + $0x510] sm:$0xff]  ;;  %v10114_v55 = vld [vmem:[%s16764_s0 + $0x518] sm:$0x7] }
  0x4e   :  { %11577 = vmatmul.mubr.msk.f32.vlgmr.msra.gmra.mrb[16].mxu0 %vm56_vm4, %v14005_v16  ;;  %v10080_v58 = vld [vmem:[%s16764_s0 + $0x478] sm:$0x7] }
  0x4f   :  { %13053 = vmatpush3.bf16.msra.mxu0 %v13052_v1  ;;  %11598 = vmatprep.mubr.msk.f32.mxu0 %vm13878_vm1, %v13879_v6  ;;  %v10026_v1 = vld [vmem:[%s16764_s0 + $0x368] sm:$0xff] }
  0x50   :  { %13008 = vmatpush3.bf16.msk.msra.mxu1 %vm13981_vm3, %v13006_v61  ;;  %13054 = vmatprep.subr.bf16.mxu0 %v13877_v0  ;;  %v10060_v61 = vld [vmem:[%s16764_s0 + $0x408] sm:$0xff]  ;;  %v13087_v5 = vpack.c.bf16 %v10026_v1, %v10025_v63  ;;  %v10091_v63 = vld [vmem:[%s16764_s0 + $0x4a0] sm:$0xff] }
  0x51   :  { %13016 = vmatprep.subr.bf16.mxu1 %v13877_v0  ;;  %v13122_v2 = vpack.c.bf16 %v10060_v61, %v10059_v60  ;;  %v10123_v60 = vld [vmem:[%s16764_s0 + $0x540] sm:$0xff]  ;;  %v10124_v61 = vld [vmem:[%s16764_s0 + $0x548] sm:$0xff] }
  0x52   :  { %v10092_v1 = vld [vmem:[%s16764_s0 + $0x4a8] sm:$0xff] }
  0x53   :  { %11522 = vmatmul.mubr.msk.f32.vlgmr.msra.gmra.mrb[18].mxu1 %vm56_vm4, %v14005_v16  ;;  %13057 = vmatpush3.bf16.msk.msra.mxu0 %vm13981_vm3, %v13055_v8  ;;  %v10028_v8 = vld [vmem:[%s16764_s0 + $0x378] sm:$0x7] }
  0x54   :  { %13018 = vmatpush3.bf16.msra.mxu1 %v13017_v4  ;;  %11543 = vmatprep.mubr.msk.f32.mxu1 %vm13878_vm1, %v13879_v6  ;;  %v10062_v4 = vld [vmem:[%s16764_s0 + $0x418] sm:$0x7]  ;;  %v13090_v13 = vpack.c.bf16 %v10028_v8, %v10027_v7  ;;  %v10093_v7 = vld [vmem:[%s16764_s0 + $0x4b0] sm:$0xff] }
  0x55   :  { %13019 = vmatprep.subr.bf16.mxu1 %v13877_v0  ;;  %13065 = vmatprep.subr.bf16.mxu0 %v13877_v0  ;;  %v13125_v10 = vpack.c.bf16 %v10062_v4, %v10061_v3  ;;  %v10125_v3 = vld [vmem:[%s16764_s0 + $0x550] sm:$0xff]  ;;  %v10126_v4 = vld [vmem:[%s16764_s0 + $0x558] sm:$0x7] }
  0x56   :  { %11599 = vmatmul.mubr.msk.f32.vlgmr.msra.gmra.mrb[18].mxu0 %vm56_vm4, %v14005_v16  ;;  %v10094_v8 = vld [vmem:[%s16764_s0 + $0x4b8] sm:$0x7] }
  0x57   :  { %13067 = vmatpush3.bf16.msra.mxu0 %v13066_v15  ;;  %11620 = vmatprep.mubr.msk.f32.mxu0 %vm13878_vm1, %v13879_v6  ;;  %v10040_v15 = vld [vmem:[%s16764_s0 + $0x3a8] sm:$0xff] }
  0x58   :  { %13022 = vmatpush3.bf16.msk.msra.mxu1 %vm13981_vm3, %v13020_v12  ;;  %13068 = vmatprep.subr.bf16.mxu0 %v13877_v0  ;;  %v10072_v12 = vld [vmem:[%s16764_s0 + $0x448] sm:$0xff]  ;;  %v13101_v20 = vpack.c.bf16 %v10040_v15, %v10039_v14  ;;  %v10103_v14 = vld [vmem:[%s16764_s0 + $0x4e0] sm:$0xff] }
  0x59   :  { %13030 = vmatprep.subr.bf16.mxu1 %v13877_v0  ;;  %v13136_v17 = vpack.c.bf16 %v10072_v12, %v10071_v11  ;;  %v10137_v11 = vld [vmem:[%s16764_s0 + $0x580] sm:$0xff]  ;;  %v10138_v12 = vld [vmem:[%s16764_s0 + $0x588] sm:$0xff] }
  0x5a   :  { %v10104_v15 = vld [vmem:[%s16764_s0 + $0x4e8] sm:$0xff] }
  0x5b   :  { %11544 = vmatmul.mubr.msk.f32.vlgmr.msra.gmra.mrb[20].mxu1 %vm56_vm4, %v14005_v16  ;;  %13071 = vmatpush3.bf16.msk.msra.mxu0 %vm13981_vm3, %v13069_v22  ;;  %v10042_v22 = vld [vmem:[%s16764_s0 + $0x3b8] sm:$0x7] }
  0x5c   :  { %13032 = vmatpush3.bf16.msra.mxu1 %v13031_v19  ;;  %11565 = vmatprep.mubr.msk.f32.mxu1 %vm13878_vm1, %v13879_v6  ;;  %v10074_v19 = vld [vmem:[%s16764_s0 + $0x458] sm:$0x7]  ;;  %v13104_v26 = vpack.c.bf16 %v10042_v22, %v10041_v21  ;;  %v10105_v21 = vld [vmem:[%s16764_s0 + $0x4f0] sm:$0xff] }
  0x5d   :  { %13033 = vmatprep.subr.bf16.mxu1 %v13877_v0  ;;  %13079 = vmatprep.subr.bf16.mxu0 %v13877_v0  ;;  %v13139_v23 = vpack.c.bf16 %v10074_v19, %v10073_v18  ;;  %v10139_v18 = vld [vmem:[%s16764_s0 + $0x590] sm:$0xff]  ;;  %v10140_v19 = vld [vmem:[%s16764_s0 + $0x598] sm:$0x7] }
  0x5e   :  { %11621 = vmatmul.mubr.msk.f32.vlgmr.msra.gmra.mrb[20].mxu0 %vm56_vm4, %v14005_v16  ;;  %v10106_v22 = vld [vmem:[%s16764_s0 + $0x4f8] sm:$0x7] }
  0x5f   :  { %13081 = vmatpush3.bf16.msra.mxu0 %v13080_v28  ;;  %11642 = vmatprep.mubr.msk.f32.mxu0 %vm13878_vm1, %v13879_v6  ;;  %v10052_v28 = vld [vmem:[%s16764_s0 + $0x3e8] sm:$0xff] }
  0x60   :  { %13036 = vmatpush3.bf16.msk.msra.mxu1 %vm13981_vm3, %v13034_v25  ;;  %13082 = vmatprep.subr.bf16.mxu0 %v13877_v0  ;;  %v10086_v25 = vld [vmem:[%s16764_s0 + $0x488] sm:$0xff]  ;;  %v13115_v32 = vpack.c.bf16 %v10052_v28, %v10051_v27  ;;  %v10117_v27 = vld [vmem:[%s16764_s0 + $0x520] sm:$0xff] }
  0x61   :  { %13044 = vmatprep.subr.bf16.mxu1 %v13877_v0  ;;  %v13150_v29 = vpack.c.bf16 %v10086_v25, %v10085_v24  ;;  %v10149_v24 = vld [vmem:[%s16764_s0 + $0x5c0] sm:$0xff]  ;;  %v10150_v25 = vld [vmem:[%s16764_s0 + $0x5c8] sm:$0xff] }
  0x62   :  { %v10118_v28 = vld [vmem:[%s16764_s0 + $0x528] sm:$0xff] }
  0x63   :  { %11566 = vmatmul.mubr.msk.f32.vlgmr.msra.gmra.mrb[22].mxu1 %vm56_vm4, %v14005_v16  ;;  %13085 = vmatpush3.bf16.msk.msra.mxu0 %vm13981_vm3, %v13083_v34  ;;  %v10054_v34 = vld [vmem:[%s16764_s0 + $0x3f8] sm:$0x7] }
  0x64   :  { %13046 = vmatpush3.bf16.msra.mxu1 %v13045_v31  ;;  %11587 = vmatprep.mubr.msk.f32.mxu1 %vm13878_vm1, %v13879_v6  ;;  %v10088_v31 = vld [vmem:[%s16764_s0 + $0x498] sm:$0x7]  ;;  %v13118_v38 = vpack.c.bf16 %v10054_v34, %v10053_v33  ;;  %v10119_v33 = vld [vmem:[%s16764_s0 + $0x530] sm:$0xff] }
  0x65   :  { %13047 = vmatprep.subr.bf16.mxu1 %v13877_v0  ;;  %13093 = vmatprep.subr.bf16.mxu0 %v13877_v0  ;;  %v13153_v35 = vpack.c.bf16 %v10088_v31, %v10087_v30  ;;  %v10152_v30 = vld [vmem:[%s16764_s0 + $0x5d8] sm:$0x7]  ;;  %v13185_v31 = vpack.c.bf16 %v10118_v28, %v10117_v27  ;;  %v10181_v27 = vld [vmem:[%s16764_s0 + $0x660] sm:$0xff]  ;;  %v10182_v28 = vld [vmem:[%s16764_s0 + $0x668] sm:$0xff] }
  0x66   :  { %11643 = vmatmul.mubr.msk.f32.vlgmr.msra.gmra.mrb[22].mxu0 %vm56_vm4, %v14005_v16  ;;  %v10120_v34 = vld [vmem:[%s16764_s0 + $0x538] sm:$0x7] }
  0x67   :  { %13095 = vmatpush3.bf16.msra.mxu0 %v13094_v40  ;;  %11664 = vmatprep.mubr.msk.f32.mxu0 %vm13878_vm1, %v13879_v6  ;;  %v10066_v40 = vld [vmem:[%s16764_s0 + $0x428] sm:$0xff] }
  0x68   :  { %13050 = vmatpush3.bf16.msk.msra.mxu1 %vm13981_vm3, %v13048_v37  ;;  %13096 = vmatprep.subr.bf16.mxu0 %v13877_v0  ;;  %v10098_v37 = vld [vmem:[%s16764_s0 + $0x4c8] sm:$0xff] }
  0x69   :  { %13058 = vmatprep.subr.bf16.mxu1 %v13877_v0  ;;  %v13164_v41 = vpack.c.bf16 %v10098_v37, %v10097_v36  ;;  %v10163_v36 = vld [vmem:[%s16764_s0 + $0x600] sm:$0xff]  ;;  %v10164_v37 = vld [vmem:[%s16764_s0 + $0x608] sm:$0xff] }
  0x6b   :  { %11588 = vmatmul.mubr.msk.f32.vlgmr.msra.gmra.mrb[24].mxu1 %vm56_vm4, %v14005_v16  ;;  %13099 = vmatpush3.bf16.msk.msra.mxu0 %vm13981_vm3, %v13097_v47  ;;  %v13167_v47 = vpack.c.bf16 %v10100_v43, %v10099_v42  ;;  %v10165_v42 = vld [vmem:[%s16764_s0 + $0x610] sm:$0xff]  ;;  %v10166_v43 = vld [vmem:[%s16764_s0 + $0x618] sm:$0x7] }
  0x6c   :  { %13060 = vmatpush3.bf16.msra.mxu1 %v13059_v44  ;;  %11609 = vmatprep.mubr.msk.f32.mxu1 %vm13878_vm1, %v13879_v6  ;;  %v13129_v44 = vpack.c.bf16 %v10066_v40, %v10065_v39  ;;  %v10129_v39 = vld [vmem:[%s16764_s0 + $0x560] sm:$0xff]  ;;  %v10130_v40 = vld [vmem:[%s16764_s0 + $0x568] sm:$0xff] }
  0x6d   :  { %13061 = vmatprep.subr.bf16.mxu1 %v13877_v0  ;;  %13107 = vmatprep.subr.bf16.mxu0 %v13877_v0 }
  0x6e   :  { %11665 = vmatmul.mubr.msk.f32.vlgmr.msra.gmra.mrb[24].mxu0 %vm56_vm4, %v14005_v16 }
  0x6f   :  { %13109 = vmatpush3.bf16.msra.mxu0 %v13108_v53  ;;  %11686 = vmatprep.mubr.msk.f32.mxu0 %vm13878_vm1, %v13879_v6  ;;  %v13178_v53 = vpack.c.bf16 %v10112_v49, %v10111_v48  ;;  %v10175_v48 = vld [vmem:[%s16764_s0 + $0x640] sm:$0xff]  ;;  %v10176_v49 = vld [vmem:[%s16764_s0 + $0x648] sm:$0xff] }
  0x70   :  { %13064 = vmatpush3.bf16.msk.msra.mxu1 %vm13981_vm3, %v13062_v50  ;;  %13110 = vmatprep.subr.bf16.mxu0 %v13877_v0  ;;  %v13132_v50 = vpack.c.bf16 %v10068_v46, %v10067_v45  ;;  %v10131_v45 = vld [vmem:[%s16764_s0 + $0x570] sm:$0xff]  ;;  %v10132_v46 = vld [vmem:[%s16764_s0 + $0x578] sm:$0x7] }
  0x71   :  { %13072 = vmatprep.subr.bf16.mxu1 %v13877_v0 }
  0x73   :  { %11610 = vmatmul.mubr.msk.f32.vlgmr.msra.gmra.mrb[26].mxu1 %vm56_vm4, %v14005_v16  ;;  %13113 = vmatpush3.bf16.msk.msra.mxu0 %vm13981_vm3, %v13111_v59  ;;  %v13181_v59 = vpack.c.bf16 %v10114_v55, %v10113_v54  ;;  %v10177_v54 = vld [vmem:[%s16764_s0 + $0x650] sm:$0xff]  ;;  %v10178_v55 = vld [vmem:[%s16764_s0 + $0x658] sm:$0x7] }
  0x74   :  { %13074 = vmatpush3.bf16.msra.mxu1 %v13073_v56  ;;  %11631 = vmatprep.mubr.msk.f32.mxu1 %vm13878_vm1, %v13879_v6  ;;  %v13143_v56 = vpack.c.bf16 %v10078_v52, %v10077_v51  ;;  %v10143_v51 = vld [vmem:[%s16764_s0 + $0x5a0] sm:$0xff]  ;;  %v10144_v52 = vld [vmem:[%s16764_s0 + $0x5a8] sm:$0xff] }
  0x75   :  { %13075 = vmatprep.subr.bf16.mxu1 %v13877_v0  ;;  %13121 = vmatprep.subr.bf16.mxu0 %v13877_v0 }
  0x76   :  { %11687 = vmatmul.mubr.msk.f32.vlgmr.msra.gmra.mrb[26].mxu0 %vm56_vm4, %v14005_v16 }
  0x77   :  { %13123 = vmatpush3.bf16.msra.mxu0 %v13122_v2  ;;  %11708 = vmatprep.mubr.msk.f32.mxu0 %vm13878_vm1, %v13879_v6  ;;  %v13192_v2 = vpack.c.bf16 %v10124_v61, %v10123_v60  ;;  %v10189_v60 = vld [vmem:[%s16764_s0 + $0x680] sm:$0xff]  ;;  %v10190_v61 = vld [vmem:[%s16764_s0 + $0x688] sm:$0xff] }
  0x78   :  { %13078 = vmatpush3.bf16.msk.msra.mxu1 %vm13981_vm3, %v13076_v62  ;;  %13124 = vmatprep.subr.bf16.mxu0 %v13877_v0  ;;  %v13146_v62 = vpack.c.bf16 %v10080_v58, %v10079_v57  ;;  %v10145_v57 = vld [vmem:[%s16764_s0 + $0x5b0] sm:$0xff]  ;;  %v10146_v58 = vld [vmem:[%s16764_s0 + $0x5b8] sm:$0x7] }
  0x79   :  { %13086 = vmatprep.subr.bf16.mxu1 %v13877_v0 }
  0x7b   :  { %11632 = vmatmul.mubr.msk.f32.vlgmr.msra.gmra.mrb[28].mxu1 %vm56_vm4, %v14005_v16  ;;  %13127 = vmatpush3.bf16.msk.msra.mxu0 %vm13981_vm3, %v13125_v10  ;;  %v13195_v10 = vpack.c.bf16 %v10126_v4, %v10125_v3  ;;  %v10191_v3 = vld [vmem:[%s16764_s0 + $0x690] sm:$0xff]  ;;  %v10192_v4 = vld [vmem:[%s16764_s0 + $0x698] sm:$0x7] }
  0x7c   :  { %13088 = vmatpush3.bf16.msra.mxu1 %v13087_v5  ;;  %11653 = vmatprep.mubr.msk.f32.mxu1 %vm13878_vm1, %v13879_v6  ;;  %v13157_v5 = vpack.c.bf16 %v10092_v1, %v10091_v63  ;;  %v10155_v63 = vld [vmem:[%s16764_s0 + $0x5e0] sm:$0xff]  ;;  %v10156_v1 = vld [vmem:[%s16764_s0 + $0x5e8] sm:$0xff] }
  0x7d   :  { %13089 = vmatprep.subr.bf16.mxu1 %v13877_v0  ;;  %13135 = vmatprep.subr.bf16.mxu0 %v13877_v0 }
  0x7e   :  { %11709 = vmatmul.mubr.msk.f32.vlgmr.msra.gmra.mrb[28].mxu0 %vm56_vm4, %v14005_v16 }
  0x7f   :  { %13137 = vmatpush3.bf16.msra.mxu0 %v13136_v17  ;;  %11730 = vmatprep.mubr.msk.f32.mxu0 %vm13878_vm1, %v13879_v6  ;;  %v13206_v17 = vpack.c.bf16 %v10138_v12, %v10137_v11  ;;  %v10201_v11 = vld [vmem:[%s16764_s0 + $0x6c0] sm:$0xff]  ;;  %v10202_v12 = vld [vmem:[%s16764_s0 + $0x6c8] sm:$0xff] }
  0x80   :  { %13092 = vmatpush3.bf16.msk.msra.mxu1 %vm13981_vm3, %v13090_v13  ;;  %13138 = vmatprep.subr.bf16.mxu0 %v13877_v0  ;;  %v13160_v13 = vpack.c.bf16 %v10094_v8, %v10093_v7  ;;  %v10157_v7 = vld [vmem:[%s16764_s0 + $0x5f0] sm:$0xff]  ;;  %v10158_v8 = vld [vmem:[%s16764_s0 + $0x5f8] sm:$0x7] }
  0x81   :  { %13100 = vmatprep.subr.bf16.mxu1 %v13877_v0 }
  0x83   :  { %11654 = vmatmul.mubr.msk.f32.vlgmr.msra.gmra.mrb[30].mxu1 %vm56_vm4, %v14005_v16  ;;  %13141 = vmatpush3.bf16.msk.msra.mxu0 %vm13981_vm3, %v13139_v23  ;;  %v13209_v23 = vpack.c.bf16 %v10140_v19, %v10139_v18  ;;  %v10203_v18 = vld [vmem:[%s16764_s0 + $0x6d0] sm:$0xff]  ;;  %v10204_v19 = vld [vmem:[%s16764_s0 + $0x6d8] sm:$0x7] }
  0x84   :  { %13102 = vmatpush3.bf16.msra.mxu1 %v13101_v20  ;;  %11675 = vmatprep.mubr.msk.f32.mxu1 %vm13878_vm1, %v13879_v6  ;;  %v13171_v20 = vpack.c.bf16 %v10104_v15, %v10103_v14  ;;  %v10169_v14 = vld [vmem:[%s16764_s0 + $0x620] sm:$0xff]  ;;  %v10170_v15 = vld [vmem:[%s16764_s0 + $0x628] sm:$0xff] }
  0x85   :  { %13103 = vmatprep.subr.bf16.mxu1 %v13877_v0  ;;  %13149 = vmatprep.subr.bf16.mxu0 %v13877_v0 }
  0x86   :  { %11731 = vmatmul.mubr.msk.f32.vlgmr.msra.gmra.mrb[30].mxu0 %vm56_vm4, %v14005_v16 }
  0x87   :  { %13151 = vmatpush3.bf16.msra.mxu0 %v13150_v29  ;;  %11752 = vmatprep.mubr.msk.f32.mxu0 %vm13878_vm1, %v13879_v6  ;;  %v13220_v29 = vpack.c.bf16 %v10150_v25, %v10149_v24  ;;  %v10215_v24 = vld [vmem:[%s16764_s0 + $0x700] sm:$0xff]  ;;  %v10216_v25 = vld [vmem:[%s16764_s0 + $0x708] sm:$0xff] }
  0x88   :  { %13106 = vmatpush3.bf16.msk.msra.mxu1 %vm13981_vm3, %v13104_v26  ;;  %13152 = vmatprep.subr.bf16.mxu0 %v13877_v0  ;;  %v13174_v26 = vpack.c.bf16 %v10106_v22, %v10105_v21  ;;  %v10171_v21 = vld [vmem:[%s16764_s0 + $0x630] sm:$0xff]  ;;  %v10172_v22 = vld [vmem:[%s16764_s0 + $0x638] sm:$0x7] }
  0x89   :  { %13114 = vmatprep.subr.bf16.mxu1 %v13877_v0 }
  0x8b   :  { %11676 = vmatmul.mubr.msk.f32.vlgmr.msra.gmra.mrb[32].mxu1 %vm56_vm4, %v14005_v16  ;;  %13155 = vmatpush3.bf16.msk.msra.mxu0 %vm13981_vm3, %v13153_v35 }
  0x8c   :  { %13116 = vmatpush3.bf16.msra.mxu1 %v13115_v32  ;;  %11697 = vmatprep.mubr.msk.f32.mxu1 %vm13878_vm1, %v13879_v6  ;;  %v14855_v32 = vld [vmem:[%s16765_s1] sm:$0xff] }
  0x8d   :  { %13117 = vmatprep.subr.bf16.mxu1 %v13877_v0  ;;  %13163 = vmatprep.subr.bf16.mxu0 %v13877_v0 }
  0x8e   :  { %11753 = vmatmul.mubr.msk.f32.vlgmr.msra.gmra.mrb[32].mxu0 %vm56_vm4, %v14005_v16 }
  0x8f   :  { %13165 = vmatpush3.bf16.msra.mxu0 %v13164_v41  ;;  %11774 = vmatprep.mubr.msk.f32.mxu0 %vm13878_vm1, %v13879_v6  ;;  %v13234_v41 = vpack.c.bf16 %v10164_v37, %v10163_v36  ;;  %v10227_v36 = vld [vmem:[%s16764_s0 + $0x740] sm:$0xff]  ;;  %v10228_v37 = vld [vmem:[%s16764_s0 + $0x748] sm:$0xff] }
  0x90   :  { %13120 = vmatpush3.bf16.msk.msra.mxu1 %vm13981_vm3, %v13118_v38  ;;  %13166 = vmatprep.subr.bf16.mxu0 %v13877_v0  ;;  %v13188_v38 = vpack.c.bf16 %v10120_v34, %v10119_v33  ;;  %v10183_v33 = vld [vmem:[%s16764_s0 + $0x670] sm:$0xff]  ;;  %v10184_v34 = vld [vmem:[%s16764_s0 + $0x678] sm:$0x7] }
  0x91   :  { %13128 = vmatprep.subr.bf16.mxu1 %v13877_v0 }
  0x93   :  { %11698 = vmatmul.mubr.msk.f32.vlgmr.msra.gmra.mrb[34].mxu1 %vm56_vm4, %v14005_v16  ;;  %13169 = vmatpush3.bf16.msk.msra.mxu0 %vm13981_vm3, %v13167_v47  ;;  %v13237_v47 = vpack.c.bf16 %v10166_v43, %v10165_v42  ;;  %v10229_v43 = vld [vmem:[%s16764_s0 + $0x750] sm:$0xff] }
  0x94   :  { %13130 = vmatpush3.bf16.msra.mxu1 %v13129_v44  ;;  %11719 = vmatprep.mubr.msk.f32.mxu1 %vm13878_vm1, %v13879_v6  ;;  %v13199_v44 = vpack.c.bf16 %v10130_v40, %v10129_v39  ;;  %v10195_v39 = vld [vmem:[%s16764_s0 + $0x6a0] sm:$0xff]  ;;  %v10196_v40 = vld [vmem:[%s16764_s0 + $0x6a8] sm:$0xff] }
  0x95   :  { %13131 = vmatprep.subr.bf16.mxu1 %v13877_v0  ;;  %13177 = vmatprep.subr.bf16.mxu0 %v13877_v0 }
  0x96   :  { %11775 = vmatmul.mubr.msk.f32.vlgmr.msra.gmra.mrb[34].mxu0 %vm56_vm4, %v14005_v16 }
  0x97   :  { %13179 = vmatpush3.bf16.msra.mxu0 %v13178_v53  ;;  %11796 = vmatprep.mubr.msk.f32.mxu0 %vm13878_vm1, %v13879_v6  ;;  %v13248_v53 = vpack.c.bf16 %v10176_v49, %v10175_v48  ;;  %v10198_v48 = vld [vmem:[%s16764_s0 + $0x6b8] sm:$0x7] }
  0x98   :  { %13134 = vmatpush3.bf16.msk.msra.mxu1 %vm13981_vm3, %v13132_v50  ;;  %13180 = vmatprep.subr.bf16.mxu0 %v13877_v0  ;;  %v13202_v50 = vpack.c.bf16 %v10132_v46, %v10131_v45  ;;  %v13269_v46 = vpack.c.bf16 %v10196_v40, %v10195_v39  ;;  %v10247_v39 = vld [vmem:[%s16764_s0 + $0x7a0] sm:$0xff]  ;;  %v10248_v40 = vld [vmem:[%s16764_s0 + $0x7a8] sm:$0xff] }
  0x99   :  { %13142 = vmatprep.subr.bf16.mxu1 %v13877_v0 }
  0x9b   :  { %11720 = vmatmul.mubr.msk.f32.vlgmr.msra.gmra.mrb[36].mxu1 %vm56_vm4, %v14005_v16  ;;  %13183 = vmatpush3.bf16.msk.msra.mxu0 %vm13981_vm3, %v13181_v59  ;;  %v13251_v59 = vpack.c.bf16 %v10178_v55, %v10177_v54  ;;  %v10207_v55 = vld [vmem:[%s16764_s0 + $0x6e0] sm:$0xff] }
  0x9c   :  { %13144 = vmatpush3.bf16.msra.mxu1 %v13143_v56  ;;  %11741 = vmatprep.mubr.msk.f32.mxu1 %vm13878_vm1, %v13879_v6  ;;  %v13213_v56 = vpack.c.bf16 %v10144_v52, %v10143_v51  ;;  %v10242_v51 = vld [vmem:[%s16764_s0 + $0x788] sm:$0xff] }
  0x9d   :  { %13145 = vmatprep.subr.bf16.mxu1 %v13877_v0  ;;  %13191 = vmatprep.subr.bf16.mxu0 %v13877_v0 }
  0x9e   :  { %11797 = vmatmul.mubr.msk.f32.vlgmr.msra.gmra.mrb[36].mxu0 %vm56_vm4, %v14005_v16 }
  0x9f   :  { %13193 = vmatpush3.bf16.msra.mxu0 %v13192_v2  ;;  %11818 = vmatprep.mubr.msk.f32.mxu0 %vm13878_vm1, %v13879_v6  ;;  %v13262_v2 = vpack.c.bf16 %v10190_v61, %v10189_v60  ;;  %v10244_v60 = vld [vmem:[%s16764_s0 + $0x798] sm:$0x7] }
  0xa0   :  { %13148 = vmatpush3.bf16.msk.msra.mxu1 %vm13981_vm3, %v13146_v62  ;;  %13194 = vmatprep.subr.bf16.mxu0 %v13877_v0  ;;  %v13216_v62 = vpack.c.bf16 %v10146_v58, %v10145_v57 }
  0xa1   :  { %13156 = vmatprep.subr.bf16.mxu1 %v13877_v0 }
  0xa3   :  { %11742 = vmatmul.mubr.msk.f32.vlgmr.msra.gmra.mrb[38].mxu1 %vm56_vm4, %v14005_v16  ;;  %13197 = vmatpush3.bf16.msk.msra.mxu0 %vm13981_vm3, %v13195_v10  ;;  %v13265_v10 = vpack.c.bf16 %v10192_v4, %v10191_v3  ;;  %v10253_v4 = vld [vmem:[%s16764_s0 + $0x7c0] sm:$0xff] }
  0xa4   :  { %13158 = vmatpush3.bf16.msra.mxu1 %v13157_v5  ;;  %11763 = vmatprep.mubr.msk.f32.mxu1 %vm13878_vm1, %v13879_v6  ;;  %v13227_v5 = vpack.c.bf16 %v10156_v1, %v10155_v63  ;;  %v10209_v1 = vld [vmem:[%s16764_s0 + $0x6f0] sm:$0xff] }
  0xa5   :  { %13159 = vmatprep.subr.bf16.mxu1 %v13877_v0  ;;  %13205 = vmatprep.subr.bf16.mxu0 %v13877_v0 }
  0xa6   :  { %11819 = vmatmul.mubr.msk.f32.vlgmr.msra.gmra.mrb[38].mxu0 %vm56_vm4, %v14005_v16 }
  0xa7   :  { %13207 = vmatpush3.bf16.msra.mxu0 %v13206_v17  ;;  %11840 = vmatprep.mubr.msk.f32.mxu0 %vm13878_vm1, %v13879_v6  ;;  %v13276_v17 = vpack.c.bf16 %v10202_v12, %v10201_v11  ;;  %v10221_v11 = vld [vmem:[%s16764_s0 + $0x720] sm:$0xff]  ;;  %v10222_v12 = vld [vmem:[%s16764_s0 + $0x728] sm:$0xff] }
  0xa8   :  { %13162 = vmatpush3.bf16.msk.msra.mxu1 %vm13981_vm3, %v13160_v13  ;;  %13208 = vmatprep.subr.bf16.mxu0 %v13877_v0  ;;  %v13230_v13 = vpack.c.bf16 %v10158_v8, %v10157_v7 }
  0xa9   :  { %13170 = vmatprep.subr.bf16.mxu1 %v13877_v0 }
  0xab   :  { %11764 = vmatmul.mubr.msk.f32.vlgmr.msra.gmra.mrb[40].mxu1 %vm56_vm4, %v14005_v16  ;;  %13211 = vmatpush3.bf16.msk.msra.mxu0 %vm13981_vm3, %v13209_v23  ;;  %v10151_v16 = vld [vmem:[%s16764_s0 + $0x5d0] sm:$0xff]  ;;  %v13279_v23 = vpack.c.bf16 %v10204_v19, %v10203_v18 }
  0xac   :  { %13172 = vmatpush3.bf16.msra.mxu1 %v13171_v20  ;;  %11785 = vmatprep.mubr.msk.f32.mxu1 %vm13878_vm1, %v13879_v6  ;;  %v13223_v35 = vpack.c.bf16 %v10152_v30, %v10151_v16  ;;  %v13241_v20 = vpack.c.bf16 %v10170_v15, %v10169_v14  ;;  %v10217_v16 = vld [vmem:[%s16764_s0 + $0x710] sm:$0xff]  ;;  %v10218_v30 = vld [vmem:[%s16764_s0 + $0x718] sm:$0x7] }
  0xad   :  { %13173 = vmatprep.subr.bf16.mxu1 %v13877_v0  ;;  %13219 = vmatprep.subr.bf16.mxu0 %v13877_v0  ;;  %v10255_v15 = vld [vmem:[%s16764_s0 + $0x7d0] sm:$0xff] }
  0xae   :  { %11841 = vmatmul.mubr.msk.f32.vlgmr.msra.gmra.mrb[40].mxu0 %vm56_vm4, %v14855_v32 }
  0xaf   :  { %13221 = vmatpush3.bf16.msra.mxu0 %v13220_v29  ;;  %11862 = vmatprep.mubr.msk.f32.mxu0 %vm13878_vm1, %v13879_v6  ;;  %v13290_v29 = vpack.c.bf16 %v10216_v25, %v10215_v24 }
  0xb0   :  { %13176 = vmatpush3.bf16.msk.msra.mxu1 %vm13981_vm3, %v13174_v26  ;;  %13222 = vmatprep.subr.bf16.mxu0 %v13877_v0  ;;  %v13244_v26 = vpack.c.bf16 %v10172_v22, %v10171_v21  ;;  %v10223_v21 = vld [vmem:[%s16764_s0 + $0x730] sm:$0xff]  ;;  %v10224_v22 = vld [vmem:[%s16764_s0 + $0x738] sm:$0x7] }
  0xb1   :  { %13184 = vmatprep.subr.bf16.mxu1 %v13877_v0  ;;  %v13300_v25 = vpack.c.bf16 %v10224_v22, %v10223_v21  ;;  %v15317_v22 = vld [vmem:[%s16768_s4 + $0x20] sm:$0xff] }
  0xb3   :  { %11786 = vmatmul.mubr.msk.f32.vlgmr.msra.gmra.mrb[42].mxu1 %vm56_vm4, %v14855_v32  ;;  %13225 = vmatpush3.bf16.msk.msra.mxu0 %vm13981_vm3, %v13223_v35  ;;  %v13293_v35 = vpack.c.bf16 %v10218_v30, %v10217_v16  ;;  %v15213_v16 = vld [vmem:[%s16768_s4 + $0x10] sm:$0xff] }
  0xb4   :  { %13186 = vmatpush3.bf16.msra.mxu1 %v13185_v31  ;;  %11807 = vmatprep.mubr.msk.f32.mxu1 %vm13878_vm1, %v13879_v6  ;;  %v13255_v31 = vpack.c.bf16 %v10182_v28, %v10181_v27  ;;  %v10233_v27 = vld [vmem:[%s16764_s0 + $0x760] sm:$0xff]  ;;  %v10234_v28 = vld [vmem:[%s16764_s0 + $0x768] sm:$0xff] }
  0xb5   :  { %13187 = vmatprep.subr.bf16.mxu1 %v13877_v0  ;;  %13233 = vmatprep.subr.bf16.mxu0 %v13877_v0 }
  0xb6   :  { %11863 = vmatmul.mubr.msk.f32.vlgmr.msra.gmra.mrb[42].mxu0 %vm56_vm4, %v14855_v32 }
  0xb7   :  { %13235 = vmatpush3.bf16.msra.mxu0 %v13234_v41  ;;  %11884 = vmatprep.mubr.msk.f32.mxu0 %vm13878_vm1, %v13879_v6  ;;  %v13304_v41 = vpack.c.bf16 %v10228_v37, %v10227_v36 }
  0xb8   :  { %13190 = vmatpush3.bf16.msk.msra.mxu1 %vm13981_vm3, %v13188_v38  ;;  %13236 = vmatprep.subr.bf16.mxu0 %v13877_v0  ;;  %v13258_v38 = vpack.c.bf16 %v10184_v34, %v10183_v33  ;;  %v13311_v33 = vpack.c.bf16 %v10234_v28, %v10233_v27  ;;  %v10235_v34 = vld [vmem:[%s16764_s0 + $0x770] sm:$0xff] }
  0xb9   :  { %13198 = vmatprep.subr.bf16.mxu1 %v13877_v0 }
  0xbb   :  { %11808 = vmatmul.mubr.msk.f32.vlgmr.msra.gmra.mrb[44].mxu1 %vm56_vm4, %v14855_v32  ;;  %13239 = vmatpush3.bf16.msk.msra.mxu0 %vm13981_vm3, %v13237_v47  ;;  %v10197_v47 = vld [vmem:[%s16764_s0 + $0x6b0] sm:$0xff] }
  0xbc   :  { %13200 = vmatpush3.bf16.msra.mxu1 %v13199_v44  ;;  %11829 = vmatprep.mubr.msk.f32.mxu1 %vm13878_vm1, %v13879_v6  ;;  %v10230_v44 = vld [vmem:[%s16764_s0 + $0x758] sm:$0x7] }
  0xbd   :  { %13201 = vmatprep.subr.bf16.mxu1 %v13877_v0  ;;  %13247 = vmatprep.subr.bf16.mxu0 %v13877_v0  ;;  %v13307_v49 = vpack.c.bf16 %v10230_v44, %v10229_v43  ;;  %v13325_v44 = vpack.c.bf16 %v10248_v40, %v10247_v39 }
  0xbe   :  { %11885 = vmatmul.mubr.msk.f32.vlgmr.msra.gmra.mrb[44].mxu0 %vm56_vm4, %v14855_v32 }
  0xbf   :  { %13249 = vmatpush3.bf16.msra.mxu0 %v13248_v53  ;;  %11906 = vmatprep.mubr.msk.f32.mxu0 %vm13878_vm1, %v13879_v6  ;;  %v13272_v53 = vpack.c.bf16 %v10198_v48, %v10197_v47  ;;  %v10250_v47 = vld [vmem:[%s16764_s0 + $0x7b8] sm:$0x7] }
  0xc0   :  { %13204 = vmatpush3.bf16.msk.msra.mxu1 %vm13981_vm3, %v13202_v50  ;;  %13250 = vmatprep.subr.bf16.mxu0 %v13877_v0  ;;  %v10241_v50 = vld [vmem:[%s16764_s0 + $0x780] sm:$0xff] }
  0xc1   :  { %13212 = vmatprep.subr.bf16.mxu1 %v13877_v0  ;;  %v13318_v57 = vpack.c.bf16 %v10242_v51, %v10241_v50 }
  0xc3   :  { %11830 = vmatmul.mubr.msk.f32.vlgmr.msra.gmra.mrb[46].mxu1 %vm56_vm4, %v14855_v32  ;;  %13253 = vmatpush3.bf16.msk.msra.mxu0 %vm13981_vm3, %v13251_v59  ;;  %v10243_v59 = vld [vmem:[%s16764_s0 + $0x790] sm:$0xff] }
  0xc4   :  { %13214 = vmatpush3.bf16.msra.mxu1 %v13213_v56  ;;  %11851 = vmatprep.mubr.msk.f32.mxu1 %vm13878_vm1, %v13879_v6  ;;  %v10208_v56 = vld [vmem:[%s16764_s0 + $0x6e8] sm:$0xff]  ;;  %v13321_v3 = vpack.c.bf16 %v10244_v60, %v10243_v59  ;;  %v10261_v60 = vld [vmem:[%s16764_s0 + $0x7f0] sm:$0xff] }
  0xc5   :  { %13215 = vmatprep.subr.bf16.mxu1 %v13877_v0  ;;  %13261 = vmatprep.subr.bf16.mxu0 %v13877_v0  ;;  %v13283_v63 = vpack.c.bf16 %v10208_v56, %v10207_v55 }
  0xc6   :  { %11907 = vmatmul.mubr.msk.f32.vlgmr.msra.gmra.mrb[46].mxu0 %vm56_vm4, %v14855_v32 }
  0xc7   :  { %13263 = vmatpush3.bf16.msra.mxu0 %v13262_v2  ;;  %11928 = vmatprep.mubr.msk.f32.mxu0 %vm13878_vm1, %v13879_v6  ;;  %v10210_v2 = vld [vmem:[%s16764_s0 + $0x6f8] sm:$0x7] }
  0xc8   :  { %13218 = vmatpush3.bf16.msk.msra.mxu1 %vm13981_vm3, %v13216_v62  ;;  %13264 = vmatprep.subr.bf16.mxu0 %v13877_v0  ;;  %v13286_v8 = vpack.c.bf16 %v10210_v2, %v10209_v1 }
  0xc9   :  { %13226 = vmatprep.subr.bf16.mxu1 %v13877_v0 }
  0xcb   :  { %11852 = vmatmul.mubr.msk.f32.vlgmr.msra.gmra.mrb[48].mxu1 %vm56_vm4, %v14855_v32  ;;  %13267 = vmatpush3.bf16.msk.msra.mxu0 %vm13981_vm3, %v13265_v10 }
  0xcc   :  { %13228 = vmatpush3.bf16.msra.mxu1 %v13227_v5  ;;  %11873 = vmatprep.mubr.msk.f32.mxu1 %vm13878_vm1, %v13879_v6  ;;  %v10254_v5 = vld [vmem:[%s16764_s0 + $0x7c8] sm:$0xff] }
  0xcd   :  { %13229 = vmatprep.subr.bf16.mxu1 %v13877_v0  ;;  %13275 = vmatprep.subr.bf16.mxu0 %v13877_v0 }
  0xce   :  { %11929 = vmatmul.mubr.msk.f32.vlgmr.msra.gmra.mrb[48].mxu0 %vm56_vm4, %v14855_v32 }
  0xcf   :  { %13277 = vmatpush3.bf16.msra.mxu0 %v13276_v17  ;;  %11950 = vmatprep.mubr.msk.f32.mxu0 %vm13878_vm1, %v13879_v6  ;;  %v10256_v17 = vld [vmem:[%s16764_s0 + $0x7d8] sm:$0x7] }
  0xd0   :  { %13232 = vmatpush3.bf16.msk.msra.mxu1 %vm13981_vm3, %v13230_v13  ;;  %13278 = vmatprep.subr.bf16.mxu0 %v13877_v0  ;;  %v13332_v13 = vpack.c.bf16 %v10254_v5, %v10253_v4  ;;  %v9876_v4 = vld [vmem:[%s16769_s3] ss:$0 sm:$0xff] }
  0xd1   :  { %13240 = vmatprep.subr.bf16.mxu1 %v13877_v0 }
  0xd3   :  { %11874 = vmatmul.mubr.msk.f32.vlgmr.msra.gmra.mrb[50].mxu1 %vm56_vm4, %v14855_v32  ;;  %13281 = vmatpush3.bf16.msk.msra.mxu0 %vm13981_vm3, %v13279_v23  ;;  %v13335_v23 = vpack.c.bf16 %v10256_v17, %v10255_v15 }
  0xd4   :  { %13242 = vmatpush3.bf16.msra.mxu1 %v13241_v20  ;;  %11895 = vmatprep.mubr.msk.f32.mxu1 %vm13878_vm1, %v13879_v6  ;;  %v13297_v20 = vpack.c.bf16 %v10222_v12, %v10221_v11 }
  0xd5   :  { %13243 = vmatprep.subr.bf16.mxu1 %v13877_v0  ;;  %13289 = vmatprep.subr.bf16.mxu0 %v13877_v0 }
  0xd6   :  { %11951 = vmatmul.mubr.msk.f32.vlgmr.msra.gmra.mrb[50].mxu0 %vm56_vm4, %v14855_v32 }
  0xd7   :  { %13291 = vmatpush3.bf16.msra.mxu0 %v13290_v29  ;;  %11972 = vmatprep.mubr.msk.f32.mxu0 %vm13878_vm1, %v13879_v6 }
  0xd8   :  { %13246 = vmatpush3.bf16.msk.msra.mxu1 %vm13981_vm3, %v13244_v26  ;;  %13292 = vmatprep.subr.bf16.mxu0 %v13877_v0 }
  0xd9   :  { %13254 = vmatprep.subr.bf16.mxu1 %v13877_v0 }
  0xdb   :  { %11896 = vmatmul.mubr.msk.f32.vlgmr.msra.gmra.mrb[52].mxu1 %vm56_vm4, %v14855_v32  ;;  %13295 = vmatpush3.bf16.msk.msra.mxu0 %vm13981_vm3, %v13293_v35  ;;  %v10236_v35 = vld [vmem:[%s16764_s0 + $0x778] sm:$0x7] }
  0xdc   :  { %13256 = vmatpush3.bf16.msra.mxu1 %v13255_v31  ;;  %11917 = vmatprep.mubr.msk.f32.mxu1 %vm13878_vm1, %v13879_v6  ;;  %v13314_v37 = vpack.c.bf16 %v10236_v35, %v10235_v34  ;;  %v15338_v34 = vld [vmem:[%s16768_s4 + $0x30] sm:$0xff] }
  0xdd   :  { %13257 = vmatprep.subr.bf16.mxu1 %v13877_v0  ;;  %13303 = vmatprep.subr.bf16.mxu0 %v13877_v0 }
  0xde   :  { %v130_v42 = vpop.f32.mrb[0].mxu1  ;;  %11973 = vmatmul.mubr.msk.f32.vlgmr.msra.gmra.mrb[52].mxu0 %vm56_vm4, %v14855_v32 }
  0xdf   :  { %v11358_v45 = vpop.f32.mrb[1].mxu1  ;;  %13305 = vmatpush3.bf16.msra.mxu0 %v13304_v41  ;;  %11994 = vmatprep.mubr.msk.f32.mxu0 %vm13878_vm1, %v13879_v6 }
  0xe0   :  { %13260 = vmatpush3.bf16.msk.msra.mxu1 %vm13981_vm3, %v13258_v38  ;;  %13306 = vmatprep.subr.bf16.mxu0 %v13877_v0 }
  0xe1   :  { %13268 = vmatprep.subr.bf16.mxu1 %v13877_v0  ;;  %v15117_v52 = vpop.f32.mrb[0].mxu0 }
  0xe2   :  { %v11402_v54 = vpop.f32.mrb[1].mxu0 }
  0xe3   :  { %11918 = vmatmul.mubr.msk.f32.vlgmr.msra.gmra.mrb[54].mxu1 %vm56_vm4, %v14855_v32  ;;  %13309 = vmatpush3.bf16.msk.msra.mxu0 %vm13981_vm3, %v13307_v49  ;;  %v15255_v49 = vpop.permute.xlu0 %373 }
  0xe4   :  { %13270 = vmatpush3.bf16.msra.mxu1 %v13269_v46  ;;  %11939 = vmatprep.mubr.msk.f32.mxu1 %vm13878_vm1, %v13879_v6  ;;  %v10249_v46 = vld [vmem:[%s16764_s0 + $0x7b0] sm:$0xff] }
  0xe5   :  { %13271 = vmatprep.subr.bf16.mxu1 %v13877_v0  ;;  %13317 = vmatprep.subr.bf16.mxu0 %v13877_v0  ;;  %v13328_v50 = vpack.c.bf16 %v10250_v47, %v10249_v46 }
  0xe6   :  { %v208_v58 = vpop.f32.mrb[2].mxu1  ;;  %11995 = vmatmul.mubr.msk.f32.vlgmr.msra.gmra.mrb[54].mxu0 %vm56_vm4, %v14855_v32 }
  0xe7   :  { %v212_v61 = vmax.f32 %v130_v42, %v208_v58  ;;  %v11369_v62 = vpop.f32.mrb[3].mxu1  ;;  %13319 = vmatpush3.bf16.msra.mxu0 %v13318_v57  ;;  %12016 = vmatprep.mubr.msk.f32.mxu0 %vm13878_vm1, %v13879_v6 }
  0xe8   :  { %13274 = vmatpush3.bf16.msk.msra.mxu1 %vm13981_vm3, %v13272_v53  ;;  %13320 = vmatprep.subr.bf16.mxu0 %v13877_v0  ;;  %v10260_v53 = vld [vmem:[%s16764_s0 + $0x7e8] sm:$0xff]  ;;  %v9902_v62 = vld [vmem:[%s16769_s3 + $0x1] ss:$0 sm:$0xff] }
  0xe9   :  { %13282 = vmatprep.subr.bf16.mxu1 %v13877_v0  ;;  %v15159_v7 = vpop.f32.mrb[2].mxu0 }
  0xea   :  { %v11424_v10 = vpop.f32.mrb[3].mxu0 }
  0xeb   :  { %11940 = vmatmul.mubr.msk.f32.vlgmr.msra.gmra.mrb[56].mxu1 %vm56_vm4, %v14855_v32  ;;  %13323 = vmatpush3.bf16.msk.msra.mxu0 %vm13981_vm3, %v13321_v3  ;;  %v15291_v10 = vld [vmem:[%s16768_s4 + $0x18] sm:$0xff] }
  0xec   :  { %13284 = vmatpush3.bf16.msra.mxu1 %v13283_v63  ;;  %11961 = vmatprep.mubr.msk.f32.mxu1 %vm13878_vm1, %v13879_v6 }
  0xed   :  { %13285 = vmatprep.subr.bf16.mxu1 %v13877_v0  ;;  %13331 = vmatprep.subr.bf16.mxu0 %v13877_v0 }
  0xee   :  { %v287_v14 = vpop.f32.mrb[4].mxu1  ;;  %12017 = vmatmul.mubr.msk.f32.vlgmr.msra.gmra.mrb[56].mxu0 %vm56_vm4, %v14855_v32 }
  0xef   :  { %v15179_v18 = vmax.f32 %v212_v61, %v287_v14  ;;  %v11380_v19 = vpop.f32.mrb[5].mxu1  ;;  %13333 = vmatpush3.bf16.msra.mxu0 %v13332_v13  ;;  %12038 = vmatprep.mubr.msk.f32.mxu0 %vm13878_vm1, %v13879_v6  ;;  %v10262_v61 = vld [vmem:[%s16764_s0 + $0x7f8] sm:$0x7]  ;;  %v15297_v14 = vld [vmem:[%s16768_s4] sm:$0xff] }
  0xf0   :  { %13288 = vmatpush3.bf16.msk.msra.mxu1 %vm13981_vm3, %v13286_v8  ;;  %13334 = vmatprep.subr.bf16.mxu0 %v13877_v0  ;;  %v13342_v3 = vpack.c.bf16 %v10262_v61, %v10261_v60  ;;  %v15312_v19 = vld [vmem:[%s16768_s4 + $0x8] sm:$0xff] }
  0xf1   :  { %13296 = vmatprep.subr.bf16.mxu1 %v13877_v0  ;;  %v15197_v24 = vpop.f32.mrb[4].mxu0 }
  0xf2   :  { %v11446_v26 = vpop.f32.mrb[5].mxu0 }
  0xf3   :  { %11962 = vmatmul.mubr.msk.f32.vlgmr.msra.gmra.mrb[58].mxu1 %vm56_vm4, %v14855_v32  ;;  %13337 = vmatpush3.bf16.msk.msra.mxu0 %vm13981_vm3, %v13335_v23  ;;  %v9928_v23 = vld [vmem:[%s16769_s3 + $0x2] ss:$0 sm:$0xff] }
  0xf4   :  { %13298 = vmatpush3.bf16.msra.mxu1 %v13297_v20  ;;  %11983 = vmatprep.mubr.msk.f32.mxu1 %vm13878_vm1, %v13879_v6 }
  0xf5   :  { %13299 = vmatprep.subr.bf16.mxu1 %v13877_v0 }
  0xf6   :  { %v366_v29 = vpop.f32.mrb[6].mxu1  ;;  %12039 = vmatmul.mubr.msk.f32.vlgmr.msra.gmra.mrb[58].mxu0 %vm56_vm4, %v14855_v32 }
  0xf7   :  { %v370_v30 = vmax.f32 %v15179_v18, %v366_v29  ;;  %v11391_v31 = vpop.f32.mrb[7].mxu1  ;;  %12054 = vmatprep.mubr.msk.f32.mxu0 %vm5283_vm5, %v15213_v16 }
  0xf8   :  { %13302 = vmatpush3.bf16.msk.msra.mxu1 %vm13981_vm3, %v13300_v25  ;;  %v15331_v31 = vld [vmem:[%s16768_s4 + $0x28] sm:$0xff] }
  0xf9   :  { %13310 = vmatprep.subr.bf16.mxu1 %v13877_v0  ;;  %v943_v36 = vpop.f32.mrb[6].mxu0  ;;  %v376_v57 = vadd.f32 %v15255_v49, %v370_v30 }
  0xfa   :  { %v11468_v38 = vpop.f32.mrb[7].mxu0 }
  0xfb   :  { %11984 = vmatmul.mubr.msk.f32.vlgmr.msra.gmra.mrb[60].mxu1 %vm56_vm4, %v14855_v32  ;;  %v377_v1 = vmax.f32 %v376_v57, 0.0  ;;  %v9980_v57 = vld [vmem:[%s16769_s3 + $0x4] ss:$0 sm:$0xff] }
  0xfc   :  { %13312 = vmatpush3.bf16.msra.mxu1 %v13311_v33  ;;  %12005 = vmatprep.mubr.msk.f32.mxu1 %vm13878_vm1, %v13879_v6 }
  0xfd   :  { %13313 = vmatprep.subr.bf16.mxu1 %v13877_v0  ;;  %v385_v13 = vmul.f32 %v9876_v4, %v377_v1 }
  0xfe   :  { %v538_v41 = vpop.f32.mrb[8].mxu1 }
  0xff   :  { %v542_v42 = vmax.f32 %v15117_v52, %v538_v41  ;;  %v11413_v43 = vpop.f32.mrb[9].mxu1  ;;  %v10259_v52 = vld [vmem:[%s16764_s0 + $0x7e0] sm:$0xff] }
 0x100   :  { %13316 = vmatpush3.bf16.msk.msra.mxu1 %vm13981_vm3, %v13314_v37  ;;  %v13339_v58 = vpack.c.bf16 %v10260_v53, %v10259_v52  ;;  %v9954_v41 = vld [vmem:[%s16769_s3 + $0x3] ss:$0 sm:$0xff] }
 0x101   :  { %v621_v45 = vmax.f32 %v542_v42, %v15159_v7  ;;  %13324 = vmatprep.subr.bf16.mxu1 %v13877_v0  ;;  %v15253_v48 = vpop.f32.mrb[8].mxu0 }
 0x102   :  { %v11490_v51 = vpop.f32.mrb[9].mxu0 }
 0x103   :  { %12006 = vmatmul.mubr.msk.f32.vlgmr.msra.gmra.mrb[62].mxu1 %vm56_vm4, %v14855_v32 }
 0x104   :  { %13326 = vmatpush3.bf16.msra.mxu1 %v13325_v44  ;;  %12027 = vmatprep.mubr.msk.f32.mxu1 %vm13878_vm1, %v13879_v6 }
 0x105   :  { %13327 = vmatprep.subr.bf16.mxu1 %v13877_v0 }
 0x106   :  { %v696_v54 = vpop.f32.mrb[10].mxu1 }
 0x107   :  { %v700_v55 = vmax.f32 %v621_v45, %v696_v54  ;;  %v11435_v56 = vpop.f32.mrb[11].mxu1 }
 0x108   :  { %13330 = vmatpush3.bf16.msk.msra.mxu1 %vm13981_vm3, %v13328_v50 }
 0x109   :  { %v701_v59 = vadd.f32 %v700_v55, %v15255_v49  ;;  %13338 = vmatprep.subr.bf16.mxu1 %v13877_v0  ;;  %v1269_v2 = vpop.f32.mrb[10].mxu0 }
 0x10a   :  { %v11512_v5 = vpop.f32.mrb[11].mxu0 }
 0x10b   :  { %v702_v63 = vmax.f32 %v701_v59, 0.0  ;;  %12028 = vmatmul.mubr.msk.f32.vlgmr.msra.gmra.mrb[64].mxu1 %vm56_vm4, %v14855_v32 }
 0x10c   :  { %13340 = vmatpush3.bf16.msra.mxu1 %v13339_v58  ;;  %12049 = vmatprep.mubr.msk.f32.mxu1 %vm13878_vm1, %v13879_v6 }
 0x10d   :  { %v711_v7 = vmul.f32 %v9902_v62, %v702_v63  ;;  %13341 = vmatprep.subr.bf16.mxu1 %v13877_v0  ;;  %v15367_v63 = vld [vmem:[%s16768_s4 + $0x38] sm:$0xff] }
 0x10e   :  { %v864_v8 = vpop.f32.mrb[12].mxu1 }
 0x10f   :  { %v868_v11 = vmax.f32 %v15197_v24, %v864_v8  ;;  %v11457_v12 = vpop.f32.mrb[13].mxu1  ;;  %12052 = vmatprep.subr.mxu0 %v711_v7 }
 0x110   :  { %13344 = vmatpush3.bf16.msk.msra.mxu1 %vm13981_vm3, %v13342_v3  ;;  %12053 = vmatpush3.msra.mxu0 %v711_v7  ;;  %v15373_v3 = vld [vmem:[%s16768_s4 + $0x40] sm:$0xff] }
 0x111   :  { %v947_v15 = vmax.f32 %v868_v11, %v943_v36  ;;  %12057 = vmatprep.subr.mxu0 %v385_v13  ;;  %12055 = vmatmul.mubr.msk.f32.vlgmr.msra.gmra.mrb[60].mxu0 %vm5283_vm5, %v15291_v10  ;;  %v1438_v17 = vpop.f32.mrb[12].mxu0 }
 0x112   :  { %12058 = vmatpush3.msra.mxu0 %v385_v13  ;;  %12059 = vmatprep.mubr.msk.f32.mxu0 %vm5283_vm5, %v15297_v14  ;;  %v11534_v18 = vpop.f32.mrb[13].mxu0 }
 0x113   :  { %12050 = vmatmul.mubr.msk.f32.vlgmr.msra.gmra.mrb[66].mxu1 %vm56_vm4, %v14855_v32 }
 0x114   :  { %12099 = vmatprep.mubr.msk.f32.mxu1 %vm5283_vm5, %v15213_v16 }
 0x116   :  { %v1022_v9 = vpop.f32.mrb[14].mxu1 }
 0x117   :  { %v1026_v20 = vmax.f32 %v947_v15, %v1022_v9  ;;  %v11479_v21 = vpop.f32.mrb[15].mxu1  ;;  %v10006_v15 = vld [vmem:[%s16769_s3 + $0x5] ss:$0 sm:$0xff] }
 0x119   :  { %v1027_v32 = vadd.f32 %v1026_v20, %v15255_v49  ;;  %12060 = vmatmul.mubr.msk.f32.vlgmr.msra.gmra.mrb[60].mxu0 %vm5283_vm5, %v15312_v19  ;;  %v1595_v25 = vpop.f32.mrb[14].mxu0 }
 0x11a   :  { %12064 = vmatprep.mubr.msk.f32.mxu0 %vm5283_vm5, %v15317_v22  ;;  %v11556_v26 = vpop.f32.mrb[15].mxu0 }
 0x11b   :  { %v1028_v24 = vmax.f32 %v1027_v32, 0.0  ;;  %v15389_v32 = vld [vmem:[%s16768_s4 + $0x48] sm:$0xff] }
 0x11d   :  { %v1037_v27 = vmul.f32 %v9928_v23, %v1028_v24 }
 0x11e   :  { %v1190_v28 = vpop.f32.mrb[16].mxu1 }
 0x11f   :  { %v1194_v29 = vmax.f32 %v15253_v48, %v1190_v28  ;;  %v11501_v30 = vpop.f32.mrb[17].mxu1  ;;  %12062 = vmatprep.subr.mxu0 %v1037_v27  ;;  %12097 = vmatprep.subr.mxu1 %v1037_v27 }
 0x120   :  { %12063 = vmatpush3.msra.mxu0 %v1037_v27  ;;  %12098 = vmatpush3.msra.mxu1 %v1037_v27 }
 0x121   :  { %v1273_v33 = vmax.f32 %v1194_v29, %v1269_v2  ;;  %12102 = vmatprep.subr.mxu1 %v711_v7  ;;  %12100 = vmatmul.mubr.msk.f32.vlgmr.msra.gmra.mrb[68].mxu1 %vm5283_vm5, %v15291_v10  ;;  %v1764_v35 = vpop.f32.mrb[16].mxu0 }
 0x122   :  { %12103 = vmatpush3.msra.mxu1 %v711_v7  ;;  %12104 = vmatprep.mubr.msk.f32.mxu1 %vm5283_vm5, %v15297_v14  ;;  %v11578_v36 = vpop.f32.mrb[17].mxu0 }
 0x123   :  { %12065 = vmatmul.mubr.msk.f32.vlgmr.msra.gmra.mrb[60].mxu0 %vm5283_vm5, %v15331_v31  ;;  %v10032_v36 = vld [vmem:[%s16769_s3 + $0x6] ss:$0 sm:$0xff] }
 0x124   :  { %12069 = vmatprep.mubr.msk.f32.mxu0 %vm5283_vm5, %v15338_v34 }
 0x126   :  { %v1348_v37 = vpop.f32.mrb[18].mxu1 }
 0x127   :  { %v1352_v38 = vmax.f32 %v1273_v33, %v1348_v37  ;;  %v11523_v39 = vpop.f32.mrb[19].mxu1 }
 0x129   :  { %v1353_v40 = vadd.f32 %v1352_v38, %v15255_v49  ;;  %12105 = vmatmul.mubr.msk.f32.vlgmr.msra.gmra.mrb[68].mxu1 %vm5283_vm5, %v15312_v19  ;;  %v1921_v43 = vpop.f32.mrb[18].mxu0 }
 0x12a   :  { %12109 = vmatprep.mubr.msk.f32.mxu1 %vm5283_vm5, %v15317_v22  ;;  %v11600_v44 = vpop.f32.mrb[19].mxu0 }
 0x12b   :  { %v1354_v42 = vmax.f32 %v1353_v40, 0.0 }
 0x12d   :  { %v1363_v45 = vmul.f32 %v9954_v41, %v1354_v42  ;;  %v15417_v42 = vld [vmem:[%s16768_s4 + $0x58] sm:$0xff] }
 0x12e   :  { %v1516_v46 = vpop.f32.mrb[20].mxu1 }
 0x12f   :  { %v1520_v47 = vmax.f32 %v1438_v17, %v1516_v46  ;;  %v11545_v48 = vpop.f32.mrb[21].mxu1  ;;  %12107 = vmatprep.subr.mxu1 %v1363_v45 }
 0x130   :  { %12108 = vmatpush3.msra.mxu1 %v1363_v45  ;;  %v15424_v45 = vld [vmem:[%s16768_s4 + $0x60] sm:$0xff] }
 0x131   :  { %v1599_v50 = vmax.f32 %v1520_v47, %v1595_v25  ;;  %12110 = vmatmul.mubr.msk.f32.vlgmr.msra.gmra.mrb[68].mxu1 %vm5283_vm5, %v15331_v31  ;;  %v2090_v51 = vpop.f32.mrb[20].mxu0  ;;  %v15396_v25 = vld [vmem:[%s16768_s4 + $0x50] sm:$0xff] }
 0x132   :  { %12114 = vmatprep.mubr.msk.f32.mxu1 %vm5283_vm5, %v15338_v34  ;;  %v11622_v52 = vpop.f32.mrb[21].mxu0 }
 0x136   :  { %v1674_v53 = vpop.f32.mrb[22].mxu1 }
 0x137   :  { %v1678_v54 = vmax.f32 %v1599_v50, %v1674_v53  ;;  %v11567_v55 = vpop.f32.mrb[23].mxu1 }
 0x139   :  { %v1679_v56 = vadd.f32 %v1678_v54, %v15255_v49  ;;  %v2247_v59 = vpop.f32.mrb[22].mxu0  ;;  %v10058_v54 = vld [vmem:[%s16769_s3 + $0x7] ss:$0 sm:$0xff] }
 0x13a   :  { %v11644_v60 = vpop.f32.mrb[23].mxu0 }
 0x13b   :  { %v1680_v58 = vmax.f32 %v1679_v56, 0.0 }
 0x13d   :  { %v15362_v61 = vmul.f32 %v9980_v57, %v1680_v58 }
 0x13e   :  { %v1842_v62 = vpop.f32.mrb[24].mxu1 }
 0x13f   :  { %v1846_v1 = vmax.f32 %v1764_v35, %v1842_v62  ;;  %v11589_v2 = vpop.f32.mrb[25].mxu1  ;;  %12067 = vmatprep.subr.mxu0 %v15362_v61 }
 0x140   :  { %12068 = vmatpush3.msra.mxu0 %v15362_v61 }
 0x141   :  { %v1925_v4 = vmax.f32 %v1846_v1, %v1921_v43  ;;  %12070 = vmatmul.mubr.msk.f32.vlgmr.msra.gmra.mrb[60].mxu0 %vm5283_vm5, %v15367_v63  ;;  %v2416_v5 = vpop.f32.mrb[24].mxu0 }
 0x142   :  { %12074 = vmatprep.mubr.msk.f32.mxu0 %vm5283_vm5, %v15373_v3  ;;  %v11666_v7 = vpop.f32.mrb[25].mxu0 }
 0x146   :  { %v2000_v8 = vpop.f32.mrb[26].mxu1 }
 0x147   :  { %v2004_v11 = vmax.f32 %v1925_v4, %v2000_v8  ;;  %v11611_v12 = vpop.f32.mrb[27].mxu1 }
 0x149   :  { %v2005_v13 = vadd.f32 %v2004_v11, %v15255_v49  ;;  %v2573_v18 = vpop.f32.mrb[26].mxu0 }
 0x14a   :  { %v11688_v9 = vpop.f32.mrb[27].mxu0 }
 0x14b   :  { %v2006_v17 = vmax.f32 %v2005_v13, 0.0  ;;  %v10084_v13 = vld [vmem:[%s16769_s3 + $0x8] ss:$0 sm:$0xff] }
 0x14d   :  { %v15384_v20 = vmul.f32 %v10006_v15, %v2006_v17 }
 0x14e   :  { %v2168_v21 = vpop.f32.mrb[28].mxu1 }
 0x14f   :  { %v2172_v23 = vmax.f32 %v2090_v51, %v2168_v21  ;;  %v11633_v24 = vpop.f32.mrb[29].mxu1  ;;  %12072 = vmatprep.subr.mxu0 %v15384_v20  ;;  %12112 = vmatprep.subr.mxu1 %v15384_v20 }
 0x150   :  { %12073 = vmatpush3.msra.mxu0 %v15384_v20  ;;  %12113 = vmatpush3.msra.mxu1 %v15384_v20 }
 0x151   :  { %v2251_v26 = vmax.f32 %v2172_v23, %v2247_v59  ;;  %12075 = vmatmul.mubr.msk.f32.vlgmr.msra.gmra.mrb[60].mxu0 %vm5283_vm5, %v15389_v32  ;;  %12115 = vmatmul.mubr.msk.f32.vlgmr.msra.gmra.mrb[68].mxu1 %vm5283_vm5, %v15367_v63  ;;  %v2742_v27 = vpop.f32.mrb[28].mxu0  ;;  %v15460_v23 = vld [vmem:[%s16768_s4 + $0x68] sm:$0xff] }
 0x152   :  { %12119 = vmatprep.mubr.msk.f32.mxu1 %vm5283_vm5, %v15373_v3  ;;  %12079 = vmatprep.mubr.msk.f32.mxu0 %vm5283_vm5, %v15396_v25  ;;  %v11710_v28 = vpop.f32.mrb[29].mxu0 }
 0x156   :  { %v2326_v29 = vpop.f32.mrb[30].mxu1 }
 0x157   :  { %v2330_v30 = vmax.f32 %v2251_v26, %v2326_v29  ;;  %v11655_v33 = vpop.f32.mrb[31].mxu1 }
 0x159   :  { %v2331_v35 = vadd.f32 %v2330_v30, %v15255_v49  ;;  %v2899_v38 = vpop.f32.mrb[30].mxu0 }
 0x15a   :  { %v11732_v39 = vpop.f32.mrb[31].mxu0 }
 0x15b   :  { %v2332_v37 = vmax.f32 %v2331_v35, 0.0 }
 0x15d   :  { %v15412_v40 = vmul.f32 %v10032_v36, %v2332_v37 }
 0x15e   :  { %v2494_v41 = vpop.f32.mrb[32].mxu1 }
 0x15f   :  { %v2498_v43 = vmax.f32 %v2416_v5, %v2494_v41  ;;  %v11677_v44 = vpop.f32.mrb[33].mxu1  ;;  %12077 = vmatprep.subr.mxu0 %v15412_v40  ;;  %12117 = vmatprep.subr.mxu1 %v15412_v40  ;;  %v5277_v5 = vld [vmem:[%s16767_s5 + $0x8] sm:$0xff] }
 0x160   :  { %12078 = vmatpush3.msra.mxu0 %v15412_v40  ;;  %12118 = vmatpush3.msra.mxu1 %v15412_v40 }
 0x161   :  { %v2577_v46 = vmax.f32 %v2498_v43, %v2573_v18  ;;  %12120 = vmatmul.mubr.msk.f32.vlgmr.msra.gmra.mrb[68].mxu1 %vm5283_vm5, %v15389_v32  ;;  %12080 = vmatmul.mubr.msk.f32.vlgmr.msra.gmra.mrb[60].mxu0 %vm5283_vm5, %v15417_v42  ;;  %v3068_v47 = vpop.f32.mrb[32].mxu0 }
 0x162   :  { %12084 = vmatprep.mubr.msk.f32.mxu0 %vm5283_vm5, %v15424_v45  ;;  %12124 = vmatprep.mubr.msk.f32.mxu1 %vm5283_vm5, %v15396_v25  ;;  %v11754_v48 = vpop.f32.mrb[33].mxu0 }
 0x163   :  { %8128 = vperm.xlu1 %13871, %v5277_v5  }
 0x166   :  { %v2652_v50 = vpop.f32.mrb[34].mxu1 }
 0x167   :  { %v2656_v51 = vmax.f32 %v2577_v46, %v2652_v50  ;;  %v11699_v52 = vpop.f32.mrb[35].mxu1 }
 0x169   :  { %v2657_v53 = vadd.f32 %v2656_v51, %v15255_v49  ;;  %v3225_v56 = vpop.f32.mrb[34].mxu0  ;;  %v15489_v51 = vld [vmem:[%s16768_s4 + $0x80] sm:$0xff] }
 0x16a   :  { %v11776_v57 = vpop.f32.mrb[35].mxu0 }
 0x16b   :  { %v2658_v55 = vmax.f32 %v2657_v53, 0.0 }
 0x16d   :  { %v15440_v58 = vmul.f32 %v10058_v54, %v2658_v55 }
 0x16e   :  { %v2820_v59 = vpop.f32.mrb[36].mxu1 }
 0x16f   :  { %v2824_v60 = vmax.f32 %v2742_v27, %v2820_v59  ;;  %v11721_v62 = vpop.f32.mrb[37].mxu1  ;;  %12122 = vmatprep.subr.mxu1 %v15440_v58  ;;  %v15466_v27 = vld [vmem:[%s16768_s4 + $0x70] sm:$0xff] }
 0x170   :  { %12123 = vmatpush3.msra.mxu1 %v15440_v58 }
 0x171   :  { %v2903_v1 = vmax.f32 %v2824_v60, %v2899_v38  ;;  %12125 = vmatmul.mubr.msk.f32.vlgmr.msra.gmra.mrb[68].mxu1 %vm5283_vm5, %v15417_v42  ;;  %v3394_v2 = vpop.f32.mrb[36].mxu0  ;;  %v10110_v38 = vld [vmem:[%s16769_s3 + $0x9] ss:$0 sm:$0xff]  ;;  %v10136_v60 = vld [vmem:[%s16769_s3 + $0xa] ss:$0 sm:$0xff] }
 0x172   :  { %12129 = vmatprep.mubr.msk.f32.mxu1 %vm5283_vm5, %v15424_v45  ;;  %v11798_v4 = vpop.f32.mrb[37].mxu0 }
 0x176   :  { %v2978_v7 = vpop.f32.mrb[38].mxu1 }
 0x177   :  { %v2982_v8 = vmax.f32 %v2903_v1, %v2978_v7  ;;  %v11743_v11 = vpop.f32.mrb[39].mxu1  ;;  %v15510_v7 = vld [vmem:[%s16768_s4 + $0x88] sm:$0xff] }
 0x179   :  { %v2983_v12 = vadd.f32 %v2982_v8, %v15255_v49  ;;  %v3551_v17 = vpop.f32.mrb[38].mxu0 }
 0x17a   :  { %v11820_v18 = vpop.f32.mrb[39].mxu0 }
 0x17b   :  { %v2984_v15 = vmax.f32 %v2983_v12, 0.0 }
 0x17d   :  { %v15455_v9 = vmul.f32 %v10084_v13, %v2984_v15 }
 0x17e   :  { %v3146_v21 = vpop.f32.mrb[40].mxu1 }
 0x17f   :  { %v3150_v24 = vmax.f32 %v3068_v47, %v3146_v21  ;;  %v11765_v26 = vpop.f32.mrb[41].mxu1  ;;  %12082 = vmatprep.subr.mxu0 %v15455_v9  ;;  %v15482_v47 = vld [vmem:[%s16768_s4 + $0x78] sm:$0xff] }
 0x180   :  { %12083 = vmatpush3.msra.mxu0 %v15455_v9  ;;  %v10162_v26 = vld [vmem:[%s16769_s3 + $0xb] ss:$0 sm:$0xff] }
 0x181   :  { %v3229_v28 = vmax.f32 %v3150_v24, %v3225_v56  ;;  %12085 = vmatmul.mubr.msk.f32.vlgmr.msra.gmra.mrb[60].mxu0 %vm5283_vm5, %v15460_v23  ;;  %v3720_v29 = vpop.f32.mrb[40].mxu0 }
 0x182   :  { %12089 = vmatprep.mubr.msk.f32.mxu0 %vm5283_vm5, %v15466_v27  ;;  %v11842_v30 = vpop.f32.mrb[41].mxu0 }
 0x186   :  { %v3304_v33 = vpop.f32.mrb[42].mxu1 }
 0x187   :  { %v3308_v35 = vmax.f32 %v3229_v28, %v3304_v33  ;;  %v11787_v36 = vpop.f32.mrb[43].mxu1 }
 0x189   :  { %v3309_v37 = vadd.f32 %v3308_v35, %v15255_v49  ;;  %v3877_v41 = vpop.f32.mrb[42].mxu0 }
 0x18a   :  { %v11864_v43 = vpop.f32.mrb[43].mxu0 }
 0x18b   :  { %v3310_v39 = vmax.f32 %v3309_v37, 0.0 }
 0x18d   :  { %v15477_v44 = vmul.f32 %v10110_v38, %v3310_v39 }
 0x18e   :  { %v3472_v46 = vpop.f32.mrb[44].mxu1 }
 0x18f   :  { %v3476_v48 = vmax.f32 %v3394_v2, %v3472_v46  ;;  %v11809_v50 = vpop.f32.mrb[45].mxu1  ;;  %12087 = vmatprep.subr.mxu0 %v15477_v44  ;;  %12127 = vmatprep.subr.mxu1 %v15477_v44 }
 0x190   :  { %12088 = vmatpush3.msra.mxu0 %v15477_v44  ;;  %12128 = vmatpush3.msra.mxu1 %v15477_v44 }
 0x191   :  { %v3555_v52 = vmax.f32 %v3476_v48, %v3551_v17  ;;  %12090 = vmatmul.mubr.msk.f32.vlgmr.msra.gmra.mrb[60].mxu0 %vm5283_vm5, %v15482_v47  ;;  %12130 = vmatmul.mubr.msk.f32.vlgmr.msra.gmra.mrb[68].mxu1 %vm5283_vm5, %v15460_v23  ;;  %v4046_v53 = vpop.f32.mrb[44].mxu0 }
 0x192   :  { %12094 = vmatprep.mubr.msk.f32.mxu0 %vm5283_vm5, %v15489_v51  ;;  %12134 = vmatprep.mubr.msk.f32.mxu1 %vm5283_vm5, %v15466_v27  ;;  %v11886_v54 = vpop.f32.mrb[45].mxu0 }
 0x196   :  { %v3630_v55 = vpop.f32.mrb[46].mxu1 }
 0x197   :  { %v3634_v56 = vmax.f32 %v3555_v52, %v3630_v55  ;;  %v11831_v57 = vpop.f32.mrb[47].mxu1 }
 0x199   :  { %v3635_v59 = vadd.f32 %v3634_v56, %v15255_v49  ;;  %v4203_v1 = vpop.f32.mrb[46].mxu0 }
 0x19a   :  { %v11908_v2 = vpop.f32.mrb[47].mxu0 }
 0x19b   :  { %v3636_v62 = vmax.f32 %v3635_v59, 0.0 }
 0x19d   :  { %v15505_v4 = vmul.f32 %v10136_v60, %v3636_v62 }
 0x19e   :  { %v3798_v5 = vpop.f32.mrb[48].mxu1 }
 0x19f   :  { %v3802_v8 = vmax.f32 %v3720_v29, %v3798_v5  ;;  %v11853_v11 = vpop.f32.mrb[49].mxu1  ;;  %12092 = vmatprep.subr.mxu0 %v15505_v4  ;;  %12132 = vmatprep.subr.mxu1 %v15505_v4 }
 0x1a0   :  { %12093 = vmatpush3.msra.mxu0 %v15505_v4  ;;  %12133 = vmatpush3.msra.mxu1 %v15505_v4 }
 0x1a1   :  { %v3881_v12 = vmax.f32 %v3802_v8, %v3877_v41  ;;  %12095 = vmatmul.mubr.msk.f32.vlgmr.msra.gmra.mrb[60].mxu0 %vm5283_vm5, %v15510_v7  ;;  %12142 = vmatprep.subr.mxu0 %v15384_v20  ;;  %v4372_v13 = vpop.f32.mrb[48].mxu0  ;;  %v10240_v8 = vld [vmem:[%s16769_s3 + $0xe] ss:$0 sm:$0xff] }
 0x1a2   :  { %12143 = vmatpush3.msra.mxu0 %v15384_v20  ;;  %12144 = vmatprep.mubr.msk.f32.mxu0 %vm5283_vm5, %v15213_v16  ;;  %v11930_v15 = vpop.f32.mrb[49].mxu0 }
 0x1a3   :  { %12147 = vmatprep.subr.mxu0 %v15362_v61  ;;  %12135 = vmatmul.mubr.msk.f32.vlgmr.msra.gmra.mrb[68].mxu1 %vm5283_vm5, %v15482_v47 }
 0x1a4   :  { %12139 = vmatprep.mubr.msk.f32.mxu1 %vm5283_vm5, %v15489_v51 }
 0x1a5   :  { %12145 = vmatmul.mubr.msk.f32.vlgmr.msra.gmra.mrb[62].mxu0 %vm5283_vm5, %v15291_v10 }
 0x1a6   :  { %12148 = vmatpush3.msra.mxu0 %v15362_v61  ;;  %v3956_v17 = vpop.f32.mrb[50].mxu1  ;;  %12149 = vmatprep.mubr.msk.f32.mxu0 %vm5283_vm5, %v15297_v14 }
 0x1a7   :  { %v3960_v18 = vmax.f32 %v3881_v12, %v3956_v17  ;;  %12152 = vmatprep.subr.mxu0 %v15412_v40  ;;  %v11875_v21 = vpop.f32.mrb[51].mxu1 }
 0x1a8   :  { %v10266_v21 = vld [vmem:[%s16769_s3 + $0xf] ss:$0 sm:$0xff] }
 0x1a9   :  { %v3961_v24 = vadd.f32 %v3960_v18, %v15255_v49  ;;  %v4529_v29 = vpop.f32.mrb[50].mxu0 }
 0x1aa   :  { %v11952_v30 = vpop.f32.mrb[51].mxu0 }
 0x1ab   :  { %v3962_v28 = vmax.f32 %v3961_v24, 0.0  ;;  %v8140_v30 = vld [vmem:[%s16770_s6 + $0x10] sm:$0xff] }
 0x1ad   :  { %v15537_v33 = vmul.f32 %v10162_v26, %v3962_v28  ;;  %12150 = vmatmul.mubr.msk.f32.vlgmr.msra.gmra.mrb[62].mxu0 %vm5283_vm5, %v15312_v19  ;;  %v10357_v28 = vld [vmem:[%s16770_s6 + $0x90] sm:$0xff] }
 0x1ae   :  { %12153 = vmatpush3.msra.mxu0 %v15412_v40  ;;  %v4124_v61 = vpop.f32.mrb[52].mxu1  ;;  %12154 = vmatprep.mubr.msk.f32.mxu0 %vm5283_vm5, %v15317_v22 }
 0x1af   :  { %12157 = vmatprep.subr.mxu0 %v15455_v9  ;;  %12137 = vmatprep.subr.mxu1 %v15537_v33  ;;  %v4128_v35 = vmax.f32 %v4046_v53, %v4124_v61  ;;  %v11897_v36 = vpop.f32.mrb[53].mxu1  ;;  %v8141_v61 = vld [vmem:[%s16770_s6 + $0x18] sm:$0xff] }
 0x1b0   :  { %12138 = vmatpush3.msra.mxu1 %v15537_v33  ;;  %v10360_v36 = vld [vmem:[%s16770_s6 + $0xa8] sm:$0xff] }
 0x1b1   :  { %12140 = vmatmul.mubr.msk.f32.vlgmr.msra.gmra.mrb[68].mxu1 %vm5283_vm5, %v15510_v7  ;;  %12187 = vmatprep.subr.mxu1 %v15412_v40  ;;  %v4207_v37 = vmax.f32 %v4128_v35, %v4203_v1  ;;  %v4698_v38 = vpop.f32.mrb[52].mxu0  ;;  %v10359_v35 = vld [vmem:[%s16770_s6 + $0xa0] sm:$0xff] }
 0x1b2   :  { %12188 = vmatpush3.msra.mxu1 %v15412_v40  ;;  %12189 = vmatprep.mubr.msk.f32.mxu1 %vm5283_vm5, %v15213_v16  ;;  %v11974_v39 = vpop.f32.mrb[53].mxu0 }
 0x1b3   :  { %12192 = vmatprep.subr.mxu1 %v15384_v20  ;;  %v8143_v39 = vld [vmem:[%s16770_s6 + $0x28] sm:$0xff] }
 0x1b5   :  { %12155 = vmatmul.mubr.msk.f32.vlgmr.msra.gmra.mrb[62].mxu0 %vm5283_vm5, %v15331_v31  ;;  %12190 = vmatmul.mubr.msk.f32.vlgmr.msra.gmra.mrb[70].mxu1 %vm5283_vm5, %v15291_v10 }
 0x1b6   :  { %12158 = vmatpush3.msra.mxu0 %v15455_v9  ;;  %12193 = vmatpush3.msra.mxu1 %v15384_v20  ;;  %v4282_v41 = vpop.f32.mrb[54].mxu1 }
 0x1b7   :  { %v4286_v43 = vmax.f32 %v4207_v37, %v4282_v41  ;;  %12162 = vmatprep.subr.mxu0 %v15477_v44  ;;  %12197 = vmatprep.subr.mxu1 %v15440_v58  ;;  %v11919_v16 = vpop.f32.mrb[55].mxu1  ;;  %v13373_v37 = vpack.c.bf16 %v8141_v61, %v8140_v30  ;;  %v13352_v41 = vpack.c.bf16 %v10360_v36, %v10359_v35  ;;  %v10387_v30 = vld [vmem:[%s16770_s6 + $0x180] sm:$0xff]  ;;  %v10373_v36 = vld [vmem:[%s16770_s6 + $0x110] sm:$0xff] }
 0x1b8   :  { %12159 = vmatprep.mubr.msk.f32.mxu0 %vm5283_vm5, %v15338_v34  ;;  %12194 = vmatprep.mubr.msk.f32.mxu1 %vm5283_vm5, %v15297_v14  ;;  %v10361_v16 = vld [vmem:[%s16770_s6 + $0xb0] sm:$0xff] }
 0x1b9   :  { %v4855_v40 = vpop.f32.mrb[54].mxu0  ;;  %v4287_v10 = vadd.f32 %v4286_v43, %v15255_v49 }
 0x1ba   :  { %v11996_v46 = vpop.f32.mrb[55].mxu0 }
 0x1bb   :  { %v4288_v48 = vmax.f32 %v4287_v10, 0.0  ;;  %v8144_v46 = vld [vmem:[%s16770_s6 + $0x30] sm:$0xff]  ;;  %v8145_v10 = vld [vmem:[%s16770_s6 + $0x38] sm:$0xff] }
 0x1bd   :  { %12160 = vmatmul.mubr.msk.f32.vlgmr.msra.gmra.mrb[62].mxu0 %vm5283_vm5, %v15367_v63  ;;  %12195 = vmatmul.mubr.msk.f32.vlgmr.msra.gmra.mrb[70].mxu1 %vm5283_vm5, %v15312_v19  ;;  %v10188_v19 = vld [vmem:[%s16769_s3 + $0xc] ss:$0 sm:$0xff] }
 0x1be   :  { %12163 = vmatpush3.msra.mxu0 %v15477_v44  ;;  %12198 = vmatpush3.msra.mxu1 %v15440_v58  ;;  %v4450_v20 = vpop.f32.mrb[56].mxu1  ;;  %v4297_v53 = vmul.f32 %v10188_v19, %v4288_v48  ;;  %v10364_v48 = vld [vmem:[%s16770_s6 + $0xc8] sm:$0xff] }
 0x1bf   :  { %12167 = vmatprep.subr.mxu0 %v15505_v4  ;;  %12202 = vmatprep.subr.mxu1 %v15477_v44  ;;  %v4454_v14 = vmax.f32 %v4372_v13, %v4450_v20  ;;  %v11941_v9 = vpop.f32.mrb[57].mxu1 }
 0x1c0   :  { %12164 = vmatprep.mubr.msk.f32.mxu0 %vm5283_vm5, %v15373_v3  ;;  %12199 = vmatprep.mubr.msk.f32.mxu1 %vm5283_vm5, %v15317_v22  ;;  %v10363_v9 = vld [vmem:[%s16770_s6 + $0xc0] sm:$0xff] }
 0x1c1   :  { %v4533_v50 = vmax.f32 %v4454_v14, %v4529_v29  ;;  %v5024_v58 = vpop.f32.mrb[56].mxu0  ;;  %v10358_v29 = vld [vmem:[%s16770_s6 + $0x98] sm:$0xff]  ;;  %v13379_v14 = vpack.c.bf16 %v8145_v10, %v8144_v46  ;;  %v13358_v19 = vpack.c.bf16 %v10364_v48, %v10363_v9  ;;  %v10375_v46 = vld [vmem:[%s16770_s6 + $0x120] sm:$0xff]  ;;  %v10376_v10 = vld [vmem:[%s16770_s6 + $0x128] sm:$0xff] }
 0x1c2   :  { %v12018_v52 = vpop.f32.mrb[57].mxu0  ;;  %v13400_v9 = vpack.c.bf16 %v10376_v10, %v10375_v46  ;;  %v10411_v46 = vld [vmem:[%s16770_s6 + $0x240] sm:$0xff]  ;;  %v10412_v10 = vld [vmem:[%s16770_s6 + $0x248] sm:$0xff] }
 0x1c5   :  { %12165 = vmatmul.mubr.msk.f32.vlgmr.msra.gmra.mrb[62].mxu0 %vm5283_vm5, %v15389_v32  ;;  %12200 = vmatmul.mubr.msk.f32.vlgmr.msra.gmra.mrb[70].mxu1 %vm5283_vm5, %v15331_v31  ;;  %v10214_v31 = vld [vmem:[%s16769_s3 + $0xd] ss:$0 sm:$0xff] }
 0x1c6   :  { %12168 = vmatpush3.msra.mxu0 %v15505_v4  ;;  %12203 = vmatpush3.msra.mxu1 %v15477_v44  ;;  %v4608_v22 = vpop.f32.mrb[58].mxu1 }
 0x1c7   :  { %v4612_v54 = vmax.f32 %v4533_v50, %v4608_v22  ;;  %12172 = vmatprep.subr.mxu0 %v4297_v53  ;;  %12207 = vmatprep.subr.mxu1 %v15505_v4  ;;  %v11963_v55 = vpop.f32.mrb[59].mxu1  ;;  %v8146_v50 = vld [vmem:[%s16770_s6 + $0x40] sm:$0xff]  ;;  %v10366_v22 = vld [vmem:[%s16770_s6 + $0xd8] sm:$0xff] }
 0x1c8   :  { %12169 = vmatprep.mubr.msk.f32.mxu0 %vm5283_vm5, %v15396_v25  ;;  %12204 = vmatprep.mubr.msk.f32.mxu1 %vm5283_vm5, %v15338_v34 }
 0x1c9   :  { %v4613_v56 = vadd.f32 %v4612_v54, %v15255_v49  ;;  %v5181_v44 = vpop.f32.mrb[58].mxu0  ;;  %v8148_v54 = vld [vmem:[%s16770_s6 + $0x50] sm:$0xff] }
 0x1ca   :  { %v12040_v59 = vpop.f32.mrb[59].mxu0 }
 0x1cb   :  { %v4614_v57 = vmax.f32 %v4613_v56, 0.0  ;;  %v8149_v56 = vld [vmem:[%s16770_s6 + $0x58] sm:$0xff]  ;;  %v8150_v59 = vld [vmem:[%s16770_s6 + $0x60] sm:$0xff] }
 0x1cd   :  { %v4623_v60 = vmul.f32 %v10214_v31, %v4614_v57  ;;  %12170 = vmatmul.mubr.msk.f32.vlgmr.msra.gmra.mrb[62].mxu0 %vm5283_vm5, %v15417_v42  ;;  %12205 = vmatmul.mubr.msk.f32.vlgmr.msra.gmra.mrb[70].mxu1 %vm5283_vm5, %v15367_v63  ;;  %v13385_v31 = vpack.c.bf16 %v8149_v56, %v8148_v54  ;;  %v10367_v57 = vld [vmem:[%s16770_s6 + $0xe0] sm:$0xff] }
 0x1ce   :  { %12173 = vmatpush3.msra.mxu0 %v4297_v53  ;;  %12208 = vmatpush3.msra.mxu1 %v15505_v4  ;;  %v4776_v34 = vpop.f32.mrb[60].mxu1  ;;  %v10365_v53 = vld [vmem:[%s16770_s6 + $0xd0] sm:$0xff]  ;;  %v10379_v54 = vld [vmem:[%s16770_s6 + $0x140] sm:$0xff] }
 0x1cf   :  { %12212 = vmatprep.subr.mxu1 %v15537_v33  ;;  %12177 = vmatprep.subr.mxu0 %v4623_v60  ;;  %v4780_v62 = vmax.f32 %v4698_v38, %v4776_v34  ;;  %v11985_v1 = vpop.f32.mrb[61].mxu1  ;;  %v8142_v38 = vld [vmem:[%s16770_s6 + $0x20] sm:$0xff]  ;;  %v13361_v55 = vpack.c.bf16 %v10366_v22, %v10365_v53  ;;  %v8151_v34 = vld [vmem:[%s16770_s6 + $0x68] sm:$0xff] }
 0x1d0   :  { %12174 = vmatprep.mubr.msk.f32.mxu0 %vm5283_vm5, %v15424_v45  ;;  %12209 = vmatprep.mubr.msk.f32.mxu1 %vm5283_vm5, %v15373_v3  ;;  %v13376_v43 = vpack.c.bf16 %v8143_v39, %v8142_v38  ;;  %v10369_v1 = vld [vmem:[%s16770_s6 + $0xf0] sm:$0xff]  ;;  %v10390_v39 = vld [vmem:[%s16770_s6 + $0x198] sm:$0xff]  ;;  %v10395_v56 = vld [vmem:[%s16770_s6 + $0x1c0] sm:$0xff] }
 0x1d1   :  { %v4859_v2 = vmax.f32 %v4780_v62, %v4855_v40  ;;  %v10362_v40 = vld [vmem:[%s16770_s6 + $0xb8] sm:$0xff]  ;;  %v13388_v62 = vpack.c.bf16 %v8151_v34, %v8150_v59  ;;  %v10389_v38 = vld [vmem:[%s16770_s6 + $0x190] sm:$0xff] }
 0x1d2   :  { %v13355_v20 = vpack.c.bf16 %v10362_v40, %v10361_v16  ;;  %v13421_v40 = vpack.c.bf16 %v10390_v39, %v10389_v38  ;;  %v10381_v59 = vld [vmem:[%s16770_s6 + $0x150] sm:$0xff]  ;;  %v10410_v39 = vld [vmem:[%s16770_s6 + $0x238] sm:$0xff] }
 0x1d3   :  { %v10397_v34 = vld [vmem:[%s16770_s6 + $0x1d0] sm:$0xff] }
 0x1d4   :  { %v10409_v38 = vld [vmem:[%s16770_s6 + $0x230] sm:$0xff] }
 0x1d5   :  { %12175 = vmatmul.mubr.msk.f32.vlgmr.msra.gmra.mrb[62].mxu0 %vm5283_vm5, %v15460_v23  ;;  %12210 = vmatmul.mubr.msk.f32.vlgmr.msra.gmra.mrb[70].mxu1 %vm5283_vm5, %v15389_v32 }
 0x1d6   :  { %12178 = vmatpush3.msra.mxu0 %v4623_v60  ;;  %12213 = vmatpush3.msra.mxu1 %v15537_v33  ;;  %v4934_v63 = vpop.f32.mrb[62].mxu1  ;;  %v13349_v33 = vpack.c.bf16 %v10358_v29, %v10357_v28  ;;  %v10371_v28 = vld [vmem:[%s16770_s6 + $0x100] sm:$0xff]  ;;  %v10372_v29 = vld [vmem:[%s16770_s6 + $0x108] sm:$0xff] }
 0x1d7   :  { %v4938_v4 = vmax.f32 %v4859_v2, %v4934_v63  ;;  %12217 = vmatprep.subr.mxu1 %v4623_v60  ;;  %v12007_v5 = vpop.f32.mrb[63].mxu1  ;;  %12179 = vmatprep.mubr.msk.f32.mxu0 %vm5283_vm5, %v15466_v27  ;;  %v10370_v2 = vld [vmem:[%s16770_s6 + $0xf8] sm:$0xff]  ;;  %v8152_v63 = vld [vmem:[%s16770_s6 + $0x70] sm:$0xff]  ;;  %v13394_v61 = vpack.c.bf16 %v10372_v29, %v10371_v28 }
 0x1d8   :  { %12214 = vmatprep.mubr.msk.f32.mxu1 %vm5283_vm5, %v15396_v25  ;;  %v8153_v5 = vld [vmem:[%s16770_s6 + $0x78] sm:$0xff] }
 0x1d9   :  { %v4939_v3 = vadd.f32 %v4938_v4, %v15255_v49  ;;  %v13367_v4 = vpack.c.bf16 %v10370_v2, %v10369_v1 }
 0x1db   :  { %v4940_v32 = vmax.f32 %v4939_v3, 0.0  ;;  %v13391_v3 = vpack.c.bf16 %v8153_v5, %v8152_v63  ;;  %v10383_v63 = vld [vmem:[%s16770_s6 + $0x160] sm:$0xff] }
 0x1dc   :  { %v10399_v5 = vld [vmem:[%s16770_s6 + $0x1e0] sm:$0xff] }
 0x1dd   :  { %v4949_v11 = vmul.f32 %v10240_v8, %v4940_v32  ;;  %12180 = vmatmul.mubr.msk.f32.vlgmr.msra.gmra.mrb[62].mxu0 %vm5283_vm5, %v15482_v47  ;;  %12215 = vmatmul.mubr.msk.f32.vlgmr.msra.gmra.mrb[70].mxu1 %vm5283_vm5, %v15417_v42 }
 0x1de   :  { %12218 = vmatpush3.msra.mxu1 %v4623_v60  ;;  %v5102_v12 = vpop.f32.mrb[64].mxu1  ;;  %12184 = vmatprep.mubr.msk.f32.mxu0 %vm5283_vm5, %v15489_v51 }
 0x1df   :  { %12182 = vmatprep.subr.mxu0 %v4949_v11  ;;  %12222 = vmatprep.subr.mxu1 %v4949_v11  ;;  %v5106_v25 = vmax.f32 %v5024_v58, %v5102_v12  ;;  %v12029_v13 = vpop.f32.mrb[65].mxu1  ;;  %v8147_v58 = vld [vmem:[%s16770_s6 + $0x48] sm:$0xff] }
 0x1e0   :  { %12183 = vmatpush3.msra.mxu0 %v4949_v11  ;;  %12219 = vmatprep.mubr.msk.f32.mxu1 %vm5283_vm5, %v15424_v45  ;;  %v13382_v52 = vpack.c.bf16 %v8147_v58, %v8146_v50  ;;  %v10377_v50 = vld [vmem:[%s16770_s6 + $0x130] sm:$0xff] }
 0x1e1   :  { %v5185_v15 = vmax.f32 %v5106_v25, %v5181_v44  ;;  %13345 = vmatprep.subr.bf16.mxu0 %v13877_v0  ;;  %v10368_v44 = vld [vmem:[%s16770_s6 + $0xe8] sm:$0xff]  ;;  %v10393_v58 = vld [vmem:[%s16770_s6 + $0x1b0] sm:$0xff] }
 0x1e2   :  { %v13364_v60 = vpack.c.bf16 %v10368_v44, %v10367_v57 }
 0x1e5   :  { %12185 = vmatmul.mubr.msk.f32.vlgmr.msra.gmra.mrb[62].mxu0 %vm5283_vm5, %v15510_v7  ;;  %12220 = vmatmul.mubr.msk.f32.vlgmr.msra.gmra.mrb[70].mxu1 %vm5283_vm5, %v15460_v23 }
 0x1e6   :  { %12223 = vmatpush3.msra.mxu1 %v4949_v11  ;;  %v5260_v42 = vpop.f32.mrb[66].mxu1  ;;  %12224 = vmatprep.mubr.msk.f32.mxu1 %vm5283_vm5, %v15466_v27  ;;  %v10356_v27 = vld [vmem:[%s16770_s6 + $0x88] sm:$0xff] }
 0x1e7   :  { %v5264_v17 = vmax.f32 %v5185_v15, %v5260_v42  ;;  %v12051_v18 = vpop.f32.mrb[67].mxu1  ;;  %12264 = vmatprep.mubr.msk.f32.mxu0 %vm13878_vm1, %v13879_v6 }
 0x1e9   :  { %v5265_v45 = vadd.f32 %v5264_v17, %v15255_v49  ;;  %v10355_v49 = vld [vmem:[%s16770_s6 + $0x80] sm:$0xff] }
 0x1eb   :  { %v5266_v24 = vmax.f32 %v5265_v45, 0.0 }
 0x1ed   :  { %12225 = vmatmul.mubr.msk.f32.vlgmr.msra.gmra.mrb[70].mxu1 %vm5283_vm5, %v15482_v47  ;;  %v5275_v23 = vmul.f32 %v10266_v21, %v5266_v24  ;;  %v8138_v47 = vld [vmem:[%s16770_s6] sm:$0xff]  ;;  %v8129_v21 = vpop.permute.xlu1 %8128 }
 0x1ee   :  { %12229 = vmatprep.mubr.msk.f32.mxu1 %vm5283_vm5, %v15489_v51  ;;  %v13346_v51 = vpack.c.bf16 %v10356_v27, %v10355_v49  ;;  %v8124_v27 = vpop.permute.xlu0 %8123 }
 0x1ef   :  { %12227 = vmatprep.subr.mxu1 %v5275_v23 }
 0x1f0   :  { %12228 = vmatpush3.msra.mxu1 %v5275_v23  ;;  %13347 = vmatpush3.bf16.msra.mxu0 %v13346_v51 }
 0x1f1   :  { %13369 = vmatprep.subr.bf16.mxu1 %v13877_v0  ;;  %13348 = vmatprep.subr.bf16.mxu0 %v13877_v0 }
 0x1f4   :  { %13350 = vmatpush3.bf16.msra.mxu0 %v13349_v33  ;;  %v10388_v33 = vld [vmem:[%s16770_s6 + $0x188] sm:$0xff] }
 0x1f5   :  { %12230 = vmatmul.mubr.msk.f32.vlgmr.msra.gmra.mrb[70].mxu1 %vm5283_vm5, %v15510_v7  ;;  %v8139_v7 = vld [vmem:[%s16770_s6 + $0x8] sm:$0xff]  ;;  %13351 = vmatprep.subr.bf16.mxu0 %v13877_v0  ;;  %v13418_v35 = vpack.c.bf16 %v10388_v33, %v10387_v30  ;;  %v10407_v30 = vld [vmem:[%s16770_s6 + $0x220] sm:$0xff] }
 0x1f6   :  { %12299 = vmatprep.mubr.msk.f32.mxu1 %vm13878_vm1, %v13879_v6  ;;  %v13370_v26 = vpack.c.bf16 %v8139_v7, %v8138_v47  ;;  %v10408_v33 = vld [vmem:[%s16770_s6 + $0x228] sm:$0xff] }
 0x1f8   :  { %13371 = vmatpush3.bf16.msra.mxu1 %v13370_v26  ;;  %13353 = vmatpush3.bf16.msra.mxu0 %v13352_v41 }
 0x1f9   :  { %13372 = vmatprep.subr.bf16.mxu1 %v13877_v0  ;;  %13354 = vmatprep.subr.bf16.mxu0 %v13877_v0 }
 0x1fc   :  { %13374 = vmatpush3.bf16.msra.mxu1 %v13373_v37  ;;  %13356 = vmatpush3.bf16.msra.mxu0 %v13355_v20  ;;  %v10374_v37 = vld [vmem:[%s16770_s6 + $0x118] sm:$0xff]  ;;  %v10391_v20 = vld [vmem:[%s16770_s6 + $0x1a0] sm:$0xff] }
 0x1fd   :  { %13375 = vmatprep.subr.bf16.mxu1 %v13877_v0  ;;  %13357 = vmatprep.subr.bf16.mxu0 %v13877_v0  ;;  %v13397_v16 = vpack.c.bf16 %v10374_v37, %v10373_v36  ;;  %v13448_v36 = vpack.c.bf16 %v10408_v33, %v10407_v30  ;;  %v10443_v30 = vld [vmem:[%s16770_s6 + $0x340] sm:$0xff]  ;;  %v10444_v33 = vld [vmem:[%s16770_s6 + $0x348] sm:$0xff] }
 0x200   :  { %13377 = vmatpush3.bf16.msra.mxu1 %v13376_v43  ;;  %13359 = vmatpush3.bf16.msra.mxu0 %v13358_v19  ;;  %v10378_v19 = vld [vmem:[%s16770_s6 + $0x138] sm:$0xff] }
 0x201   :  { %13378 = vmatprep.subr.bf16.mxu1 %v13877_v0  ;;  %13360 = vmatprep.subr.bf16.mxu0 %v13877_v0  ;;  %v13403_v53 = vpack.c.bf16 %v10378_v19, %v10377_v50  ;;  %v10413_v50 = vld [vmem:[%s16770_s6 + $0x250] sm:$0xff]  ;;  %v10414_v19 = vld [vmem:[%s16770_s6 + $0x258] sm:$0xff] }
 0x204   :  { %13380 = vmatpush3.bf16.msra.mxu1 %v13379_v14  ;;  %13362 = vmatpush3.bf16.msra.mxu0 %v13361_v55  ;;  %v10392_v14 = vld [vmem:[%s16770_s6 + $0x1a8] sm:$0xff] }
 0x205   :  { %13381 = vmatprep.subr.bf16.mxu1 %v13877_v0  ;;  %13363 = vmatprep.subr.bf16.mxu0 %v13877_v0  ;;  %v13424_v48 = vpack.c.bf16 %v10392_v14, %v10391_v20  ;;  %v10380_v55 = vld [vmem:[%s16770_s6 + $0x148] sm:$0xff]  ;;  %v10427_v20 = vld [vmem:[%s16770_s6 + $0x2c0] sm:$0xff] }
 0x206   :  { %v13406_v57 = vpack.c.bf16 %v10380_v55, %v10379_v54  ;;  %v10428_v14 = vld [vmem:[%s16770_s6 + $0x2c8] sm:$0xff]  ;;  %v10415_v54 = vld [vmem:[%s16770_s6 + $0x260] sm:$0xff] }
 0x207   :  { %v10416_v55 = vld [vmem:[%s16770_s6 + $0x268] sm:$0xff] }
 0x208   :  { %13383 = vmatpush3.bf16.msra.mxu1 %v13382_v52  ;;  %13365 = vmatpush3.bf16.msra.mxu0 %v13364_v60  ;;  %v10394_v52 = vld [vmem:[%s16770_s6 + $0x1b8] sm:$0xff] }
 0x209   :  { %13384 = vmatprep.subr.bf16.mxu1 %v13877_v0  ;;  %13366 = vmatprep.subr.bf16.mxu0 %v13877_v0  ;;  %v13427_v22 = vpack.c.bf16 %v10394_v52, %v10393_v58  ;;  %v10382_v60 = vld [vmem:[%s16770_s6 + $0x158] sm:$0xff]  ;;  %v10429_v58 = vld [vmem:[%s16770_s6 + $0x2d0] sm:$0xff] }
 0x20a   :  { %v13409_v1 = vpack.c.bf16 %v10382_v60, %v10381_v59  ;;  %v10430_v52 = vld [vmem:[%s16770_s6 + $0x2d8] sm:$0xff]  ;;  %v10417_v59 = vld [vmem:[%s16770_s6 + $0x270] sm:$0xff] }
 0x20b   :  { %v10418_v60 = vld [vmem:[%s16770_s6 + $0x278] sm:$0xff] }
 0x20c   :  { %13386 = vmatpush3.bf16.msra.mxu1 %v13385_v31  ;;  %13368 = vmatpush3.bf16.msra.mxu0 %v13367_v4  ;;  %v10396_v31 = vld [vmem:[%s16770_s6 + $0x1c8] sm:$0xff] }
 0x20d   :  { %13387 = vmatprep.subr.bf16.mxu1 %v13877_v0  ;;  %13393 = vmatprep.subr.bf16.mxu0 %v13877_v0  ;;  %v13430_v44 = vpack.c.bf16 %v10396_v31, %v10395_v56  ;;  %v10384_v4 = vld [vmem:[%s16770_s6 + $0x168] sm:$0xff]  ;;  %v10431_v56 = vld [vmem:[%s16770_s6 + $0x2e0] sm:$0xff] }
 0x20e   :  { %v10432_v31 = vld [vmem:[%s16770_s6 + $0x2e8] sm:$0xff] }
 0x210   :  { %13389 = vmatpush3.bf16.msra.mxu1 %v13388_v62  ;;  %v10398_v62 = vld [vmem:[%s16770_s6 + $0x1d8] sm:$0xff] }
 0x211   :  { %13390 = vmatprep.subr.bf16.mxu1 %v13877_v0  ;;  %v13433_v2 = vpack.c.bf16 %v10398_v62, %v10397_v34  ;;  %v10433_v34 = vld [vmem:[%s16770_s6 + $0x2f0] sm:$0xff]  ;;  %v10434_v62 = vld [vmem:[%s16770_s6 + $0x2f8] sm:$0xff] }
 0x214   :  { %13392 = vmatpush3.bf16.msra.mxu1 %v13391_v3  ;;  %v10400_v3 = vld [vmem:[%s16770_s6 + $0x1e8] sm:$0xff] }
 0x215   :  { %13417 = vmatprep.subr.bf16.mxu1 %v13877_v0 }
 0x274   :  { %v12096_v8 = vpop.f32.mrb[60].mxu0 }
 0x275   :  { %v6037_v32 = vpop.f32.mrb[61].mxu0 }
 0x284   :  { %v12141_v11 = vpop.f32.mrb[68].mxu1 }
 0x285   :  { %v6738_v12 = vmax.f32 %v12096_v8, %v12141_v11  ;;  %v6726_v25 = vpop.f32.mrb[69].mxu1  ;;  %v13412_v8 = vpack.c.bf16 %v10384_v4, %v10383_v63  ;;  %v10385_v11 = vld [vmem:[%s16770_s6 + $0x170] sm:$0xff]  ;;  %v10435_v63 = vld [vmem:[%s16770_s6 + $0x300] sm:$0xff]  ;;  %v10436_v4 = vld [vmem:[%s16770_s6 + $0x308] sm:$0xff] }
 0x286   :  { %v6737_v13 = vmax.f32 %v6037_v32, %v6726_v25  ;;  %v13436_v32 = vpack.c.bf16 %v10400_v3, %v10399_v5  ;;  %v10401_v25 = vld [vmem:[%s16770_s6 + $0x1f0] sm:$0xff]  ;;  %v10451_v5 = vld [vmem:[%s16770_s6 + $0x380] sm:$0xff]  ;;  %v10452_v3 = vld [vmem:[%s16770_s6 + $0x388] sm:$0xff] }
 0x2b8   :  { %v12186_v15 = vpop.f32.mrb[62].mxu0 }
 0x2b9   :  { %v7429_v42 = vmax.f32 %v6738_v12, %v12186_v15  ;;  %v7417_v17 = vpop.f32.mrb[63].mxu0  ;;  %v10386_v12 = vld [vmem:[%s16770_s6 + $0x178] sm:$0xff] }
 0x2ba   :  { %v7428_v18 = vmax.f32 %v6737_v13, %v7417_v17  ;;  %v10402_v13 = vld [vmem:[%s16770_s6 + $0x1f8] sm:$0xff]  ;;  %v13415_v15 = vpack.c.bf16 %v10386_v12, %v10385_v11  ;;  %v10403_v17 = vld [vmem:[%s16770_s6 + $0x200] sm:$0xff]  ;;  %v10437_v11 = vld [vmem:[%s16770_s6 + $0x310] sm:$0xff] }
 0x2bb   :  { %v10438_v12 = vld [vmem:[%s16770_s6 + $0x318] sm:$0xff] }
 0x2c8   :  { %v12231_v45 = vpop.f32.mrb[70].mxu1 }
 0x2c9   :  { %v8120_v24 = vmax.f32 %v7429_v42, %v12231_v45  ;;  %v8108_v23 = vpop.f32.mrb[71].mxu1  ;;  %v13439_v42 = vpack.c.bf16 %v10402_v13, %v10401_v25  ;;  %v10419_v45 = vld [vmem:[%s16770_s6 + $0x280] sm:$0xff]  ;;  %v10453_v25 = vld [vmem:[%s16770_s6 + $0x390] sm:$0xff]  ;;  %v10454_v13 = vld [vmem:[%s16770_s6 + $0x398] sm:$0xff] }
 0x2ca   :  { %v8119_v49 = vmax.f32 %v7428_v18, %v8108_v23  ;;  %v10404_v18 = vld [vmem:[%s16770_s6 + $0x208] sm:$0xff] }
 0x2cb   :  { %v8132_v47 = vadd.f32 %v8129_v21, %v8120_v24  ;;  %v10420_v21 = vld [vmem:[%s16770_s6 + $0x288] sm:$0xff]  ;;  %v13442_v24 = vpack.c.bf16 %v10404_v18, %v10403_v17  ;;  %v13493_v17 = vpack.c.bf16 %v10438_v12, %v10437_v11  ;;  %v13517_v18 = vpack.c.bf16 %v10454_v13, %v10453_v25  ;;  %v10473_v25 = vld [vmem:[%s16770_s6 + $0x430] sm:$0xff]  ;;  %v10474_v13 = vld [vmem:[%s16770_s6 + $0x438] sm:$0xff] }
 0x2cc   :  { %v8131_v51 = vadd.f32 %v8124_v27, %v8119_v49  ;;  %v13466_v23 = vpack.c.bf16 %v10420_v21, %v10419_v45  ;;  %v10405_v49 = vld [vmem:[%s16770_s6 + $0x210] sm:$0xff]  ;;  %v10406_v27 = vld [vmem:[%s16770_s6 + $0x218] sm:$0xff]  ;;  %v10439_v45 = vld [vmem:[%s16770_s6 + $0x320] sm:$0xff] }
 0x2cd   :  { %v8134_v7 = vmax.f32 %v8132_v47, 0.0  ;;  %v10421_v47 = vld [vmem:[%s16770_s6 + $0x290] sm:$0xff]  ;;  %v13445_v28 = vpack.c.bf16 %v10406_v27, %v10405_v49  ;;  %v10440_v21 = vld [vmem:[%s16770_s6 + $0x328] sm:$0xff] }
 0x2ce   :  { %v8133_v26 = vmax.f32 %v8131_v51, 0.0  ;;  %v10422_v51 = vld [vmem:[%s16770_s6 + $0x298] sm:$0xff]  ;;  %v13496_v49 = vpack.c.bf16 %v10440_v21, %v10439_v45  ;;  %v10475_v45 = vld [vmem:[%s16770_s6 + $0x440] sm:$0xff]  ;;  %v10476_v21 = vld [vmem:[%s16770_s6 + $0x448] sm:$0xff] }
 0x2cf   :  { %8136 = vst [vmem:[#allocation2 + $0x8] sm:$0xff] %v8134_v7  ;;  %v13469_v29 = vpack.c.bf16 %v10422_v51, %v10421_v47  ;;  %v10441_v47 = vld [vmem:[%s16770_s6 + $0x330] sm:$0xff]  ;;  %v10442_v51 = vld [vmem:[%s16770_s6 + $0x338] sm:$0xff] }
 0x2d0   :  { %8135 = vst [vmem:[#allocation2] sm:$0xff] %v8133_v26 }
 0x2d7   :  { %v8154_v41 = vld [vmem:[#allocation2 + $0x1] sm:$0x1]  ;;  %v8137_v43 = vld [vmem:[#allocation2] sm:$0x1]  ;;  %v8312_v7 = vld [vmem:[#allocation2 + $0x2] sm:$0x1] }
 0x2d8   :  { %12265 = vmatmul.mubr.f32.vlgmr.msra.gmra.mrb[64].mxu0 %v8154_v41  ;;  %12300 = vmatmul.mubr.f32.vlgmr.msra.gmra.mrb[72].mxu1 %v8137_v43  ;;  %v8401_v26 = vld [vmem:[#allocation2 + $0x3] sm:$0x1]  ;;  %v10425_v41 = vld [vmem:[%s16770_s6 + $0x2b0] sm:$0xff]  ;;  %v10426_v43 = vld [vmem:[%s16770_s6 + $0x2b8] sm:$0xff] }
 0x2d9   :  { %13395 = vmatpush3.bf16.msra.mxu0 %v13394_v61  ;;  %13419 = vmatpush3.bf16.msra.mxu1 %v13418_v35  ;;  %v10423_v61 = vld [vmem:[%s16770_s6 + $0x2a0] sm:$0xff]  ;;  %v10424_v35 = vld [vmem:[%s16770_s6 + $0x2a8] sm:$0xff] }
 0x2da   :  { %13396 = vmatprep.subr.bf16.mxu0 %v13877_v0  ;;  %13420 = vmatprep.subr.bf16.mxu1 %v13877_v0  ;;  %v13472_v37 = vpack.c.bf16 %v10424_v35, %v10423_v61  ;;  %v10459_v61 = vld [vmem:[%s16770_s6 + $0x3c0] sm:$0xff]  ;;  %v10460_v35 = vld [vmem:[%s16770_s6 + $0x3c8] sm:$0xff] }
 0x2db   :  { %12334 = vmatprep.mubr.msk.f32.mxu0 %vm13878_vm1, %v13879_v6  ;;  %12369 = vmatprep.mubr.msk.f32.mxu1 %vm13878_vm1, %v13879_v6 }
 0x2dd   :  { %13398 = vmatpush3.bf16.msra.mxu0 %v13397_v16  ;;  %13422 = vmatpush3.bf16.msra.mxu1 %v13421_v40  ;;  %v13451_v16 = vpack.c.bf16 %v10410_v39, %v10409_v38  ;;  %v13475_v40 = vpack.c.bf16 %v10426_v43, %v10425_v41  ;;  %v10445_v38 = vld [vmem:[%s16770_s6 + $0x350] sm:$0xff]  ;;  %v10446_v39 = vld [vmem:[%s16770_s6 + $0x358] sm:$0xff] }
 0x2de   :  { %13399 = vmatprep.subr.bf16.mxu0 %v13877_v0  ;;  %13423 = vmatprep.subr.bf16.mxu1 %v13877_v0  ;;  %v10461_v41 = vld [vmem:[%s16770_s6 + $0x3d0] sm:$0xff]  ;;  %v10462_v43 = vld [vmem:[%s16770_s6 + $0x3d8] sm:$0xff] }
 0x2e1   :  { %13401 = vmatpush3.bf16.msra.mxu0 %v13400_v9  ;;  %13425 = vmatpush3.bf16.msra.mxu1 %v13424_v48  ;;  %v13454_v9 = vpack.c.bf16 %v10412_v10, %v10411_v46  ;;  %v13478_v48 = vpack.c.bf16 %v10428_v14, %v10427_v20  ;;  %v10447_v46 = vld [vmem:[%s16770_s6 + $0x360] sm:$0xff]  ;;  %v10448_v10 = vld [vmem:[%s16770_s6 + $0x368] sm:$0xff] }
 0x2e2   :  { %13402 = vmatprep.subr.bf16.mxu0 %v13877_v0  ;;  %13426 = vmatprep.subr.bf16.mxu1 %v13877_v0  ;;  %v10463_v20 = vld [vmem:[%s16770_s6 + $0x3e0] sm:$0xff]  ;;  %v10464_v14 = vld [vmem:[%s16770_s6 + $0x3e8] sm:$0xff] }
 0x2e5   :  { %13404 = vmatpush3.bf16.msra.mxu0 %v13403_v53  ;;  %13428 = vmatpush3.bf16.msra.mxu1 %v13427_v22  ;;  %v13457_v53 = vpack.c.bf16 %v10414_v19, %v10413_v50  ;;  %v13481_v22 = vpack.c.bf16 %v10430_v52, %v10429_v58  ;;  %v10449_v50 = vld [vmem:[%s16770_s6 + $0x370] sm:$0xff]  ;;  %v10450_v19 = vld [vmem:[%s16770_s6 + $0x378] sm:$0xff] }
 0x2e6   :  { %13405 = vmatprep.subr.bf16.mxu0 %v13877_v0  ;;  %13429 = vmatprep.subr.bf16.mxu1 %v13877_v0  ;;  %v10465_v58 = vld [vmem:[%s16770_s6 + $0x3f0] sm:$0xff]  ;;  %v10466_v52 = vld [vmem:[%s16770_s6 + $0x3f8] sm:$0xff] }
 0x2e9   :  { %13407 = vmatpush3.bf16.msra.mxu0 %v13406_v57  ;;  %13431 = vmatpush3.bf16.msra.mxu1 %v13430_v44  ;;  %v13460_v57 = vpack.c.bf16 %v10416_v55, %v10415_v54  ;;  %v13484_v44 = vpack.c.bf16 %v10432_v31, %v10431_v56  ;;  %v10467_v54 = vld [vmem:[%s16770_s6 + $0x400] sm:$0xff]  ;;  %v10468_v55 = vld [vmem:[%s16770_s6 + $0x408] sm:$0xff] }
 0x2ea   :  { %13408 = vmatprep.subr.bf16.mxu0 %v13877_v0  ;;  %13432 = vmatprep.subr.bf16.mxu1 %v13877_v0  ;;  %v10483_v56 = vld [vmem:[%s16770_s6 + $0x480] sm:$0xff]  ;;  %v10484_v31 = vld [vmem:[%s16770_s6 + $0x488] sm:$0xff] }
 0x2ed   :  { %13410 = vmatpush3.bf16.msra.mxu0 %v13409_v1  ;;  %13434 = vmatpush3.bf16.msra.mxu1 %v13433_v2  ;;  %v13463_v1 = vpack.c.bf16 %v10418_v60, %v10417_v59  ;;  %v13487_v2 = vpack.c.bf16 %v10434_v62, %v10433_v34  ;;  %v10469_v59 = vld [vmem:[%s16770_s6 + $0x410] sm:$0xff]  ;;  %v10470_v60 = vld [vmem:[%s16770_s6 + $0x418] sm:$0xff] }
 0x2ee   :  { %13411 = vmatprep.subr.bf16.mxu0 %v13877_v0  ;;  %13435 = vmatprep.subr.bf16.mxu1 %v13877_v0  ;;  %v10485_v34 = vld [vmem:[%s16770_s6 + $0x490] sm:$0xff]  ;;  %v10486_v62 = vld [vmem:[%s16770_s6 + $0x498] sm:$0xff] }
 0x2f1   :  { %13413 = vmatpush3.bf16.msra.mxu0 %v13412_v8  ;;  %13437 = vmatpush3.bf16.msra.mxu1 %v13436_v32  ;;  %v13490_v8 = vpack.c.bf16 %v10436_v4, %v10435_v63  ;;  %v13514_v32 = vpack.c.bf16 %v10452_v3, %v10451_v5  ;;  %v13541_v63 = vpack.c.bf16 %v10470_v60, %v10469_v59  ;;  %v10471_v5 = vld [vmem:[%s16770_s6 + $0x420] sm:$0xff]  ;;  %v10472_v3 = vld [vmem:[%s16770_s6 + $0x428] sm:$0xff] }
 0x2f2   :  { %13414 = vmatprep.subr.bf16.mxu0 %v13877_v0  ;;  %13438 = vmatprep.subr.bf16.mxu1 %v13877_v0  ;;  %v13565_v4 = vpack.c.bf16 %v10486_v62, %v10485_v34  ;;  %v13544_v11 = vpack.c.bf16 %v10472_v3, %v10471_v5  ;;  %v10505_v34 = vld [vmem:[%s16770_s6 + $0x530] sm:$0xff]  ;;  %v10506_v62 = vld [vmem:[%s16770_s6 + $0x538] sm:$0xff]  ;;  %v10507_v5 = vld [vmem:[%s16770_s6 + $0x540] sm:$0xff] }
 0x2f3   :  { %v10508_v3 = vld [vmem:[%s16770_s6 + $0x548] sm:$0xff] }
 0x2f5   :  { %13416 = vmatpush3.bf16.msra.mxu0 %v13415_v15  ;;  %13440 = vmatpush3.bf16.msra.mxu1 %v13439_v42  ;;  %v8490_v15 = vld [vmem:[#allocation2 + $0x4] sm:$0x1]  ;;  %v8579_v42 = vld [vmem:[#allocation2 + $0x5] sm:$0x1] }
 0x2f6   :  { %13441 = vmatprep.subr.bf16.mxu0 %v13877_v0  ;;  %13465 = vmatprep.subr.bf16.mxu1 %v13877_v0 }
 0x2f8   :  { %12335 = vmatmul.mubr.f32.vlgmr.msra.gmra.mrb[66].mxu0 %v8312_v7  ;;  %12370 = vmatmul.mubr.f32.vlgmr.msra.gmra.mrb[74].mxu1 %v8401_v26  ;;  %v10457_v7 = vld [vmem:[%s16770_s6 + $0x3b0] sm:$0xff]  ;;  %v10458_v26 = vld [vmem:[%s16770_s6 + $0x3b8] sm:$0xff] }
 0x2f9   :  { %13443 = vmatpush3.bf16.msra.mxu0 %v13442_v24  ;;  %13467 = vmatpush3.bf16.msra.mxu1 %v13466_v23  ;;  %v10455_v24 = vld [vmem:[%s16770_s6 + $0x3a0] sm:$0xff]  ;;  %v10456_v23 = vld [vmem:[%s16770_s6 + $0x3a8] sm:$0xff] }
 0x2fa   :  { %13444 = vmatprep.subr.bf16.mxu0 %v13877_v0  ;;  %13468 = vmatprep.subr.bf16.mxu1 %v13877_v0  ;;  %v13520_v27 = vpack.c.bf16 %v10456_v23, %v10455_v24  ;;  %v10491_v24 = vld [vmem:[%s16770_s6 + $0x4c0] sm:$0xff]  ;;  %v10492_v23 = vld [vmem:[%s16770_s6 + $0x4c8] sm:$0xff] }
 0x2fb   :  { %12404 = vmatprep.mubr.msk.f32.mxu0 %vm13878_vm1, %v13879_v6  ;;  %12439 = vmatprep.mubr.msk.f32.mxu1 %vm13878_vm1, %v13879_v6 }
 0x2fd   :  { %13446 = vmatpush3.bf16.msra.mxu0 %v13445_v28  ;;  %13470 = vmatpush3.bf16.msra.mxu1 %v13469_v29  ;;  %v13499_v28 = vpack.c.bf16 %v10442_v51, %v10441_v47  ;;  %v13523_v29 = vpack.c.bf16 %v10458_v26, %v10457_v7  ;;  %v10477_v47 = vld [vmem:[%s16770_s6 + $0x450] sm:$0xff]  ;;  %v10478_v51 = vld [vmem:[%s16770_s6 + $0x458] sm:$0xff] }
 0x2fe   :  { %13447 = vmatprep.subr.bf16.mxu0 %v13877_v0  ;;  %13471 = vmatprep.subr.bf16.mxu1 %v13877_v0  ;;  %v10493_v7 = vld [vmem:[%s16770_s6 + $0x4d0] sm:$0xff]  ;;  %v10494_v26 = vld [vmem:[%s16770_s6 + $0x4d8] sm:$0xff] }
 0x301   :  { %13449 = vmatpush3.bf16.msra.mxu0 %v13448_v36  ;;  %13473 = vmatpush3.bf16.msra.mxu1 %v13472_v37  ;;  %v13502_v36 = vpack.c.bf16 %v10444_v33, %v10443_v30  ;;  %v13526_v37 = vpack.c.bf16 %v10460_v35, %v10459_v61  ;;  %v10479_v30 = vld [vmem:[%s16770_s6 + $0x460] sm:$0xff]  ;;  %v10480_v33 = vld [vmem:[%s16770_s6 + $0x468] sm:$0xff] }
 0x302   :  { %13450 = vmatprep.subr.bf16.mxu0 %v13877_v0  ;;  %13474 = vmatprep.subr.bf16.mxu1 %v13877_v0  ;;  %v10495_v61 = vld [vmem:[%s16770_s6 + $0x4e0] sm:$0xff]  ;;  %v10496_v35 = vld [vmem:[%s16770_s6 + $0x4e8] sm:$0xff] }
 0x305   :  { %13452 = vmatpush3.bf16.msra.mxu0 %v13451_v16  ;;  %13476 = vmatpush3.bf16.msra.mxu1 %v13475_v40  ;;  %v13505_v16 = vpack.c.bf16 %v10446_v39, %v10445_v38  ;;  %v13529_v40 = vpack.c.bf16 %v10462_v43, %v10461_v41  ;;  %v10481_v38 = vld [vmem:[%s16770_s6 + $0x470] sm:$0xff]  ;;  %v10482_v39 = vld [vmem:[%s16770_s6 + $0x478] sm:$0xff] }
 0x306   :  { %13453 = vmatprep.subr.bf16.mxu0 %v13877_v0  ;;  %13477 = vmatprep.subr.bf16.mxu1 %v13877_v0  ;;  %v10497_v41 = vld [vmem:[%s16770_s6 + $0x4f0] sm:$0xff]  ;;  %v10498_v43 = vld [vmem:[%s16770_s6 + $0x4f8] sm:$0xff] }
 0x309   :  { %13455 = vmatpush3.bf16.msra.mxu0 %v13454_v9  ;;  %13479 = vmatpush3.bf16.msra.mxu1 %v13478_v48  ;;  %v13508_v9 = vpack.c.bf16 %v10448_v10, %v10447_v46  ;;  %v13532_v48 = vpack.c.bf16 %v10464_v14, %v10463_v20  ;;  %v10499_v46 = vld [vmem:[%s16770_s6 + $0x500] sm:$0xff]  ;;  %v10500_v10 = vld [vmem:[%s16770_s6 + $0x508] sm:$0xff] }
 0x30a   :  { %13456 = vmatprep.subr.bf16.mxu0 %v13877_v0  ;;  %13480 = vmatprep.subr.bf16.mxu1 %v13877_v0  ;;  %v10515_v20 = vld [vmem:[%s16770_s6 + $0x580] sm:$0xff]  ;;  %v10516_v14 = vld [vmem:[%s16770_s6 + $0x588] sm:$0xff] }
 0x30d   :  { %13458 = vmatpush3.bf16.msra.mxu0 %v13457_v53  ;;  %13482 = vmatpush3.bf16.msra.mxu1 %v13481_v22  ;;  %v13511_v53 = vpack.c.bf16 %v10450_v19, %v10449_v50  ;;  %v13535_v22 = vpack.c.bf16 %v10466_v52, %v10465_v58  ;;  %v10501_v50 = vld [vmem:[%s16770_s6 + $0x510] sm:$0xff]  ;;  %v10502_v19 = vld [vmem:[%s16770_s6 + $0x518] sm:$0xff] }
 0x30e   :  { %13459 = vmatprep.subr.bf16.mxu0 %v13877_v0  ;;  %13483 = vmatprep.subr.bf16.mxu1 %v13877_v0  ;;  %v10517_v58 = vld [vmem:[%s16770_s6 + $0x590] sm:$0xff]  ;;  %v10518_v52 = vld [vmem:[%s16770_s6 + $0x598] sm:$0xff] }
 0x311   :  { %13461 = vmatpush3.bf16.msra.mxu0 %v13460_v57  ;;  %13485 = vmatpush3.bf16.msra.mxu1 %v13484_v44  ;;  %v13538_v57 = vpack.c.bf16 %v10468_v55, %v10467_v54  ;;  %v13562_v44 = vpack.c.bf16 %v10484_v31, %v10483_v56  ;;  %v13589_v54 = vpack.c.bf16 %v10502_v19, %v10501_v50  ;;  %v10503_v56 = vld [vmem:[%s16770_s6 + $0x520] sm:$0xff]  ;;  %v10504_v31 = vld [vmem:[%s16770_s6 + $0x528] sm:$0xff] }
 0x312   :  { %13462 = vmatprep.subr.bf16.mxu0 %v13877_v0  ;;  %13486 = vmatprep.subr.bf16.mxu1 %v13877_v0  ;;  %v13613_v55 = vpack.c.bf16 %v10518_v52, %v10517_v58  ;;  %v13592_v59 = vpack.c.bf16 %v10504_v31, %v10503_v56  ;;  %v10537_v58 = vld [vmem:[%s16770_s6 + $0x630] sm:$0xff]  ;;  %v10538_v52 = vld [vmem:[%s16770_s6 + $0x638] sm:$0xff]  ;;  %v10539_v56 = vld [vmem:[%s16770_s6 + $0x640] sm:$0xff] }
 0x313   :  { %v10540_v31 = vld [vmem:[%s16770_s6 + $0x648] sm:$0xff] }
 0x315   :  { %13464 = vmatpush3.bf16.msra.mxu0 %v13463_v1  ;;  %13488 = vmatpush3.bf16.msra.mxu1 %v13487_v2  ;;  %v8668_v1 = vld [vmem:[#allocation2 + $0x6] sm:$0x1]  ;;  %v8757_v2 = vld [vmem:[#allocation2 + $0x7] sm:$0x1] }
 0x316   :  { %13489 = vmatprep.subr.bf16.mxu0 %v13877_v0  ;;  %13513 = vmatprep.subr.bf16.mxu1 %v13877_v0 }
 0x318   :  { %12405 = vmatmul.mubr.f32.vlgmr.msra.gmra.mrb[68].mxu0 %v8490_v15  ;;  %12440 = vmatmul.mubr.f32.vlgmr.msra.gmra.mrb[76].mxu1 %v8579_v42  ;;  %v10489_v15 = vld [vmem:[%s16770_s6 + $0x4b0] sm:$0xff]  ;;  %v10490_v42 = vld [vmem:[%s16770_s6 + $0x4b8] sm:$0xff] }
 0x319   :  { %13491 = vmatpush3.bf16.msra.mxu0 %v13490_v8  ;;  %13515 = vmatpush3.bf16.msra.mxu1 %v13514_v32  ;;  %v10487_v8 = vld [vmem:[%s16770_s6 + $0x4a0] sm:$0xff]  ;;  %v10488_v32 = vld [vmem:[%s16770_s6 + $0x4a8] sm:$0xff] }
 0x31a   :  { %13492 = vmatprep.subr.bf16.mxu0 %v13877_v0  ;;  %13516 = vmatprep.subr.bf16.mxu1 %v13877_v0  ;;  %v13568_v12 = vpack.c.bf16 %v10488_v32, %v10487_v8  ;;  %v10523_v8 = vld [vmem:[%s16770_s6 + $0x5c0] sm:$0xff]  ;;  %v10524_v32 = vld [vmem:[%s16770_s6 + $0x5c8] sm:$0xff] }
 0x31b   :  { %12474 = vmatprep.mubr.msk.f32.mxu0 %vm13878_vm1, %v13879_v6  ;;  %12509 = vmatprep.mubr.msk.f32.mxu1 %vm13878_vm1, %v13879_v6 }
 0x31d   :  { %13494 = vmatpush3.bf16.msra.mxu0 %v13493_v17  ;;  %13518 = vmatpush3.bf16.msra.mxu1 %v13517_v18  ;;  %v13547_v17 = vpack.c.bf16 %v10474_v13, %v10473_v25  ;;  %v13571_v18 = vpack.c.bf16 %v10490_v42, %v10489_v15  ;;  %v10509_v25 = vld [vmem:[%s16770_s6 + $0x550] sm:$0xff]  ;;  %v10510_v13 = vld [vmem:[%s16770_s6 + $0x558] sm:$0xff] }
 0x31e   :  { %13495 = vmatprep.subr.bf16.mxu0 %v13877_v0  ;;  %13519 = vmatprep.subr.bf16.mxu1 %v13877_v0  ;;  %v10525_v15 = vld [vmem:[%s16770_s6 + $0x5d0] sm:$0xff]  ;;  %v10526_v42 = vld [vmem:[%s16770_s6 + $0x5d8] sm:$0xff] }
 0x321   :  { %13497 = vmatpush3.bf16.msra.mxu0 %v13496_v49  ;;  %13521 = vmatpush3.bf16.msra.mxu1 %v13520_v27  ;;  %v13550_v49 = vpack.c.bf16 %v10476_v21, %v10475_v45  ;;  %v13574_v27 = vpack.c.bf16 %v10492_v23, %v10491_v24  ;;  %v10511_v45 = vld [vmem:[%s16770_s6 + $0x560] sm:$0xff]  ;;  %v10512_v21 = vld [vmem:[%s16770_s6 + $0x568] sm:$0xff] }
 0x322   :  { %13498 = vmatprep.subr.bf16.mxu0 %v13877_v0  ;;  %13522 = vmatprep.subr.bf16.mxu1 %v13877_v0  ;;  %v10527_v24 = vld [vmem:[%s16770_s6 + $0x5e0] sm:$0xff]  ;;  %v10528_v23 = vld [vmem:[%s16770_s6 + $0x5e8] sm:$0xff] }
 0x325   :  { %13500 = vmatpush3.bf16.msra.mxu0 %v13499_v28  ;;  %13524 = vmatpush3.bf16.msra.mxu1 %v13523_v29  ;;  %v13553_v28 = vpack.c.bf16 %v10478_v51, %v10477_v47  ;;  %v13577_v29 = vpack.c.bf16 %v10494_v26, %v10493_v7  ;;  %v10513_v47 = vld [vmem:[%s16770_s6 + $0x570] sm:$0xff]  ;;  %v10514_v51 = vld [vmem:[%s16770_s6 + $0x578] sm:$0xff] }
 0x326   :  { %13501 = vmatprep.subr.bf16.mxu0 %v13877_v0  ;;  %13525 = vmatprep.subr.bf16.mxu1 %v13877_v0  ;;  %v10529_v7 = vld [vmem:[%s16770_s6 + $0x5f0] sm:$0xff]  ;;  %v10530_v26 = vld [vmem:[%s16770_s6 + $0x5f8] sm:$0xff] }
 0x329   :  { %13503 = vmatpush3.bf16.msra.mxu0 %v13502_v36  ;;  %13527 = vmatpush3.bf16.msra.mxu1 %v13526_v37  ;;  %v13556_v36 = vpack.c.bf16 %v10480_v33, %v10479_v30  ;;  %v13580_v37 = vpack.c.bf16 %v10496_v35, %v10495_v61  ;;  %v10531_v30 = vld [vmem:[%s16770_s6 + $0x600] sm:$0xff]  ;;  %v10532_v33 = vld [vmem:[%s16770_s6 + $0x608] sm:$0xff] }
 0x32a   :  { %13504 = vmatprep.subr.bf16.mxu0 %v13877_v0  ;;  %13528 = vmatprep.subr.bf16.mxu1 %v13877_v0  ;;  %v10547_v61 = vld [vmem:[%s16770_s6 + $0x680] sm:$0xff]  ;;  %v10548_v35 = vld [vmem:[%s16770_s6 + $0x688] sm:$0xff] }
 0x32d   :  { %13506 = vmatpush3.bf16.msra.mxu0 %v13505_v16  ;;  %13530 = vmatpush3.bf16.msra.mxu1 %v13529_v40  ;;  %v13559_v16 = vpack.c.bf16 %v10482_v39, %v10481_v38  ;;  %v13583_v40 = vpack.c.bf16 %v10498_v43, %v10497_v41  ;;  %v10533_v38 = vld [vmem:[%s16770_s6 + $0x610] sm:$0xff]  ;;  %v10534_v39 = vld [vmem:[%s16770_s6 + $0x618] sm:$0xff] }
 0x32e   :  { %13507 = vmatprep.subr.bf16.mxu0 %v13877_v0  ;;  %13531 = vmatprep.subr.bf16.mxu1 %v13877_v0  ;;  %v10549_v41 = vld [vmem:[%s16770_s6 + $0x690] sm:$0xff]  ;;  %v10550_v43 = vld [vmem:[%s16770_s6 + $0x698] sm:$0xff] }
 0x331   :  { %13509 = vmatpush3.bf16.msra.mxu0 %v13508_v9  ;;  %13533 = vmatpush3.bf16.msra.mxu1 %v13532_v48  ;;  %v13586_v9 = vpack.c.bf16 %v10500_v10, %v10499_v46  ;;  %v13610_v48 = vpack.c.bf16 %v10516_v14, %v10515_v20  ;;  %v13637_v46 = vpack.c.bf16 %v10534_v39, %v10533_v38  ;;  %v10535_v20 = vld [vmem:[%s16770_s6 + $0x620] sm:$0xff]  ;;  %v10536_v14 = vld [vmem:[%s16770_s6 + $0x628] sm:$0xff] }
 0x332   :  { %13510 = vmatprep.subr.bf16.mxu0 %v13877_v0  ;;  %13534 = vmatprep.subr.bf16.mxu1 %v13877_v0  ;;  %v13661_v10 = vpack.c.bf16 %v10550_v43, %v10549_v41  ;;  %v13640_v50 = vpack.c.bf16 %v10536_v14, %v10535_v20  ;;  %v10569_v41 = vld [vmem:[%s16770_s6 + $0x730] sm:$0xff]  ;;  %v10570_v43 = vld [vmem:[%s16770_s6 + $0x738] sm:$0xff]  ;;  %v10571_v20 = vld [vmem:[%s16770_s6 + $0x740] sm:$0xff] }
 0x333   :  { %v10572_v14 = vld [vmem:[%s16770_s6 + $0x748] sm:$0xff] }
 0x335   :  { %13512 = vmatpush3.bf16.msra.mxu0 %v13511_v53  ;;  %13536 = vmatpush3.bf16.msra.mxu1 %v13535_v22  ;;  %v8846_v53 = vld [vmem:[#allocation2 + $0x8] sm:$0x1]  ;;  %v8935_v22 = vld [vmem:[#allocation2 + $0x9] sm:$0x1] }
 0x336   :  { %13537 = vmatprep.subr.bf16.mxu0 %v13877_v0  ;;  %13561 = vmatprep.subr.bf16.mxu1 %v13877_v0 }
 0x338   :  { %12475 = vmatmul.mubr.f32.vlgmr.msra.gmra.mrb[70].mxu0 %v8668_v1  ;;  %12510 = vmatmul.mubr.f32.vlgmr.msra.gmra.mrb[78].mxu1 %v8757_v2  ;;  %v10521_v1 = vld [vmem:[%s16770_s6 + $0x5b0] sm:$0xff]  ;;  %v10522_v2 = vld [vmem:[%s16770_s6 + $0x5b8] sm:$0xff] }
 0x339   :  { %13539 = vmatpush3.bf16.msra.mxu0 %v13538_v57  ;;  %13563 = vmatpush3.bf16.msra.mxu1 %v13562_v44  ;;  %v10519_v57 = vld [vmem:[%s16770_s6 + $0x5a0] sm:$0xff]  ;;  %v10520_v44 = vld [vmem:[%s16770_s6 + $0x5a8] sm:$0xff] }
 0x33a   :  { %13540 = vmatprep.subr.bf16.mxu0 %v13877_v0  ;;  %13564 = vmatprep.subr.bf16.mxu1 %v13877_v0  ;;  %v13616_v60 = vpack.c.bf16 %v10520_v44, %v10519_v57  ;;  %v10555_v57 = vld [vmem:[%s16770_s6 + $0x6c0] sm:$0xff]  ;;  %v10556_v44 = vld [vmem:[%s16770_s6 + $0x6c8] sm:$0xff] }
 0x33b   :  { %12544 = vmatprep.mubr.msk.f32.mxu0 %vm13878_vm1, %v13879_v6  ;;  %12579 = vmatprep.mubr.msk.f32.mxu1 %vm13878_vm1, %v13879_v6 }
 0x33d   :  { %13542 = vmatpush3.bf16.msra.mxu0 %v13541_v63  ;;  %13566 = vmatpush3.bf16.msra.mxu1 %v13565_v4  ;;  %v13595_v63 = vpack.c.bf16 %v10506_v62, %v10505_v34  ;;  %v13619_v4 = vpack.c.bf16 %v10522_v2, %v10521_v1  ;;  %v10541_v34 = vld [vmem:[%s16770_s6 + $0x650] sm:$0xff]  ;;  %v10542_v62 = vld [vmem:[%s16770_s6 + $0x658] sm:$0xff] }
 0x33e   :  { %13543 = vmatprep.subr.bf16.mxu0 %v13877_v0  ;;  %13567 = vmatprep.subr.bf16.mxu1 %v13877_v0  ;;  %v10557_v1 = vld [vmem:[%s16770_s6 + $0x6d0] sm:$0xff]  ;;  %v10558_v2 = vld [vmem:[%s16770_s6 + $0x6d8] sm:$0xff] }
 0x341   :  { %13545 = vmatpush3.bf16.msra.mxu0 %v13544_v11  ;;  %13569 = vmatpush3.bf16.msra.mxu1 %v13568_v12  ;;  %v13598_v11 = vpack.c.bf16 %v10508_v3, %v10507_v5  ;;  %v13622_v12 = vpack.c.bf16 %v10524_v32, %v10523_v8  ;;  %v10543_v5 = vld [vmem:[%s16770_s6 + $0x660] sm:$0xff]  ;;  %v10544_v3 = vld [vmem:[%s16770_s6 + $0x668] sm:$0xff] }
 0x342   :  { %13546 = vmatprep.subr.bf16.mxu0 %v13877_v0  ;;  %13570 = vmatprep.subr.bf16.mxu1 %v13877_v0  ;;  %v10559_v8 = vld [vmem:[%s16770_s6 + $0x6e0] sm:$0xff]  ;;  %v10560_v32 = vld [vmem:[%s16770_s6 + $0x6e8] sm:$0xff] }
 0x345   :  { %13548 = vmatpush3.bf16.msra.mxu0 %v13547_v17  ;;  %13572 = vmatpush3.bf16.msra.mxu1 %v13571_v18  ;;  %v13601_v17 = vpack.c.bf16 %v10510_v13, %v10509_v25  ;;  %v13625_v18 = vpack.c.bf16 %v10526_v42, %v10525_v15  ;;  %v10545_v25 = vld [vmem:[%s16770_s6 + $0x670] sm:$0xff]  ;;  %v10546_v13 = vld [vmem:[%s16770_s6 + $0x678] sm:$0xff] }
 0x346   :  { %13549 = vmatprep.subr.bf16.mxu0 %v13877_v0  ;;  %13573 = vmatprep.subr.bf16.mxu1 %v13877_v0  ;;  %v10561_v15 = vld [vmem:[%s16770_s6 + $0x6f0] sm:$0xff]  ;;  %v10562_v42 = vld [vmem:[%s16770_s6 + $0x6f8] sm:$0xff] }
 0x349   :  { %13551 = vmatpush3.bf16.msra.mxu0 %v13550_v49  ;;  %13575 = vmatpush3.bf16.msra.mxu1 %v13574_v27  ;;  %v13604_v49 = vpack.c.bf16 %v10512_v21, %v10511_v45  ;;  %v13628_v27 = vpack.c.bf16 %v10528_v23, %v10527_v24  ;;  %v10563_v45 = vld [vmem:[%s16770_s6 + $0x700] sm:$0xff]  ;;  %v10564_v21 = vld [vmem:[%s16770_s6 + $0x708] sm:$0xff] }
 0x34a   :  { %13552 = vmatprep.subr.bf16.mxu0 %v13877_v0  ;;  %13576 = vmatprep.subr.bf16.mxu1 %v13877_v0  ;;  %v10579_v24 = vld [vmem:[%s16770_s6 + $0x780] sm:$0xff]  ;;  %v10580_v23 = vld [vmem:[%s16770_s6 + $0x788] sm:$0xff] }
 0x34d   :  { %13554 = vmatpush3.bf16.msra.mxu0 %v13553_v28  ;;  %13578 = vmatpush3.bf16.msra.mxu1 %v13577_v29  ;;  %v13607_v28 = vpack.c.bf16 %v10514_v51, %v10513_v47  ;;  %v13631_v29 = vpack.c.bf16 %v10530_v26, %v10529_v7  ;;  %v10565_v47 = vld [vmem:[%s16770_s6 + $0x710] sm:$0xff]  ;;  %v10566_v51 = vld [vmem:[%s16770_s6 + $0x718] sm:$0xff] }
 0x34e   :  { %13555 = vmatprep.subr.bf16.mxu0 %v13877_v0  ;;  %13579 = vmatprep.subr.bf16.mxu1 %v13877_v0  ;;  %v10581_v7 = vld [vmem:[%s16770_s6 + $0x790] sm:$0xff]  ;;  %v10582_v26 = vld [vmem:[%s16770_s6 + $0x798] sm:$0xff] }
 0x351   :  { %13557 = vmatpush3.bf16.msra.mxu0 %v13556_v36  ;;  %13581 = vmatpush3.bf16.msra.mxu1 %v13580_v37  ;;  %v13634_v36 = vpack.c.bf16 %v10532_v33, %v10531_v30  ;;  %v13658_v37 = vpack.c.bf16 %v10548_v35, %v10547_v61  ;;  %v13685_v30 = vpack.c.bf16 %v10566_v51, %v10565_v47  ;;  %v10567_v61 = vld [vmem:[%s16770_s6 + $0x720] sm:$0xff]  ;;  %v10568_v35 = vld [vmem:[%s16770_s6 + $0x728] sm:$0xff] }
 0x352   :  { %13558 = vmatprep.subr.bf16.mxu0 %v13877_v0  ;;  %13582 = vmatprep.subr.bf16.mxu1 %v13877_v0  ;;  %v13709_v33 = vpack.c.bf16 %v10582_v26, %v10581_v7  ;;  %v13688_v38 = vpack.c.bf16 %v10568_v35, %v10567_v61  ;;  %v9561_v51 = vld [vmem:[%s16771_s8] sm:$0xff]  ;;  %v9562_v7 = vld [vmem:[%s16771_s8 + $0x8] sm:$0xff]  ;;  %v9563_v26 = vld [vmem:[%s16771_s8 + $0x10] sm:$0xff] }
 0x353   :  { %v9566_v61 = vld [vmem:[%s16771_s8 + $0x28] sm:$0xff] }
 0x355   :  { %13560 = vmatpush3.bf16.msra.mxu0 %v13559_v16  ;;  %13584 = vmatpush3.bf16.msra.mxu1 %v13583_v40  ;;  %v9024_v16 = vld [vmem:[#allocation2 + $0xa] sm:$0x1]  ;;  %v9113_v40 = vld [vmem:[#allocation2 + $0xb] sm:$0x1] }
 0x356   :  { %13585 = vmatprep.subr.bf16.mxu0 %v13877_v0  ;;  %13609 = vmatprep.subr.bf16.mxu1 %v13877_v0 }
 0x358   :  { %12545 = vmatmul.mubr.f32.vlgmr.msra.gmra.mrb[72].mxu0 %v8846_v53  ;;  %12580 = vmatmul.mubr.f32.vlgmr.msra.gmra.mrb[80].mxu1 %v8935_v22  ;;  %v10553_v53 = vld [vmem:[%s16770_s6 + $0x6b0] sm:$0xff]  ;;  %v10554_v22 = vld [vmem:[%s16770_s6 + $0x6b8] sm:$0xff] }
 0x359   :  { %13587 = vmatpush3.bf16.msra.mxu0 %v13586_v9  ;;  %13611 = vmatpush3.bf16.msra.mxu1 %v13610_v48  ;;  %v10551_v9 = vld [vmem:[%s16770_s6 + $0x6a0] sm:$0xff]  ;;  %v10552_v48 = vld [vmem:[%s16770_s6 + $0x6a8] sm:$0xff] }
 0x35a   :  { %13588 = vmatprep.subr.bf16.mxu0 %v13877_v0  ;;  %13612 = vmatprep.subr.bf16.mxu1 %v13877_v0  ;;  %v13664_v19 = vpack.c.bf16 %v10552_v48, %v10551_v9  ;;  %v10587_v9 = vld [vmem:[%s16770_s6 + $0x7c0] sm:$0xff]  ;;  %v10588_v48 = vld [vmem:[%s16770_s6 + $0x7c8] sm:$0xff] }
 0x35b   :  { %12614 = vmatprep.mubr.msk.f32.mxu0 %vm13878_vm1, %v13879_v6  ;;  %12649 = vmatprep.mubr.msk.f32.mxu1 %vm13878_vm1, %v13879_v6 }
 0x35d   :  { %13590 = vmatpush3.bf16.msra.mxu0 %v13589_v54  ;;  %13614 = vmatpush3.bf16.msra.mxu1 %v13613_v55  ;;  %v13643_v54 = vpack.c.bf16 %v10538_v52, %v10537_v58  ;;  %v13667_v55 = vpack.c.bf16 %v10554_v22, %v10553_v53  ;;  %v10573_v58 = vld [vmem:[%s16770_s6 + $0x750] sm:$0xff]  ;;  %v10574_v52 = vld [vmem:[%s16770_s6 + $0x758] sm:$0xff] }
 0x35e   :  { %13591 = vmatprep.subr.bf16.mxu0 %v13877_v0  ;;  %13615 = vmatprep.subr.bf16.mxu1 %v13877_v0  ;;  %v10589_v53 = vld [vmem:[%s16770_s6 + $0x7d0] sm:$0xff]  ;;  %v10590_v22 = vld [vmem:[%s16770_s6 + $0x7d8] sm:$0xff] }
 0x361   :  { %13593 = vmatpush3.bf16.msra.mxu0 %v13592_v59  ;;  %13617 = vmatpush3.bf16.msra.mxu1 %v13616_v60  ;;  %v13646_v59 = vpack.c.bf16 %v10540_v31, %v10539_v56  ;;  %v13670_v60 = vpack.c.bf16 %v10556_v44, %v10555_v57  ;;  %v10575_v56 = vld [vmem:[%s16770_s6 + $0x760] sm:$0xff]  ;;  %v10576_v31 = vld [vmem:[%s16770_s6 + $0x768] sm:$0xff] }
 0x362   :  { %13594 = vmatprep.subr.bf16.mxu0 %v13877_v0  ;;  %13618 = vmatprep.subr.bf16.mxu1 %v13877_v0  ;;  %v10591_v57 = vld [vmem:[%s16770_s6 + $0x7e0] sm:$0xff]  ;;  %v10592_v44 = vld [vmem:[%s16770_s6 + $0x7e8] sm:$0xff] }
 0x365   :  { %13596 = vmatpush3.bf16.msra.mxu0 %v13595_v63  ;;  %13620 = vmatpush3.bf16.msra.mxu1 %v13619_v4  ;;  %v13649_v63 = vpack.c.bf16 %v10542_v62, %v10541_v34  ;;  %v13673_v4 = vpack.c.bf16 %v10558_v2, %v10557_v1  ;;  %v13700_v2 = vpack.c.bf16 %v10576_v31, %v10575_v56  ;;  %v9650_v56 = vld [vmem:[%s16772_s10 + $0x8] sm:$0xff]  ;;  %v9651_v31 = vld [vmem:[%s16772_s10 + $0x10] sm:$0xff] }
 0x366   :  { %13597 = vmatprep.subr.bf16.mxu0 %v13877_v0  ;;  %13621 = vmatprep.subr.bf16.mxu1 %v13877_v0 }
 0x369   :  { %13599 = vmatpush3.bf16.msra.mxu0 %v13598_v11  ;;  %13623 = vmatpush3.bf16.msra.mxu1 %v13622_v12  ;;  %v13652_v11 = vpack.c.bf16 %v10544_v3, %v10543_v5  ;;  %v13676_v12 = vpack.c.bf16 %v10560_v32, %v10559_v8  ;;  %v10578_v5 = vld [vmem:[%s16770_s6 + $0x778] sm:$0xff]  ;;  %v10593_v3 = vld [vmem:[%s16770_s6 + $0x7f0] sm:$0xff] }
 0x36a   :  { %13600 = vmatprep.subr.bf16.mxu0 %v13877_v0  ;;  %13624 = vmatprep.subr.bf16.mxu1 %v13877_v0  ;;  %v10594_v8 = vld [vmem:[%s16770_s6 + $0x7f8] sm:$0xff] }
 0x36d   :  { %13602 = vmatpush3.bf16.msra.mxu0 %v13601_v17  ;;  %13626 = vmatpush3.bf16.msra.mxu1 %v13625_v18  ;;  %v13655_v17 = vpack.c.bf16 %v10546_v13, %v10545_v25  ;;  %v13679_v18 = vpack.c.bf16 %v10562_v42, %v10561_v15  ;;  %v9469_v25 = vld [vmem:[#allocation2 + $0xf] sm:$0x1] }
 0x36e   :  { %13603 = vmatprep.subr.bf16.mxu0 %v13877_v0  ;;  %13627 = vmatprep.subr.bf16.mxu1 %v13877_v0 }
 0x371   :  { %13605 = vmatpush3.bf16.msra.mxu0 %v13604_v49  ;;  %13629 = vmatpush3.bf16.msra.mxu1 %v13628_v27  ;;  %v13682_v49 = vpack.c.bf16 %v10564_v21, %v10563_v45  ;;  %v13706_v27 = vpack.c.bf16 %v10580_v23, %v10579_v24 }
 0x372   :  { %13606 = vmatprep.subr.bf16.mxu0 %v13877_v0  ;;  %13630 = vmatprep.subr.bf16.mxu1 %v13877_v0 }
 0x375   :  { %13608 = vmatpush3.bf16.msra.mxu0 %v13607_v28  ;;  %13632 = vmatpush3.bf16.msra.mxu1 %v13631_v29  ;;  %v9202_v28 = vld [vmem:[#allocation2 + $0xc] sm:$0x1]  ;;  %v9291_v29 = vld [vmem:[#allocation2 + $0xd] sm:$0x1] }
 0x376   :  { %13633 = vmatprep.subr.bf16.mxu0 %v13877_v0  ;;  %13657 = vmatprep.subr.bf16.mxu1 %v13877_v0 }
 0x378   :  { %12615 = vmatmul.mubr.f32.vlgmr.msra.gmra.mrb[74].mxu0 %v9024_v16  ;;  %12650 = vmatmul.mubr.f32.vlgmr.msra.gmra.mrb[82].mxu1 %v9113_v40  ;;  %v10585_v16 = vld [vmem:[%s16770_s6 + $0x7b0] sm:$0xff]  ;;  %v10586_v40 = vld [vmem:[%s16770_s6 + $0x7b8] sm:$0xff] }
 0x379   :  { %13635 = vmatpush3.bf16.msra.mxu0 %v13634_v36  ;;  %13659 = vmatpush3.bf16.msra.mxu1 %v13658_v37  ;;  %v10583_v36 = vld [vmem:[%s16770_s6 + $0x7a0] sm:$0xff]  ;;  %v10584_v37 = vld [vmem:[%s16770_s6 + $0x7a8] sm:$0xff] }
 0x37a   :  { %13636 = vmatprep.subr.bf16.mxu0 %v13877_v0  ;;  %13660 = vmatprep.subr.bf16.mxu1 %v13877_v0  ;;  %v13712_v39 = vpack.c.bf16 %v10584_v37, %v10583_v36  ;;  %v9567_v36 = vld [vmem:[%s16771_s8 + $0x30] sm:$0xff]  ;;  %v9568_v37 = vld [vmem:[%s16771_s8 + $0x38] sm:$0xff] }
 0x37b   :  { %12684 = vmatprep.mubr.msk.f32.mxu0 %vm13878_vm1, %v13879_v6  ;;  %12719 = vmatprep.mubr.msk.f32.mxu1 %vm13878_vm1, %v13879_v6 }
 0x37d   :  { %13638 = vmatpush3.bf16.msra.mxu0 %v13637_v46  ;;  %13662 = vmatpush3.bf16.msra.mxu1 %v13661_v10  ;;  %v13691_v46 = vpack.c.bf16 %v10570_v43, %v10569_v41  ;;  %v13715_v10 = vpack.c.bf16 %v10586_v40, %v10585_v16  ;;  %v9570_v41 = vld [vmem:[%s16771_s8 + $0x48] sm:$0xff]  ;;  %v9571_v16 = vld [vmem:[%s16771_s8 + $0x50] sm:$0xff]  ;;  %v9572_v40 = vld [vmem:[%s16771_s8 + $0x58] sm:$0xff] }
 0x37e   :  { %13639 = vmatprep.subr.bf16.mxu0 %v13877_v0  ;;  %13663 = vmatprep.subr.bf16.mxu1 %v13877_v0 }
 0x381   :  { %13641 = vmatpush3.bf16.msra.mxu0 %v13640_v50  ;;  %13665 = vmatpush3.bf16.msra.mxu1 %v13664_v19  ;;  %v13694_v50 = vpack.c.bf16 %v10572_v14, %v10571_v20  ;;  %v13718_v19 = vpack.c.bf16 %v10588_v48, %v10587_v9 }
 0x382   :  { %13642 = vmatprep.subr.bf16.mxu0 %v13877_v0  ;;  %13666 = vmatprep.subr.bf16.mxu1 %v13877_v0 }
 0x385   :  { %13644 = vmatpush3.bf16.msra.mxu0 %v13643_v54  ;;  %13668 = vmatpush3.bf16.msra.mxu1 %v13667_v55  ;;  %v13697_v54 = vpack.c.bf16 %v10574_v52, %v10573_v58  ;;  %v13721_v55 = vpack.c.bf16 %v10590_v22, %v10589_v53  ;;  %v9574_v58 = vld [vmem:[%s16771_s8 + $0x68] sm:$0xff]  ;;  %v9575_v53 = vld [vmem:[%s16771_s8 + $0x70] sm:$0xff]  ;;  %v9576_v22 = vld [vmem:[%s16771_s8 + $0x78] sm:$0xff] }
 0x386   :  { %13645 = vmatprep.subr.bf16.mxu0 %v13877_v0  ;;  %13669 = vmatprep.subr.bf16.mxu1 %v13877_v0 }
 0x389   :  { %13647 = vmatpush3.bf16.msra.mxu0 %v13646_v59  ;;  %13671 = vmatpush3.bf16.msra.mxu1 %v13670_v60 }
 0x38a   :  { %13648 = vmatprep.subr.bf16.mxu0 %v13877_v0  ;;  %13672 = vmatprep.subr.bf16.mxu1 %v13877_v0 }
 0x38d   :  { %13650 = vmatpush3.bf16.msra.mxu0 %v13649_v63  ;;  %13674 = vmatpush3.bf16.msra.mxu1 %v13673_v4  ;;  %v13724_v63 = vpack.c.bf16 %v10592_v44, %v10591_v57  ;;  %v10577_v4 = vld [vmem:[%s16770_s6 + $0x770] sm:$0xff]  ;;  %v9652_v44 = vld [vmem:[%s16772_s10 + $0x18] sm:$0xff] }
 0x38e   :  { %13651 = vmatprep.subr.bf16.mxu0 %v13877_v0  ;;  %13675 = vmatprep.subr.bf16.mxu1 %v13877_v0  ;;  %v13703_v32 = vpack.c.bf16 %v10578_v5, %v10577_v4  ;;  %v9657_v4 = vld [vmem:[%s16772_s10 + $0x40] sm:$0xff]  ;;  %v9658_v5 = vld [vmem:[%s16772_s10 + $0x48] sm:$0xff] }
 0x391   :  { %13653 = vmatpush3.bf16.msra.mxu0 %v13652_v11  ;;  %13677 = vmatpush3.bf16.msra.mxu1 %v13676_v12  ;;  %v13727_v11 = vpack.c.bf16 %v10594_v8, %v10593_v3  ;;  %v9380_v12 = vld [vmem:[#allocation2 + $0xe] sm:$0x1]  ;;  %v13766_v3 = vpack.c.bf16 %v9658_v5, %v9657_v4  ;;  %v9659_v8 = vld [vmem:[%s16772_s10 + $0x50] sm:$0xff] }
 0x392   :  { %13654 = vmatprep.subr.bf16.mxu0 %v13877_v0  ;;  %13678 = vmatprep.subr.bf16.mxu1 %v13877_v0  ;;  %v9754_v4 = vld [vmem:[%s16774_s14 + $0x68] sm:$0xff] }
 0x395   :  { %13656 = vmatpush3.bf16.msra.mxu0 %v13655_v17  ;;  %13680 = vmatpush3.bf16.msra.mxu1 %v13679_v18 }
 0x396   :  { %13681 = vmatprep.subr.bf16.mxu0 %v13877_v0  ;;  %13705 = vmatprep.subr.bf16.mxu1 %v13877_v0 }
 0x398   :  { %12685 = vmatmul.mubr.f32.vlgmr.msra.gmra.mrb[76].mxu0 %v9202_v28  ;;  %12720 = vmatmul.mubr.f32.vlgmr.msra.gmra.mrb[84].mxu1 %v9291_v29  ;;  %v13730_v28 = vpack.c.bf16 %v9562_v7, %v9561_v51  ;;  %v9564_v29 = vld [vmem:[%s16771_s8 + $0x18] sm:$0xff] }
 0x399   :  { %13683 = vmatpush3.bf16.msra.mxu0 %v13682_v49  ;;  %13707 = vmatpush3.bf16.msra.mxu1 %v13706_v27 }
 0x39a   :  { %13684 = vmatprep.subr.bf16.mxu0 %v13877_v0  ;;  %13708 = vmatprep.subr.bf16.mxu1 %v13877_v0 }
 0x39b   :  { %12754 = vmatprep.mubr.msk.f32.mxu0 %vm13878_vm1, %v13879_v6  ;;  %12789 = vmatprep.mubr.msk.f32.mxu1 %vm13878_vm1, %v13879_v6 }
 0x39d   :  { %13686 = vmatpush3.bf16.msra.mxu0 %v13685_v30  ;;  %13710 = vmatpush3.bf16.msra.mxu1 %v13709_v33  ;;  %v13733_v30 = vpack.c.bf16 %v9564_v29, %v9563_v26  ;;  %v9565_v33 = vld [vmem:[%s16771_s8 + $0x20] sm:$0xff] }
 0x39e   :  { %13687 = vmatprep.subr.bf16.mxu0 %v13877_v0  ;;  %13711 = vmatprep.subr.bf16.mxu1 %v13877_v0  ;;  %v13736_v35 = vpack.c.bf16 %v9566_v61, %v9565_v33 }
 0x3a1   :  { %13689 = vmatpush3.bf16.msra.mxu0 %v13688_v38  ;;  %13713 = vmatpush3.bf16.msra.mxu1 %v13712_v39  ;;  %v13739_v38 = vpack.c.bf16 %v9568_v37, %v9567_v36  ;;  %v9569_v39 = vld [vmem:[%s16771_s8 + $0x40] sm:$0xff] }
 0x3a2   :  { %13690 = vmatprep.subr.bf16.mxu0 %v13877_v0  ;;  %13714 = vmatprep.subr.bf16.mxu1 %v13877_v0  ;;  %v13742_v43 = vpack.c.bf16 %v9570_v41, %v9569_v39  ;;  %v9558_v39 = vld [vmem:[%s16773_s7] sm:$0x1] }
 0x3a5   :  { %13692 = vmatpush3.bf16.msra.mxu0 %v13691_v46  ;;  %13716 = vmatpush3.bf16.msra.mxu1 %v13715_v10  ;;  %v13745_v46 = vpack.c.bf16 %v9572_v40, %v9571_v16  ;;  %v9663_v40 = vld [vmem:[%s16772_s10 + $0x70] sm:$0xff] }
 0x3a6   :  { %13693 = vmatprep.subr.bf16.mxu0 %v13877_v0  ;;  %13717 = vmatprep.subr.bf16.mxu1 %v13877_v0 }
 0x3a9   :  { %13695 = vmatpush3.bf16.msra.mxu0 %v13694_v50  ;;  %13719 = vmatpush3.bf16.msra.mxu1 %v13718_v19  ;;  %v9573_v19 = vld [vmem:[%s16771_s8 + $0x60] sm:$0xff] }
 0x3aa   :  { %13696 = vmatprep.subr.bf16.mxu0 %v13877_v0  ;;  %13720 = vmatprep.subr.bf16.mxu1 %v13877_v0  ;;  %v13748_v52 = vpack.c.bf16 %v9574_v58, %v9573_v19  ;;  %v9745_v19 = vld [vmem:[%s16774_s14 + $0x20] sm:$0xff]  ;;  %v9746_v58 = vld [vmem:[%s16774_s14 + $0x28] sm:$0xff] }
 0x3ab   :  { %v8238_v59 = vpop.f32.mrb[64].mxu0  ;;  %v8308_v60 = vpop.f32.mrb[72].mxu1 }
 0x3ac   :  { %v8309_v34 = vadd.f32 %v8308_v60, %v8238_v59  ;;  %v12266_v62 = vpop.f32.mrb[65].mxu0  ;;  %v12301_v1 = vpop.f32.mrb[73].mxu1  ;;  %v13757_v59 = vpack.c.bf16 %v9652_v44, %v9651_v31  ;;  %v9653_v60 = vld [vmem:[%s16772_s10 + $0x20] sm:$0xff]  ;;  %v9752_v44 = vld [vmem:[%s16774_s14 + $0x58] sm:$0xff] }
 0x3ad   :  { %13698 = vmatpush3.bf16.msra.mxu0 %v13697_v54  ;;  %13722 = vmatpush3.bf16.msra.mxu1 %v13721_v55  ;;  %v13751_v54 = vpack.c.bf16 %v9576_v22, %v9575_v53  ;;  %v9649_v55 = vld [vmem:[%s16772_s10] sm:$0xff]  ;;  %v9655_v1 = vld [vmem:[%s16772_s10 + $0x30] sm:$0xff]  ;;  %v9748_v22 = vld [vmem:[%s16774_s14 + $0x38] sm:$0xff] }
 0x3ae   :  { %13699 = vmatprep.subr.bf16.mxu0 %v13877_v0  ;;  %13723 = vmatprep.subr.bf16.mxu1 %v13877_v0  ;;  %v13754_v57 = vpack.c.bf16 %v9650_v56, %v9649_v55  ;;  %v9747_v53 = vld [vmem:[%s16774_s14 + $0x30] sm:$0xff]  ;;  %v9749_v55 = vld [vmem:[%s16774_s14 + $0x40] sm:$0xff]  ;;  %v9750_v56 = vld [vmem:[%s16774_s14 + $0x48] sm:$0xff] }
 0x3af   :  { %v13790_v31 = vpack.c.bf16 %v9750_v56, %v9749_v55 }
 0x3b1   :  { %13701 = vmatpush3.bf16.msra.mxu0 %v13700_v2  ;;  %13725 = vmatpush3.bf16.msra.mxu1 %v13724_v63  ;;  %v9656_v2 = vld [vmem:[%s16772_s10 + $0x38] sm:$0xff] }
 0x3b2   :  { %13702 = vmatprep.subr.bf16.mxu0 %v13877_v0  ;;  %13726 = vmatprep.subr.bf16.mxu1 %v13877_v0  ;;  %v13763_v63 = vpack.c.bf16 %v9656_v2, %v9655_v1 }
 0x3b5   :  { %13704 = vmatpush3.bf16.msra.mxu0 %v13703_v32  ;;  %13728 = vmatpush3.bf16.msra.mxu1 %v13727_v11  ;;  %v9660_v32 = vld [vmem:[%s16772_s10 + $0x58] sm:$0xff] }
 0x3b6   :  { %13729 = vmatprep.subr.bf16.mxu0 %v13877_v0  ;;  %13753 = vmatprep.subr.bf16.mxu1 %v13877_v0  ;;  %v13769_v11 = vpack.c.bf16 %v9660_v32, %v9659_v8  ;;  %v9756_v8 = vld [vmem:[%s16774_s14 + $0x78] sm:$0xff] }
 0x3b8   :  { %12755 = vmatmul.mubr.f32.vlgmr.msra.gmra.mrb[78].mxu0 %v9380_v12  ;;  %12790 = vmatmul.mubr.f32.vlgmr.msra.gmra.mrb[86].mxu1 %v9469_v25  ;;  %v9661_v12 = vld [vmem:[%s16772_s10 + $0x60] sm:$0xff]  ;;  %v9662_v25 = vld [vmem:[%s16772_s10 + $0x68] sm:$0xff] }
 0x3b9   :  { %12824 = vmatprep.mubr.msk.f32.mxu0 %vm13878_vm1, %v13879_v6  ;;  %12859 = vmatprep.mubr.msk.f32.mxu1 %vm13878_vm1, %v13879_v6 }
 0x3ba   :  { %13731 = vmatpush3.bf16.msra.mxu0 %v13730_v28  ;;  %13755 = vmatpush3.bf16.msra.mxu1 %v13754_v57  ;;  %v9751_v57 = vld [vmem:[%s16774_s14 + $0x50] sm:$0xff] }
 0x3bb   :  { %13732 = vmatprep.subr.bf16.mxu0 %v13877_v0  ;;  %13756 = vmatprep.subr.bf16.mxu1 %v13877_v0 }
 0x3be   :  { %13734 = vmatpush3.bf16.msra.mxu0 %v13733_v30  ;;  %13758 = vmatpush3.bf16.msra.mxu1 %v13757_v59  ;;  %v13793_v59 = vpack.c.bf16 %v9752_v44, %v9751_v57 }
 0x3bf   :  { %13735 = vmatprep.subr.bf16.mxu0 %v13877_v0  ;;  %13759 = vmatprep.subr.bf16.mxu1 %v13877_v0 }
 0x3c2   :  { %13737 = vmatpush3.bf16.msra.mxu0 %v13736_v35 }
 0x3c3   :  { %13738 = vmatprep.subr.bf16.mxu0 %v13877_v0 }
 0x3c6   :  { %13740 = vmatpush3.bf16.msra.mxu0 %v13739_v38 }
 0x3c7   :  { %13741 = vmatprep.subr.bf16.mxu0 %v13877_v0 }
 0x3ca   :  { %13743 = vmatpush3.bf16.msra.mxu0 %v13742_v43 }
 0x3cb   :  { %v8396_v13 = vpop.f32.mrb[66].mxu0  ;;  %v8485_v15 = vpop.f32.mrb[74].mxu1  ;;  %13744 = vmatprep.subr.bf16.mxu0 %v13877_v0 }
 0x3cc   :  { %v8400_v42 = vadd.f32 %v8396_v13, %v8309_v34  ;;  %v12336_v17 = vpop.f32.mrb[67].mxu0  ;;  %v12371_v18 = vpop.f32.mrb[75].mxu1  ;;  %v9654_v34 = vld [vmem:[%s16772_s10 + $0x28] sm:$0xff] }
 0x3cd   :  { %v13760_v62 = vpack.c.bf16 %v9654_v34, %v9653_v60  ;;  %v9577_v60 = vld [vmem:[%s16775_s9] sm:$0x1] }
 0x3ce   :  { %v8489_v45 = vadd.f32 %v8485_v15, %v8400_v42  ;;  %13746 = vmatpush3.bf16.msra.mxu0 %v13745_v46  ;;  %v9664_v46 = vld [vmem:[%s16772_s10 + $0x78] sm:$0xff] }
 0x3cf   :  { %13747 = vmatprep.subr.bf16.mxu0 %v13877_v0  ;;  %13761 = vmatpush3.bf16.msra.mxu1 %v13760_v62 }
 0x3d0   :  { %13762 = vmatprep.subr.bf16.mxu1 %v13877_v0 }
 0x3d2   :  { %13749 = vmatpush3.bf16.msra.mxu0 %v13748_v52  ;;  %v13784_v52 = vpack.c.bf16 %v9746_v58, %v9745_v19 }
 0x3d3   :  { %13750 = vmatprep.subr.bf16.mxu0 %v13877_v0  ;;  %13764 = vmatpush3.bf16.msra.mxu1 %v13763_v63  ;;  %v9753_v63 = vld [vmem:[%s16774_s14 + $0x60] sm:$0xff] }
 0x3d4   :  { %13765 = vmatprep.subr.bf16.mxu1 %v13877_v0  ;;  %v13796_v5 = vpack.c.bf16 %v9754_v4, %v9753_v63 }
 0x3d6   :  { %13752 = vmatpush3.bf16.msra.mxu0 %v13751_v54  ;;  %v13787_v54 = vpack.c.bf16 %v9748_v22, %v9747_v53 }
 0x3d7   :  { %13777 = vmatprep.subr.bf16.mxu0 %v13877_v0  ;;  %13767 = vmatpush3.bf16.msra.mxu1 %v13766_v3  ;;  %v9755_v3 = vld [vmem:[%s16774_s14 + $0x70] sm:$0xff] }
 0x3d8   :  { %13768 = vmatprep.subr.bf16.mxu1 %v13877_v0  ;;  %v13799_v32 = vpack.c.bf16 %v9756_v8, %v9755_v3 }
 0x3db   :  { %13770 = vmatpush3.bf16.msra.mxu1 %v13769_v11  ;;  %v9665_v11 = vld [vmem:[%s16776_s11] sm:$0x1] }
 0x3dc   :  { %13771 = vmatprep.subr.bf16.mxu1 %v13877_v0 }
 0x3eb   :  { %v8574_v21 = vpop.f32.mrb[68].mxu0  ;;  %v8663_v24 = vpop.f32.mrb[76].mxu1 }
 0x3ec   :  { %v8578_v23 = vadd.f32 %v8574_v21, %v8489_v45  ;;  %v12406_v49 = vpop.f32.mrb[69].mxu0  ;;  %v12441_v27 = vpop.f32.mrb[77].mxu1  ;;  %v13772_v45 = vpack.c.bf16 %v9662_v25, %v9661_v12 }
 0x3ee   :  { %v8667_v47 = vadd.f32 %v8663_v24, %v8578_v23  ;;  %13773 = vmatpush3.bf16.msra.mxu1 %v13772_v45 }
 0x3ef   :  { %13774 = vmatprep.subr.bf16.mxu1 %v13877_v0 }
 0x40b   :  { %v8752_v10 = vpop.f32.mrb[70].mxu0  ;;  %v8841_v20 = vpop.f32.mrb[78].mxu1 }
 0x40c   :  { %v8756_v14 = vadd.f32 %v8752_v10, %v8667_v47  ;;  %v12476_v9 = vpop.f32.mrb[71].mxu0  ;;  %v12511_v48 = vpop.f32.mrb[79].mxu1  ;;  %v13775_v10 = vpack.c.bf16 %v9664_v46, %v9663_v40 }
 0x40d   :  { %v9744_v48 = vld [vmem:[%s16774_s14 + $0x18] sm:$0xff] }
 0x40e   :  { %v8845_v50 = vadd.f32 %v8841_v20, %v8756_v14  ;;  %13776 = vmatpush3.bf16.msra.mxu1 %v13775_v10  ;;  %v9741_v20 = vld [vmem:[%s16774_s14] sm:$0xff]  ;;  %v9742_v14 = vld [vmem:[%s16774_s14 + $0x8] sm:$0xff] }
 0x40f   :  { %v13778_v9 = vpack.c.bf16 %v9742_v14, %v9741_v20 }
 0x42b   :  { %v8930_v13 = vpop.f32.mrb[72].mxu0  ;;  %v9019_v15 = vpop.f32.mrb[80].mxu1 }
 0x42c   :  { %v8934_v42 = vadd.f32 %v8930_v13, %v8845_v50  ;;  %v12546_v17 = vpop.f32.mrb[73].mxu0  ;;  %v12581_v18 = vpop.f32.mrb[81].mxu1 }
 0x42d   :  { %v9739_v17 = vld [vmem:[%s16778_s13] sm:$0x1] }
 0x42e   :  { %v9023_v21 = vadd.f32 %v9019_v15, %v8934_v42  ;;  %v9737_v15 = vld [vmem:[%s16777_s12] sm:$0x1] }
 0x44b   :  { %v9108_v24 = vpop.f32.mrb[74].mxu0  ;;  %v9197_v23 = vpop.f32.mrb[82].mxu1 }
 0x44c   :  { %v9112_v49 = vadd.f32 %v9108_v24, %v9023_v21  ;;  %v12616_v27 = vpop.f32.mrb[75].mxu0  ;;  %v12651_v47 = vpop.f32.mrb[83].mxu1 }
 0x44e   :  { %v9201_v51 = vadd.f32 %v9197_v23, %v9112_v49 }
 0x46b   :  { %v9286_v7 = vpop.f32.mrb[76].mxu0  ;;  %v9375_v26 = vpop.f32.mrb[84].mxu1 }
 0x46c   :  { %v9290_v28 = vadd.f32 %v9286_v7, %v9201_v51  ;;  %v12686_v29 = vpop.f32.mrb[77].mxu0  ;;  %v12721_v30 = vpop.f32.mrb[85].mxu1 }
 0x46e   :  { %v9379_v33 = vadd.f32 %v9375_v26, %v9290_v28 }
 0x48b   :  { %v9464_v61 = vpop.f32.mrb[78].mxu0  ;;  %v9553_v35 = vpop.f32.mrb[86].mxu1 }
 0x48c   :  { %v9468_v36 = vadd.f32 %v9464_v61, %v9379_v33  ;;  %v12756_v37 = vpop.f32.mrb[79].mxu0  ;;  %v12791_v38 = vpop.f32.mrb[87].mxu1 }
 0x48e   :  { %v9557_v41 = vadd.f32 %v9553_v35, %v9468_v36 }
 0x490   :  { %v9559_v43 = vadd.f32 %v9558_v39, %v9557_v41 }
 0x492   :  { %v9560_v16 = vmax.f32 %v9559_v43, 0.0 }
 0x494   :  { %12825 = vmatmul.mubr.f32.vlgmr.msra.gmra.mrb[80].mxu0 %v9560_v16 }
 0x495   :  { %12894 = vmatprep.mubr.msk.f32.mxu0 %vm13878_vm1, %v13879_v6  ;;  %v9743_v6 = vld [vmem:[%s16774_s14 + $0x10] sm:$0xff]  ;;  %13779 = vmatpush3.bf16.msra.mxu0 %v13778_v9 }
 0x496   :  { %v13781_v50 = vpack.c.bf16 %v9744_v48, %v9743_v6  ;;  %13780 = vmatprep.subr.bf16.mxu0 %v13877_v0 }
 0x499   :  { %13782 = vmatpush3.bf16.msra.mxu0 %v13781_v50 }
 0x49a   :  { %13783 = vmatprep.subr.bf16.mxu0 %v13877_v0 }
 0x49d   :  { %13785 = vmatpush3.bf16.msra.mxu0 %v13784_v52 }
 0x49e   :  { %13786 = vmatprep.subr.bf16.mxu0 %v13877_v0 }
 0x4a1   :  { %13788 = vmatpush3.bf16.msra.mxu0 %v13787_v54 }
 0x4a2   :  { %13789 = vmatprep.subr.bf16.mxu0 %v13877_v0 }
 0x4a5   :  { %13791 = vmatpush3.bf16.msra.mxu0 %v13790_v31 }
 0x4a6   :  { %13792 = vmatprep.subr.bf16.mxu0 %v13877_v0 }
 0x4a9   :  { %13794 = vmatpush3.bf16.msra.mxu0 %v13793_v59 }
 0x4aa   :  { %13795 = vmatprep.subr.bf16.mxu0 %v13877_v0 }
 0x4ad   :  { %13797 = vmatpush3.bf16.msra.mxu0 %v13796_v5 }
 0x4ae   :  { %13798 = vmatprep.subr.bf16.mxu0 %v13877_v0 }
 0x4b1   :  { %13800 = vmatpush3.bf16.msra.mxu0 %v13799_v32 }
 0x567   :  { %v9644_v34 = vpop.f32.mrb[80].mxu0 }
 0x568   :  { %v9645_v62 = vadd.f32 %v9644_v34, %v9577_v60  ;;  %v12826_v1 = vpop.f32.mrb[81].mxu0 }
 0x56a   :  { %v9648_v2 = vmax.f32 %v9645_v62, 0.0 }
 0x56c   :  { %12860 = vmatmul.mubr.f32.vlgmr.msra.gmra.mrb[88].mxu1 %v9648_v2 }
 0x63f   :  { %v9732_v12 = vpop.f32.mrb[88].mxu1 }
 0x640   :  { %v9733_v25 = vadd.f32 %v9732_v12, %v9665_v11  ;;  %v12861_v13 = vpop.f32.mrb[89].mxu1 }
 0x642   :  { %v9736_v42 = vmax.f32 %v9733_v25, 0.0 }
 0x644   :  { %v9738_v18 = vmul.f32 %v9737_v15, %v9736_v42 }
 0x646   :  { %v9740_v45 = vadd.f32 %v9739_v17, %v9738_v18 }
 0x648   :  { %12895 = vmatmul.mubr.f32.vlgmr.msra.gmra.mrb[82].mxu0 %v9740_v45 }
 0x71b   :  { %v9823_v0 = vpop.f32.mrb[82].mxu0 }
 0x71c   :  { %v9827_v21 = vmul.f32 0.70710677, %v9823_v0  ;;  %v12896_v24 = vpop.f32.mrb[83].mxu0 }
 0x71e   :  { %v9828_v23 = vand.u32 2147483647, %v9827_v21  ;;  %vm9848_vm6 = vcmp.ge.f32.partialorder %v9827_v21, 0.0 }
 0x720   :  { %v9829_v49 = vmul.f32 0.3275911, %v9828_v23  ;;  %v9842_v47 = vsub.f32 0.0, %v9828_v23 }
 0x722   :  { %v9830_v27 = vadd.f32 1.0, %v9829_v49  ;;  %v9843_v7 = vmul.f32 %v9842_v47, %v9828_v23 }
 0x724   :  { %13872 = vrcp.f32 %v9830_v27  ;;  %v9844_v29 = vmul.f32 1.442695, %v9843_v7 }
 0x726   :  { %13874 = vpow2.f32 %v9844_v29 }
 0x72e   :  { %v13873_v51 = vpop.eup %13872 }
 0x72f   :  { %v9833_v26 = vmul.f32 1.0614054, %v13873_v51 }
 0x730   :  { %v13875_v39 = vpop.eup %13874 }
 0x731   :  { %v10595_v28 = vadd.f32 -1.4531521, %v9833_v26 }
 0x733   :  { %v9835_v30 = vmul.f32 %v13873_v51, %v10595_v28 }
 0x735   :  { %v9836_v33 = vadd.f32 1.4214138, %v9835_v30 }
 0x737   :  { %v9837_v61 = vmul.f32 %v13873_v51, %v9836_v33 }
 0x739   :  { %v10596_v35 = vadd.f32 -0.28449672, %v9837_v61 }
 0x73b   :  { %v9839_v36 = vmul.f32 %v13873_v51, %v10596_v35 }
 0x73d   :  { %v9840_v37 = vadd.f32 0.2548296, %v9839_v36 }
 0x73f   :  { %v9841_v38 = vmul.f32 %v13873_v51, %v9840_v37 }
 0x741   :  { %v9846_v41 = vmul.f32 %v13875_v39, %v9841_v38 }
 0x743   :  { %v9847_v43 = vsub.f32 1.0, %v9846_v41 }
 0x745   :  { %v9849_v16 = vsub.f32 0.0, %v9847_v43 }
 0x747   :  { %v9850_v40 = vsel %vm9848_vm6, %v9847_v43, %v9849_v16 }
 0x748   :  { %9851 = vst [vmem:[%s16779_s15] sm:$0x1] %v9850_v40 }

</bundles_post_ra>
